<compile_context>
chip_gen: v6e
topology: v6e:2x2x1
jax: 0.10.0
libtpu: 0.0.40
codegen_flags: <defaults>
</compile_context>

<pallas_src>
import functools

import jax
import jax.numpy as jnp
import numpy as np
from jax.experimental import pallas as pl
from jax.experimental.pallas import tpu as pltpu

# ---------------- architecture config (small, deterministic) ----------------
W_HID = 64          # trunk width
W_RGB = 32          # rgb-branch hidden width
N_LAYERS = 8        # trunk depth
SKIP = 4            # skip connection (re-inject position embedding) at layer 4
L_POS_FREQ = 4      # xyz encoding frequencies
L_DIR_FREQ = 2      # viewdir encoding frequencies
D_POS = 32          # padded xyz positional embedding (3 + 3*2*4 = 27 -> 32)
D_DIR = 16          # padded viewdir positional embedding (3 + 3*2*2 = 15 -> 16)
D_RAW = 8           # raw per-point lanes fed to the kernel: [xyz | dir | 0 0]
D_FREQ = 8 * L_POS_FREQ   # 32-lane packed sin/cos argument frame
D_HEAD = 128        # fused feat+sigma head width: [feat(64) | sigma(1) | 0]
TN = 2048           # default row tile (points per grid step); sweep 1024-8192

VANILLA_NERF = "vanilla_nerf"
ARCH_NAMES = (VANILLA_NERF,)

BF16 = jnp.bfloat16
F32 = jnp.float32


# ------------------------------- Pallas kernel -------------------------------
def nerf_mlp_kernel(pts_ref,        # (TN, 8)    f32  [xyz | viewdir | 0 0]
                    w0_id_ref,      # (8, 128)   bf16 identity rows of [w_in|w_skip]
                    w0_sin_ref,     # (32, 128)  bf16 sin rows of [w_in|w_skip]
                    w0_cos_ref,     # (32, 128)  bf16 cos rows of [w_in|w_skip]
                    wd_id_ref,      # (8, 32)    bf16 identity rows of w_r0d
                    wd_sin_ref,     # (32, 32)   bf16 sin rows of w_r0d
                    wd_cos_ref,     # (32, 32)   bf16 cos rows of w_r0d
                    w_hid_ref,      # (7, 64, 64) bf16 trunk hidden weights
                    b_trunk_ref,    # (8, 64)    f32
                    w_fs_ref,       # (64, 128)  bf16 [w_feat | w_sig | 0]
                    w_r0f_ref,      # (128, 32)  bf16 (rows 64.. are zero)
                    w_r1_ref,       # (32, 3)    bf16
                    b_heads_ref,    # (3, 128)   f32 [b_feat|b_sig ; b_r0 ; b_r1]
                    out_ref):       # (TN, 4)    f32 [rgb | sigma]
    def mm(a, b):  # bf16 operands, f32 accumulation on the MXU
        return jnp.dot(a, b, preferred_element_type=F32)

    p = pts_ref[...]                                        # (TN, 8) f32
    # Packed sin/cos argument frame: 4 frequency groups of the 8 raw lanes.
    # Lane-dense => the two transcendental passes touch TN/8 vregs total.
    args = jnp.concatenate([p * (2.0 ** k) for k in range(L_POS_FREQ)], axis=-1)
    sn = jnp.sin(args)                                      # (TN, 32) f32
    cn = jnp.cos(args)                                      # (TN, 32) f32
    p_b, sn_b, cn_b = p.astype(BF16), sn.astype(BF16), cn.astype(BF16)

    b_trunk = b_trunk_ref[...]                              # (8, 64)  f32
    b_heads = b_heads_ref[...]                              # (3, 128) f32

    # Fused [layer0 | skip] pre-activations: three partial dots (identity /
    # sin / cos frames) accumulated in f32 into one 128-wide output.
    z0 = (mm(p_b, w0_id_ref[...]) + mm(sn_b, w0_sin_ref[...])
          + mm(cn_b, w0_cos_ref[...]))                      # (TN, 128)
    skip = z0[:, W_HID:2 * W_HID]                           # resident for layer SKIP
    h = jnp.maximum(z0[:, :W_HID] + b_trunk[0:1], 0.0).astype(BF16)

    # View-direction conditioning of the RGB branch, computed once.
    dirh = (mm(p_b, wd_id_ref[...]) + mm(sn_b, wd_sin_ref[...])
            + mm(cn_b, wd_cos_ref[...]))                    # (TN, 32)

    # Trunk layers 1..7 (bf16 activations, f32 accumulate / bias / ReLU).
    for i in range(1, N_LAYERS):
        z = mm(h, w_hid_ref[i - 1]) + b_trunk[i:i + 1]
        if i == SKIP:
            z = z + skip
        h = jnp.maximum(z, 0.0).astype(BF16)

    # Fused feature + sigma head: cols 0..63 = feat, col 64 = sigma, rest 0.
    zf = mm(h, w_fs_ref[...]) + b_heads[0:1, :]             # (TN, 128) f32
    sigma = zf[:, W_HID:W_HID + 1]                          # (TN, 1) raw

    # RGB branch: zf's sigma/zero lanes hit zero rows of w_r0f.
    hr = jnp.maximum(mm(zf.astype(BF16), w_r0f_ref[...]) + dirh
                     + b_heads[1:2, :W_RGB], 0.0)           # (TN, 32)
    rgb = jax.nn.sigmoid(mm(hr.astype(BF16), w_r1_ref[...]) + b_heads[2:3, :3])

    out_ref[:, 0:3] = rgb
    out_ref[:, 3:4] = sigma


# ------------------------------- JAX glue ------------------------------------
def positional_encoding(x, n_freq, pad_to):
    """Reference-only: x (N,3) -> (N, pad_to) = [x, sin(2^k x), cos(2^k x)]."""
    feats = [x]
    for k in range(n_freq):
        feats.append(jnp.sin((2.0 ** k) * x))
        feats.append(jnp.cos((2.0 ** k) * x))
    emb = jnp.concatenate(feats, axis=-1)
    return jnp.pad(emb, ((0, 0), (0, pad_to - emb.shape[-1])))


def init_params(key):
    """Natural (unpacked, f32) NeRF parameters."""
    ks = jax.random.split(key, 14)
    lin = lambda k, fan_in, shape: (
        jax.random.normal(k, shape, F32) / jnp.sqrt(float(fan_in)))
    return dict(
        w_in=lin(ks[0], D_POS, (D_POS, W_HID)),
        w_hid=lin(ks[1], W_HID, (N_LAYERS - 1, W_HID, W_HID)),
        w_skip=lin(ks[2], D_POS, (D_POS, W_HID)),
        b_trunk=0.01 * jax.random.normal(ks[3], (N_LAYERS, W_HID), F32),
        w_sig=lin(ks[4], W_HID, (W_HID, 1)),
        b_sig=0.01 * jax.random.normal(ks[5], (1, 1), F32),
        w_feat=lin(ks[6], W_HID, (W_HID, W_HID)),
        b_feat=0.01 * jax.random.normal(ks[7], (1, W_HID), F32),
        w_r0f=lin(ks[8], W_HID + D_DIR, (W_HID, W_RGB)),
        w_r0d=lin(ks[9], W_HID + D_DIR, (D_DIR, W_RGB)),
        b_r0=0.01 * jax.random.normal(ks[10], (1, W_RGB), F32),
        w_r1=lin(ks[11], W_RGB, (W_RGB, 3)),
        b_r1=0.01 * jax.random.normal(ks[12], (1, 3), F32),
    )


def _pack_params(p):
    """Pack natural params into the id/sin/cos-frame slabs the kernel reads.

    Natural embedding row order (per positional_encoding):
      rows 0..2            : identity (xyz / dir)
      rows 3+6k .. 5+6k    : sin(2^k .)
      rows 6+6k .. 8+6k    : cos(2^k .)
    Kernel frame layout: raw lanes [x,y,z,dx,dy,dz,0,0]; sin/cos frame group k
    occupies lanes 8k..8k+7 (pos at +0..2, dir at +3..5).
    """
    def expand_pos(w_nat):          # (32, out) -> id (8,out), sin/cos (32,out)
        out = w_nat.shape[1]
        w_id = jnp.zeros((D_RAW, out), F32).at[0:3].set(w_nat[0:3])
        w_sin = jnp.zeros((D_FREQ, out), F32)
        w_cos = jnp.zeros((D_FREQ, out), F32)
        for k in range(L_POS_FREQ):
            w_sin = w_sin.at[8 * k:8 * k + 3].set(w_nat[3 + 6 * k:6 + 6 * k])
            w_cos = w_cos.at[8 * k:8 * k + 3].set(w_nat[6 + 6 * k:9 + 6 * k])
        return w_id, w_sin, w_cos

    def expand_dir(w_nat):          # (16, out) -> id (8,out), sin/cos (32,out)
        out = w_nat.shape[1]
        w_id = jnp.zeros((D_RAW, out), F32).at[3:6].set(w_nat[0:3])
        w_sin = jnp.zeros((D_FREQ, out), F32)
        w_cos = jnp.zeros((D_FREQ, out), F32)
        for k in range(L_DIR_FREQ):
            w_sin = w_sin.at[8 * k + 3:8 * k + 6].set(w_nat[3 + 6 * k:6 + 6 * k])
            w_cos = w_cos.at[8 * k + 3:8 * k + 6].set(w_nat[6 + 6 * k:9 + 6 * k])
        return w_id, w_sin, w_cos

    in_id, in_sin, in_cos = expand_pos(p["w_in"])
    sk_id, sk_sin, sk_cos = expand_pos(p["w_skip"])
    w0_id = jnp.concatenate([in_id, sk_id], axis=1).astype(BF16)     # (8, 128)
    w0_sin = jnp.concatenate([in_sin, sk_sin], axis=1).astype(BF16)  # (32, 128)
    w0_cos = jnp.concatenate([in_cos, sk_cos], axis=1).astype(BF16)  # (32, 128)

    wd_id, wd_sin, wd_cos = [w.astype(BF16) for w in expand_dir(p["w_r0d"])]

    w_hid = p["w_hid"].astype(BF16)                                  # (7, 64, 64)
    b_trunk = p["b_trunk"].astype(F32)                               # (8, 64)

    w_fs = jnp.pad(jnp.concatenate([p["w_feat"], p["w_sig"]], axis=1),
                   ((0, 0), (0, D_HEAD - (W_HID + 1)))).astype(BF16)  # (64, 128)
    w_r0f = jnp.pad(p["w_r0f"], ((0, D_HEAD - W_HID), (0, 0))).astype(BF16)
    w_r1 = p["w_r1"].astype(BF16)                                    # (32, 3)

    pad_lane = lambda b: jnp.pad(b, ((0, 0), (0, D_HEAD - b.shape[1])))
    b_fs = pad_lane(jnp.concatenate([p["b_feat"], p["b_sig"]], axis=1))
    b_heads = jnp.concatenate(
        [b_fs, pad_lane(p["b_r0"]), pad_lane(p["b_r1"])], axis=0).astype(F32)

    return (w0_id, w0_sin, w0_cos, wd_id, wd_sin, wd_cos,
            w_hid, b_trunk, w_fs, w_r0f, w_r1, b_heads)


def _round_up(n, m):
    return ((n + m - 1) // m) * m


@functools.partial(jax.jit, static_argnames=("tn",))
def vanilla_nerf_pallas(x, params, tn=TN):
    """x: (N, 6) float32 = [xyz, viewdir]; returns (N, 4) = [rgb, sigma]."""
    n = x.shape[0]
    # Row tile: large (amortizes ~0.35us per-step overhead) but capped so the
    # grid keeps >= ~8 steps for big N (feeds both v7x TensorCores and keeps
    # the DMA pipeline deep).  Always a multiple of 128 rows.
    tn = max(128, min(tn, _round_up(-(-n // 8), 128)))
    n_pad = _round_up(n, tn)
    pts = jnp.pad(x.astype(F32), ((0, n_pad - n), (0, D_RAW - x.shape[1])))

    packed = _pack_params(params)
    full = lambda a: pl.BlockSpec(a.shape, lambda i, nd=a.ndim: (0,) * nd)

    out = pl.pallas_call(
        nerf_mlp_kernel,
        out_shape=jax.ShapeDtypeStruct((n_pad, 4), F32),
        grid_spec=pltpu.PrefetchScalarGridSpec(
            num_scalar_prefetch=0,
            grid=(n_pad // tn,),
            in_specs=[pl.BlockSpec((tn, D_RAW), lambda i: (i, 0))]
                     + [full(w) for w in packed],
            out_specs=pl.BlockSpec((tn, 4), lambda i: (i, 0)),
        ),
        compiler_params=pltpu.CompilerParams(
            dimension_semantics=("parallel",),
            vmem_limit_bytes=48 * 1024 * 1024),
    )(pts, *packed)
    return out[:n]


def vanilla_nerf_ref(x, params, mxu_dtype=F32):
    """Pure-JAX reference. mxu_dtype=bfloat16 mirrors the kernel's casts."""
    p = params
    dot = lambda a, b: jnp.dot(a.astype(mxu_dtype), b.astype(mxu_dtype),
                               preferred_element_type=F32)
    pos = positional_encoding(x[:, :3], L_POS_FREQ, D_POS)
    dirs = positional_encoding(x[:, 3:6], L_DIR_FREQ, D_DIR)
    h = jax.nn.relu(dot(pos, p["w_in"]) + p["b_trunk"][0])
    for i in range(1, N_LAYERS):
        z = dot(h, p["w_hid"][i - 1]) + p["b_trunk"][i]
        if i == SKIP:
            z = z + dot(pos, p["w_skip"])
        h = jax.nn.relu(z)
    sigma = dot(h, p["w_sig"]) + p["b_sig"]
    feat = dot(h, p["w_feat"]) + p["b_feat"]
    hr = jax.nn.relu(dot(feat, p["w_r0f"]) + dot(dirs, p["w_r0d"]) + p["b_r0"])
    rgb = jax.nn.sigmoid(dot(hr, p["w_r1"]) + p["b_r1"])
    return jnp.concatenate([rgb, sigma], axis=-1)


class Generator:
    """Mirrors the PyTorch Generator: arch dispatch + identity pre/postproc."""
    _arch_map = {VANILLA_NERF: {"fn": vanilla_nerf_pallas,
                                "preproc": lambda x: (x,),
                                "postproc": lambda y: y}}

    def __init__(self, arch, params):
        if arch not in ARCH_NAMES:
            raise RuntimeError(
                f"Invalid arch={arch!r}. Please select one of {ARCH_NAMES}.")
        entry = Generator._arch_map[arch]
        self.network = functools.partial(entry["fn"], params=params)
        self.preproc = entry["preproc"]
        self.postproc = entry["postproc"]

    def __call__(self, x):
        return self.postproc(self.network(*self.preproc(x)))


# ---------------------------------- main -------------------------------------
if __name__ == "__main__":
    key = jax.random.PRNGKey(0)
    k_param, k_x = jax.random.split(key)
    params = init_params(k_param)

    # 256 sample points: 3 xyz coords + 3 view-direction components each.
    x = jax.random.normal(k_x, (256, 6), F32)

    gen = Generator(VANILLA_NERF, params)
    y = jax.block_until_ready(gen(x))

    # Primary check: reference applying the same bf16-operand / f32-accum casts
    # as the kernel.  Tolerance allows for the kernel computing sin/cos on the
    # Mosaic path (vs XLA in the reference) before the bf16 cast.
    y_bf16_ref = jax.block_until_ready(vanilla_nerf_ref(x, params, BF16))
    np.testing.assert_allclose(np.asarray(y), np.asarray(y_bf16_ref),
                               rtol=1e-2, atol=1e-2)
    # Loose sanity check against the pure-f32 math (bf16 MXU inputs dominate
    # the difference).
    y_f32_ref = jax.block_until_ready(vanilla_nerf_ref(x, params, F32))
    np.testing.assert_allclose(np.asarray(y), np.asarray(y_f32_ref),
                               rtol=0.1, atol=0.1)

    assert y.shape == (256, 4) and y.dtype == F32
    print("KERNEL_OK")
</pallas_src>

<mosaic_0001>
module attributes {stable_mosaic.version = 11 : i64} {
  func.func @nerf_mlp_kernel(%arg0: i32, %arg1: memref<128x8xf32, #tpu.memory_space<vmem>>, %arg2: memref<8x128xbf16, #tpu.memory_space<vmem>>, %arg3: memref<32x128xbf16, #tpu.memory_space<vmem>>, %arg4: memref<32x128xbf16, #tpu.memory_space<vmem>>, %arg5: memref<8x32xbf16, #tpu.memory_space<vmem>>, %arg6: memref<32x32xbf16, #tpu.memory_space<vmem>>, %arg7: memref<32x32xbf16, #tpu.memory_space<vmem>>, %arg8: memref<7x64x64xbf16, #tpu.memory_space<vmem>>, %arg9: memref<8x64xf32, #tpu.memory_space<vmem>>, %arg10: memref<64x128xbf16, #tpu.memory_space<vmem>>, %arg11: memref<128x32xbf16, #tpu.memory_space<vmem>>, %arg12: memref<32x3xbf16, #tpu.memory_space<vmem>>, %arg13: memref<3x128xf32, #tpu.memory_space<vmem>>, %arg14: memref<128x4xf32, #tpu.memory_space<vmem>>) attributes {dimension_semantics = [#tpu.dimension_semantics<parallel>], iteration_bounds = array<i64: 2>, scalar_prefetch = 0 : i64, scratch_operands = 0 : i64, tpu.core_type = #tpu.core_type<tc>, window_params = [{transform_indices = @transform_0, window_bounds = array<i64: 128, 8>}, {pipeline_mode = #tpu.pipeline_mode<synchronous>, transform_indices = @transform_1, window_bounds = array<i64: 8, 128>}, {pipeline_mode = #tpu.pipeline_mode<synchronous>, transform_indices = @transform_2, window_bounds = array<i64: 32, 128>}, {pipeline_mode = #tpu.pipeline_mode<synchronous>, transform_indices = @transform_3, window_bounds = array<i64: 32, 128>}, {pipeline_mode = #tpu.pipeline_mode<synchronous>, transform_indices = @transform_4, window_bounds = array<i64: 8, 32>}, {pipeline_mode = #tpu.pipeline_mode<synchronous>, transform_indices = @transform_5, window_bounds = array<i64: 32, 32>}, {pipeline_mode = #tpu.pipeline_mode<synchronous>, transform_indices = @transform_6, window_bounds = array<i64: 32, 32>}, {pipeline_mode = #tpu.pipeline_mode<synchronous>, transform_indices = @transform_7, window_bounds = array<i64: 7, 64, 64>}, {pipeline_mode = #tpu.pipeline_mode<synchronous>, transform_indices = @transform_8, window_bounds = array<i64: 8, 64>}, {pipeline_mode = #tpu.pipeline_mode<synchronous>, transform_indices = @transform_9, window_bounds = array<i64: 64, 128>}, {pipeline_mode = #tpu.pipeline_mode<synchronous>, transform_indices = @transform_10, window_bounds = array<i64: 128, 32>}, {pipeline_mode = #tpu.pipeline_mode<synchronous>, transform_indices = @transform_11, window_bounds = array<i64: 32, 3>}, {pipeline_mode = #tpu.pipeline_mode<synchronous>, transform_indices = @transform_12, window_bounds = array<i64: 3, 128>}, {transform_indices = @transform_13, window_bounds = array<i64: 128, 4>}]} {
    %c0 = arith.constant 0 : index
    %c0_0 = arith.constant 0 : index
    %0 = vector.load %arg1[%c0, %c0_0] : memref<128x8xf32, #tpu.memory_space<vmem>>, vector<128x8xf32>
    %cst = arith.constant 1.000000e+00 : f32
    %1 = vector.broadcast %cst : f32 to vector<128x8xf32>
    %2 = arith.mulf %0, %1 : vector<128x8xf32>
    %cst_1 = arith.constant 2.000000e+00 : f32
    %3 = vector.broadcast %cst_1 : f32 to vector<128x8xf32>
    %4 = arith.mulf %0, %3 : vector<128x8xf32>
    %cst_2 = arith.constant 4.000000e+00 : f32
    %5 = vector.broadcast %cst_2 : f32 to vector<128x8xf32>
    %6 = arith.mulf %0, %5 : vector<128x8xf32>
    %cst_3 = arith.constant 8.000000e+00 : f32
    %7 = vector.broadcast %cst_3 : f32 to vector<128x8xf32>
    %8 = arith.mulf %0, %7 : vector<128x8xf32>
    %9 = tpu.concatenate %2, %4, %6, %8 in 1 : vector<128x8xf32>, vector<128x8xf32>, vector<128x8xf32>, vector<128x8xf32> -> vector<128x32xf32>
    %10 = math.sin %9 : vector<128x32xf32>
    %11 = math.cos %9 : vector<128x32xf32>
    %12 = arith.truncf %0 : vector<128x8xf32> to vector<128x8xbf16>
    %13 = arith.truncf %10 : vector<128x32xf32> to vector<128x32xbf16>
    %14 = arith.truncf %11 : vector<128x32xf32> to vector<128x32xbf16>
    %c0_4 = arith.constant 0 : index
    %c0_5 = arith.constant 0 : index
    %15 = vector.load %arg9[%c0_4, %c0_5] : memref<8x64xf32, #tpu.memory_space<vmem>>, vector<8x64xf32>
    %c0_6 = arith.constant 0 : index
    %c0_7 = arith.constant 0 : index
    %16 = vector.load %arg13[%c0_6, %c0_7] : memref<3x128xf32, #tpu.memory_space<vmem>>, vector<3x128xf32>
    %c0_8 = arith.constant 0 : index
    %c0_9 = arith.constant 0 : index
    %17 = vector.load %arg2[%c0_8, %c0_9] : memref<8x128xbf16, #tpu.memory_space<vmem>>, vector<8x128xbf16>
    %cst_10 = arith.constant dense<0.000000e+00> : vector<128x128xf32>
    %18 = tpu.matmul %12, %17, %cst_10 {dimension_numbers = #tpu.dot_dimension_numbers<[1], [0], [0], [1], [0, 0, 1, 1], [], []>} : vector<128x8xbf16>, vector<8x128xbf16>, vector<128x128xf32> -> vector<128x128xf32>
    %c0_11 = arith.constant 0 : index
    %c0_12 = arith.constant 0 : index
    %19 = vector.load %arg3[%c0_11, %c0_12] : memref<32x128xbf16, #tpu.memory_space<vmem>>, vector<32x128xbf16>
    %cst_13 = arith.constant dense<0.000000e+00> : vector<128x128xf32>
    %20 = tpu.matmul %13, %19, %cst_13 {dimension_numbers = #tpu.dot_dimension_numbers<[1], [0], [0], [1], [0, 0, 1, 1], [], []>} : vector<128x32xbf16>, vector<32x128xbf16>, vector<128x128xf32> -> vector<128x128xf32>
    %21 = arith.addf %18, %20 : vector<128x128xf32>
    %c0_14 = arith.constant 0 : index
    %c0_15 = arith.constant 0 : index
    %22 = vector.load %arg4[%c0_14, %c0_15] : memref<32x128xbf16, #tpu.memory_space<vmem>>, vector<32x128xbf16>
    %cst_16 = arith.constant dense<0.000000e+00> : vector<128x128xf32>
    %23 = tpu.matmul %14, %22, %cst_16 {dimension_numbers = #tpu.dot_dimension_numbers<[1], [0], [0], [1], [0, 0, 1, 1], [], []>} : vector<128x32xbf16>, vector<32x128xbf16>, vector<128x128xf32> -> vector<128x128xf32>
    %24 = arith.addf %21, %23 : vector<128x128xf32>
    %25 = vector.extract_strided_slice %24 {offsets = [0, 64], sizes = [128, 64], strides = [1, 1]} : vector<128x128xf32> to vector<128x64xf32>
    %26 = vector.extract_strided_slice %24 {offsets = [0, 0], sizes = [128, 64], strides = [1, 1]} : vector<128x128xf32> to vector<128x64xf32>
    %27 = vector.extract_strided_slice %15 {offsets = [0, 0], sizes = [1, 64], strides = [1, 1]} : vector<8x64xf32> to vector<1x64xf32>
    %28 = vector.broadcast %27 : vector<1x64xf32> to vector<128x64xf32>
    %29 = arith.addf %26, %28 : vector<128x64xf32>
    %cst_17 = arith.constant 0.000000e+00 : f32
    %30 = vector.broadcast %cst_17 : f32 to vector<128x64xf32>
    %31 = arith.maximumf %29, %30 : vector<128x64xf32>
    %32 = arith.truncf %31 : vector<128x64xf32> to vector<128x64xbf16>
    %c0_18 = arith.constant 0 : index
    %c0_19 = arith.constant 0 : index
    %33 = vector.load %arg5[%c0_18, %c0_19] : memref<8x32xbf16, #tpu.memory_space<vmem>>, vector<8x32xbf16>
    %cst_20 = arith.constant dense<0.000000e+00> : vector<128x32xf32>
    %34 = tpu.matmul %12, %33, %cst_20 {dimension_numbers = #tpu.dot_dimension_numbers<[1], [0], [0], [1], [0, 0, 1, 1], [], []>} : vector<128x8xbf16>, vector<8x32xbf16>, vector<128x32xf32> -> vector<128x32xf32>
    %c0_21 = arith.constant 0 : index
    %c0_22 = arith.constant 0 : index
    %35 = vector.load %arg6[%c0_21, %c0_22] : memref<32x32xbf16, #tpu.memory_space<vmem>>, vector<32x32xbf16>
    %cst_23 = arith.constant dense<0.000000e+00> : vector<128x32xf32>
    %36 = tpu.matmul %13, %35, %cst_23 {dimension_numbers = #tpu.dot_dimension_numbers<[1], [0], [0], [1], [0, 0, 1, 1], [], []>} : vector<128x32xbf16>, vector<32x32xbf16>, vector<128x32xf32> -> vector<128x32xf32>
    %37 = arith.addf %34, %36 : vector<128x32xf32>
    %c0_24 = arith.constant 0 : index
    %c0_25 = arith.constant 0 : index
    %38 = vector.load %arg7[%c0_24, %c0_25] : memref<32x32xbf16, #tpu.memory_space<vmem>>, vector<32x32xbf16>
    %cst_26 = arith.constant dense<0.000000e+00> : vector<128x32xf32>
    %39 = tpu.matmul %14, %38, %cst_26 {dimension_numbers = #tpu.dot_dimension_numbers<[1], [0], [0], [1], [0, 0, 1, 1], [], []>} : vector<128x32xbf16>, vector<32x32xbf16>, vector<128x32xf32> -> vector<128x32xf32>
    %40 = arith.addf %37, %39 : vector<128x32xf32>
    %c0_27 = arith.constant 0 : index
    %c0_28 = arith.constant 0 : index
    %c0_29 = arith.constant 0 : index
    %41 = vector.load %arg8[%c0_27, %c0_28, %c0_29] : memref<7x64x64xbf16, #tpu.memory_space<vmem>>, vector<1x64x64xbf16>
    %42 = vector.shape_cast %41 : vector<1x64x64xbf16> to vector<64x64xbf16>
    %cst_30 = arith.constant dense<0.000000e+00> : vector<128x64xf32>
    %43 = tpu.matmul %32, %42, %cst_30 {dimension_numbers = #tpu.dot_dimension_numbers<[1], [0], [0], [1], [0, 0, 1, 1], [], []>} : vector<128x64xbf16>, vector<64x64xbf16>, vector<128x64xf32> -> vector<128x64xf32>
    %44 = vector.extract_strided_slice %15 {offsets = [1, 0], sizes = [1, 64], strides = [1, 1]} : vector<8x64xf32> to vector<1x64xf32>
    %45 = vector.broadcast %44 : vector<1x64xf32> to vector<128x64xf32>
    %46 = arith.addf %43, %45 : vector<128x64xf32>
    %cst_31 = arith.constant 0.000000e+00 : f32
    %47 = vector.broadcast %cst_31 : f32 to vector<128x64xf32>
    %48 = arith.maximumf %46, %47 : vector<128x64xf32>
    %49 = arith.truncf %48 : vector<128x64xf32> to vector<128x64xbf16>
    %c1 = arith.constant 1 : index
    %c0_32 = arith.constant 0 : index
    %c0_33 = arith.constant 0 : index
    %50 = vector.load %arg8[%c1, %c0_32, %c0_33] : memref<7x64x64xbf16, #tpu.memory_space<vmem>>, vector<1x64x64xbf16>
    %51 = vector.shape_cast %50 : vector<1x64x64xbf16> to vector<64x64xbf16>
    %cst_34 = arith.constant dense<0.000000e+00> : vector<128x64xf32>
    %52 = tpu.matmul %49, %51, %cst_34 {dimension_numbers = #tpu.dot_dimension_numbers<[1], [0], [0], [1], [0, 0, 1, 1], [], []>} : vector<128x64xbf16>, vector<64x64xbf16>, vector<128x64xf32> -> vector<128x64xf32>
    %53 = vector.extract_strided_slice %15 {offsets = [2, 0], sizes = [1, 64], strides = [1, 1]} : vector<8x64xf32> to vector<1x64xf32>
    %54 = vector.broadcast %53 : vector<1x64xf32> to vector<128x64xf32>
    %55 = arith.addf %52, %54 : vector<128x64xf32>
    %cst_35 = arith.constant 0.000000e+00 : f32
    %56 = vector.broadcast %cst_35 : f32 to vector<128x64xf32>
    %57 = arith.maximumf %55, %56 : vector<128x64xf32>
    %58 = arith.truncf %57 : vector<128x64xf32> to vector<128x64xbf16>
    %c2 = arith.constant 2 : index
    %c0_36 = arith.constant 0 : index
    %c0_37 = arith.constant 0 : index
    %59 = vector.load %arg8[%c2, %c0_36, %c0_37] : memref<7x64x64xbf16, #tpu.memory_space<vmem>>, vector<1x64x64xbf16>
    %60 = vector.shape_cast %59 : vector<1x64x64xbf16> to vector<64x64xbf16>
    %cst_38 = arith.constant dense<0.000000e+00> : vector<128x64xf32>
    %61 = tpu.matmul %58, %60, %cst_38 {dimension_numbers = #tpu.dot_dimension_numbers<[1], [0], [0], [1], [0, 0, 1, 1], [], []>} : vector<128x64xbf16>, vector<64x64xbf16>, vector<128x64xf32> -> vector<128x64xf32>
    %62 = vector.extract_strided_slice %15 {offsets = [3, 0], sizes = [1, 64], strides = [1, 1]} : vector<8x64xf32> to vector<1x64xf32>
    %63 = vector.broadcast %62 : vector<1x64xf32> to vector<128x64xf32>
    %64 = arith.addf %61, %63 : vector<128x64xf32>
    %cst_39 = arith.constant 0.000000e+00 : f32
    %65 = vector.broadcast %cst_39 : f32 to vector<128x64xf32>
    %66 = arith.maximumf %64, %65 : vector<128x64xf32>
    %67 = arith.truncf %66 : vector<128x64xf32> to vector<128x64xbf16>
    %c3 = arith.constant 3 : index
    %c0_40 = arith.constant 0 : index
    %c0_41 = arith.constant 0 : index
    %68 = vector.load %arg8[%c3, %c0_40, %c0_41] : memref<7x64x64xbf16, #tpu.memory_space<vmem>>, vector<1x64x64xbf16>
    %69 = vector.shape_cast %68 : vector<1x64x64xbf16> to vector<64x64xbf16>
    %cst_42 = arith.constant dense<0.000000e+00> : vector<128x64xf32>
    %70 = tpu.matmul %67, %69, %cst_42 {dimension_numbers = #tpu.dot_dimension_numbers<[1], [0], [0], [1], [0, 0, 1, 1], [], []>} : vector<128x64xbf16>, vector<64x64xbf16>, vector<128x64xf32> -> vector<128x64xf32>
    %71 = vector.extract_strided_slice %15 {offsets = [4, 0], sizes = [1, 64], strides = [1, 1]} : vector<8x64xf32> to vector<1x64xf32>
    %72 = vector.broadcast %71 : vector<1x64xf32> to vector<128x64xf32>
    %73 = arith.addf %70, %72 : vector<128x64xf32>
    %74 = arith.addf %73, %25 : vector<128x64xf32>
    %cst_43 = arith.constant 0.000000e+00 : f32
    %75 = vector.broadcast %cst_43 : f32 to vector<128x64xf32>
    %76 = arith.maximumf %74, %75 : vector<128x64xf32>
    %77 = arith.truncf %76 : vector<128x64xf32> to vector<128x64xbf16>
    %c4 = arith.constant 4 : index
    %c0_44 = arith.constant 0 : index
    %c0_45 = arith.constant 0 : index
    %78 = vector.load %arg8[%c4, %c0_44, %c0_45] : memref<7x64x64xbf16, #tpu.memory_space<vmem>>, vector<1x64x64xbf16>
    %79 = vector.shape_cast %78 : vector<1x64x64xbf16> to vector<64x64xbf16>
    %cst_46 = arith.constant dense<0.000000e+00> : vector<128x64xf32>
    %80 = tpu.matmul %77, %79, %cst_46 {dimension_numbers = #tpu.dot_dimension_numbers<[1], [0], [0], [1], [0, 0, 1, 1], [], []>} : vector<128x64xbf16>, vector<64x64xbf16>, vector<128x64xf32> -> vector<128x64xf32>
    %81 = vector.extract_strided_slice %15 {offsets = [5, 0], sizes = [1, 64], strides = [1, 1]} : vector<8x64xf32> to vector<1x64xf32>
    %82 = vector.broadcast %81 : vector<1x64xf32> to vector<128x64xf32>
    %83 = arith.addf %80, %82 : vector<128x64xf32>
    %cst_47 = arith.constant 0.000000e+00 : f32
    %84 = vector.broadcast %cst_47 : f32 to vector<128x64xf32>
    %85 = arith.maximumf %83, %84 : vector<128x64xf32>
    %86 = arith.truncf %85 : vector<128x64xf32> to vector<128x64xbf16>
    %c5 = arith.constant 5 : index
    %c0_48 = arith.constant 0 : index
    %c0_49 = arith.constant 0 : index
    %87 = vector.load %arg8[%c5, %c0_48, %c0_49] : memref<7x64x64xbf16, #tpu.memory_space<vmem>>, vector<1x64x64xbf16>
    %88 = vector.shape_cast %87 : vector<1x64x64xbf16> to vector<64x64xbf16>
    %cst_50 = arith.constant dense<0.000000e+00> : vector<128x64xf32>
    %89 = tpu.matmul %86, %88, %cst_50 {dimension_numbers = #tpu.dot_dimension_numbers<[1], [0], [0], [1], [0, 0, 1, 1], [], []>} : vector<128x64xbf16>, vector<64x64xbf16>, vector<128x64xf32> -> vector<128x64xf32>
    %90 = vector.extract_strided_slice %15 {offsets = [6, 0], sizes = [1, 64], strides = [1, 1]} : vector<8x64xf32> to vector<1x64xf32>
    %91 = vector.broadcast %90 : vector<1x64xf32> to vector<128x64xf32>
    %92 = arith.addf %89, %91 : vector<128x64xf32>
    %cst_51 = arith.constant 0.000000e+00 : f32
    %93 = vector.broadcast %cst_51 : f32 to vector<128x64xf32>
    %94 = arith.maximumf %92, %93 : vector<128x64xf32>
    %95 = arith.truncf %94 : vector<128x64xf32> to vector<128x64xbf16>
    %c6 = arith.constant 6 : index
    %c0_52 = arith.constant 0 : index
    %c0_53 = arith.constant 0 : index
    %96 = vector.load %arg8[%c6, %c0_52, %c0_53] : memref<7x64x64xbf16, #tpu.memory_space<vmem>>, vector<1x64x64xbf16>
    %97 = vector.shape_cast %96 : vector<1x64x64xbf16> to vector<64x64xbf16>
    %cst_54 = arith.constant dense<0.000000e+00> : vector<128x64xf32>
    %98 = tpu.matmul %95, %97, %cst_54 {dimension_numbers = #tpu.dot_dimension_numbers<[1], [0], [0], [1], [0, 0, 1, 1], [], []>} : vector<128x64xbf16>, vector<64x64xbf16>, vector<128x64xf32> -> vector<128x64xf32>
    %99 = vector.extract_strided_slice %15 {offsets = [7, 0], sizes = [1, 64], strides = [1, 1]} : vector<8x64xf32> to vector<1x64xf32>
    %100 = vector.broadcast %99 : vector<1x64xf32> to vector<128x64xf32>
    %101 = arith.addf %98, %100 : vector<128x64xf32>
    %cst_55 = arith.constant 0.000000e+00 : f32
    %102 = vector.broadcast %cst_55 : f32 to vector<128x64xf32>
    %103 = arith.maximumf %101, %102 : vector<128x64xf32>
    %104 = arith.truncf %103 : vector<128x64xf32> to vector<128x64xbf16>
    %c0_56 = arith.constant 0 : index
    %c0_57 = arith.constant 0 : index
    %105 = vector.load %arg10[%c0_56, %c0_57] : memref<64x128xbf16, #tpu.memory_space<vmem>>, vector<64x128xbf16>
    %cst_58 = arith.constant dense<0.000000e+00> : vector<128x128xf32>
    %106 = tpu.matmul %104, %105, %cst_58 {dimension_numbers = #tpu.dot_dimension_numbers<[1], [0], [0], [1], [0, 0, 1, 1], [], []>} : vector<128x64xbf16>, vector<64x128xbf16>, vector<128x128xf32> -> vector<128x128xf32>
    %107 = vector.extract_strided_slice %16 {offsets = [0, 0], sizes = [1, 128], strides = [1, 1]} : vector<3x128xf32> to vector<1x128xf32>
    %108 = vector.broadcast %107 : vector<1x128xf32> to vector<128x128xf32>
    %109 = arith.addf %106, %108 : vector<128x128xf32>
    %110 = vector.extract_strided_slice %109 {offsets = [0, 64], sizes = [128, 1], strides = [1, 1]} : vector<128x128xf32> to vector<128x1xf32>
    %111 = arith.truncf %109 : vector<128x128xf32> to vector<128x128xbf16>
    %c0_59 = arith.constant 0 : index
    %c0_60 = arith.constant 0 : index
    %112 = vector.load %arg11[%c0_59, %c0_60] : memref<128x32xbf16, #tpu.memory_space<vmem>>, vector<128x32xbf16>
    %cst_61 = arith.constant dense<0.000000e+00> : vector<128x32xf32>
    %113 = tpu.matmul %111, %112, %cst_61 {dimension_numbers = #tpu.dot_dimension_numbers<[1], [0], [0], [1], [0, 0, 1, 1], [], []>} : vector<128x128xbf16>, vector<128x32xbf16>, vector<128x32xf32> -> vector<128x32xf32>
    %114 = arith.addf %113, %40 : vector<128x32xf32>
    %115 = vector.extract_strided_slice %16 {offsets = [1, 0], sizes = [1, 32], strides = [1, 1]} : vector<3x128xf32> to vector<1x32xf32>
    %116 = vector.broadcast %115 : vector<1x32xf32> to vector<128x32xf32>
    %117 = arith.addf %114, %116 : vector<128x32xf32>
    %cst_62 = arith.constant 0.000000e+00 : f32
    %118 = vector.broadcast %cst_62 : f32 to vector<128x32xf32>
    %119 = arith.maximumf %117, %118 : vector<128x32xf32>
    %120 = arith.truncf %119 : vector<128x32xf32> to vector<128x32xbf16>
    %c0_63 = arith.constant 0 : index
    %c0_64 = arith.constant 0 : index
    %121 = vector.load %arg12[%c0_63, %c0_64] : memref<32x3xbf16, #tpu.memory_space<vmem>>, vector<32x3xbf16>
    %cst_65 = arith.constant dense<0.000000e+00> : vector<128x3xf32>
    %122 = tpu.matmul %120, %121, %cst_65 {dimension_numbers = #tpu.dot_dimension_numbers<[1], [0], [0], [1], [0, 0, 1, 1], [], []>} : vector<128x32xbf16>, vector<32x3xbf16>, vector<128x3xf32> -> vector<128x3xf32>
    %123 = vector.extract_strided_slice %16 {offsets = [2, 0], sizes = [1, 3], strides = [1, 1]} : vector<3x128xf32> to vector<1x3xf32>
    %124 = vector.broadcast %123 : vector<1x3xf32> to vector<128x3xf32>
    %125 = arith.addf %122, %124 : vector<128x3xf32>
    %126 = arith.negf %125 : vector<128x3xf32>
    %127 = math.exp %126 : vector<128x3xf32>
    %cst_66 = arith.constant 1.000000e+00 : f32
    %128 = vector.broadcast %cst_66 : f32 to vector<128x3xf32>
    %129 = arith.addf %128, %127 : vector<128x3xf32>
    %130 = arith.divf %128, %129 : vector<128x3xf32>
    %c0_67 = arith.constant 0 : index
    %c0_68 = arith.constant 0 : index
    %131 = vector.load %arg14[%c0_67, %c0_68] : memref<128x4xf32, #tpu.memory_space<vmem>>, vector<128x3xf32>
    tpu.vector_store %arg14[%c0_67, %c0_68], %130 {strides = array<i32>} : memref<128x4xf32, #tpu.memory_space<vmem>>, vector<128x3xf32>,
    %c0_69 = arith.constant 0 : index
    %c3_70 = arith.constant 3 : index
    %132 = vector.load %arg14[%c0_69, %c3_70] : memref<128x4xf32, #tpu.memory_space<vmem>>, vector<128x1xf32>
    tpu.vector_store %arg14[%c0_69, %c3_70], %110 {strides = array<i32>} : memref<128x4xf32, #tpu.memory_space<vmem>>, vector<128x1xf32>,
    return
  }
  func.func @transform_0(%arg0: i32) -> (i32, i32) {
    %c0_i32 = arith.constant 0 : i32
    %c0_i32_0 = arith.constant 0 : i32
    return %arg0, %c0_i32 : i32, i32
  }
  func.func @transform_1(%arg0: i32) -> (i32, i32) {
    %c0_i32 = arith.constant 0 : i32
    %c0_i32_0 = arith.constant 0 : i32
    %c0_i32_1 = arith.constant 0 : i32
    return %c0_i32, %c0_i32_0 : i32, i32
  }
  func.func @transform_2(%arg0: i32) -> (i32, i32) {
    %c0_i32 = arith.constant 0 : i32
    %c0_i32_0 = arith.constant 0 : i32
    %c0_i32_1 = arith.constant 0 : i32
    return %c0_i32, %c0_i32_0 : i32, i32
  }
  func.func @transform_3(%arg0: i32) -> (i32, i32) {
    %c0_i32 = arith.constant 0 : i32
    %c0_i32_0 = arith.constant 0 : i32
    %c0_i32_1 = arith.constant 0 : i32
    return %c0_i32, %c0_i32_0 : i32, i32
  }
  func.func @transform_4(%arg0: i32) -> (i32, i32) {
    %c0_i32 = arith.constant 0 : i32
    %c0_i32_0 = arith.constant 0 : i32
    %c0_i32_1 = arith.constant 0 : i32
    return %c0_i32, %c0_i32_0 : i32, i32
  }
  func.func @transform_5(%arg0: i32) -> (i32, i32) {
    %c0_i32 = arith.constant 0 : i32
    %c0_i32_0 = arith.constant 0 : i32
    %c0_i32_1 = arith.constant 0 : i32
    return %c0_i32, %c0_i32_0 : i32, i32
  }
  func.func @transform_6(%arg0: i32) -> (i32, i32) {
    %c0_i32 = arith.constant 0 : i32
    %c0_i32_0 = arith.constant 0 : i32
    %c0_i32_1 = arith.constant 0 : i32
    return %c0_i32, %c0_i32_0 : i32, i32
  }
  func.func @transform_7(%arg0: i32) -> (i32, i32, i32) {
    %c0_i32 = arith.constant 0 : i32
    %c0_i32_0 = arith.constant 0 : i32
    %c0_i32_1 = arith.constant 0 : i32
    %c0_i32_2 = arith.constant 0 : i32
    return %c0_i32, %c0_i32_0, %c0_i32_1 : i32, i32, i32
  }
  func.func @transform_8(%arg0: i32) -> (i32, i32) {
    %c0_i32 = arith.constant 0 : i32
    %c0_i32_0 = arith.constant 0 : i32
    %c0_i32_1 = arith.constant 0 : i32
    return %c0_i32, %c0_i32_0 : i32, i32
  }
  func.func @transform_9(%arg0: i32) -> (i32, i32) {
    %c0_i32 = arith.constant 0 : i32
    %c0_i32_0 = arith.constant 0 : i32
    %c0_i32_1 = arith.constant 0 : i32
    return %c0_i32, %c0_i32_0 : i32, i32
  }
  func.func @transform_10(%arg0: i32) -> (i32, i32) {
    %c0_i32 = arith.constant 0 : i32
    %c0_i32_0 = arith.constant 0 : i32
    %c0_i32_1 = arith.constant 0 : i32
    return %c0_i32, %c0_i32_0 : i32, i32
  }
  func.func @transform_11(%arg0: i32) -> (i32, i32) {
    %c0_i32 = arith.constant 0 : i32
    %c0_i32_0 = arith.constant 0 : i32
    %c0_i32_1 = arith.constant 0 : i32
    return %c0_i32, %c0_i32_0 : i32, i32
  }
  func.func @transform_12(%arg0: i32) -> (i32, i32) {
    %c0_i32 = arith.constant 0 : i32
    %c0_i32_0 = arith.constant 0 : i32
    %c0_i32_1 = arith.constant 0 : i32
    return %c0_i32, %c0_i32_0 : i32, i32
  }
  func.func @transform_13(%arg0: i32) -> (i32, i32) {
    %c0_i32 = arith.constant 0 : i32
    %c0_i32_0 = arith.constant 0 : i32
    return %arg0, %c0_i32 : i32, i32
  }
}

</mosaic_0001>

<bundles_post_ra>
// kernel: vanilla_nerf_pallas.1
= control target key start
LH: loop header
LB: loop body
LE: loop exit
PB: predicated region body
PF: predicated region fallthrough
CT: control target
= control target key end

     0   :  { %s8292_s25 = smov 0   ;;  %s11013_s0 = inlined_call_operand.vmem [shape: f32[256,8], index: 0, kind: input, shape index: {}]   ;;  %s11014_s1 = inlined_call_operand.vmem [shape: bf16[8,128], index: 1, kind: input, shape index: {}]   ;;  %s11015_s2 = inlined_call_operand.vmem [shape: bf16[32,128], index: 2, kind: input, shape index: {}]   ;;  %s11016_s3 = inlined_call_operand.vmem [shape: bf16[32,128], index: 3, kind: input, shape index: {}]   ;;  %s11017_s4 = inlined_call_operand.vmem [shape: bf16[8,32], index: 4, kind: input, shape index: {}]   ;;  %s11018_s5 = inlined_call_operand.vmem [shape: bf16[32,32], index: 5, kind: input, shape index: {}]   ;;  %s11019_s6 = inlined_call_operand.vmem [shape: bf16[32,32], index: 6, kind: input, shape index: {}]   ;;  %s11020_s7 = inlined_call_operand.vmem [shape: bf16[7,64,64], index: 7, kind: input, shape index: {}]   ;;  %s11021_s8 = inlined_call_operand.vmem [shape: f32[8,64], index: 8, kind: input, shape index: {}]   ;;  %s11022_s9 = inlined_call_operand.vmem [shape: bf16[64,128], index: 9, kind: input, shape index: {}]   ;;  %s11023_s10 = inlined_call_operand.vmem [shape: bf16[128,32], index: 10, kind: input, shape index: {}]   ;;  %s11024_s11 = inlined_call_operand.vmem [shape: bf16[32,3], index: 11, kind: input, shape index: {}]   ;;  %s11025_s12 = inlined_call_operand.vmem [shape: f32[3,128], index: 12, kind: input, shape index: {}]   ;;  %s11026_s13 = inlined_call_operand.vmem [shape: f32[256,4], index: 13, kind: output, shape index: {}]  }
   0x1 LB: > { %s7009_s26 = sadd.s32 4294967295, %s8209_s25   ;;  %p7013_p0 = scmp.ge.s32.totalorder %s8209_s25, 1  ;;  %s8209_s25 = sphi %s8292_s25, %s23_s25  }
   0x2   : > { %p388_p1 = scmp.lt.s32.totalorder %s8209_s25, 3 }
   0x4   : > { %p389_p2 = pnand %p7013_p0, %p388_p1 }
   0x6   : > { %392 = sbr.rel (%p389_p2) target bundleno = 2906 (0xb5a), region = 72 }
   0xb   : > { %s7014_s27 = sshll.u32 %s7009_s26, 4  ;;  %s8211_s15 = smov 8   ;;  %vm11108_vm0 = vcmask 64512   ;;  %vm718_vm1 = vcmask 130048   ;;  %vm735_vm2 = vcmask 195584  }
   0xc   : > { %p433_p3 = scmp.lt.s32.totalorder %s7014_s27, 31  ;;  %s8212_s16 = smov 16  }
   0xd   : > { %s8213_s17 = smov 24   ;;  %s8220_s22 = smov 64  }
   0xe   : > { %s11274_s27 = smov (!%p433_p3, %s7014_s27), 31 }
   0xf   : > { %s7015_s28 = sshll.u32 %s11274_s27, 3 }
  0x10   : > { %s8308_s14 = scalar_lea.vmem %s11013_s0, %s7015_s28 }
  0x11   : > { %v8311_v0 = vld [vmem:[%s8308_s14 + $0x10] sm:$0xff]  ;;  %v8314_v1 = vld [vmem:[%s8308_s14] sm:$0xff]  ;;  %v8317_v2 = vld [vmem:[%s8308_s14 + $0x18] sm:$0xff] }
  0x12   : > { %v463_v3 = vmul.f32 2.0, %v8311_v0  ;;  %v461_v4 = vmul.f32 2.0, %v8314_v1  ;;  %v8322_v5 = vld [vmem:[%s8308_s14 + $0x8] sm:$0xff]  ;;  %v464_v6 = vmul.f32 2.0, %v8317_v2  ;;  %v477_v9 = vmul.f32 4.0, %v8314_v1  ;;  %v8344_v15 = vld [vmem:[%s8308_s14 + $0x20] sm:$0xff] }
  0x13   : > { %v462_v7 = vmul.f32 2.0, %v8322_v5  ;;  %v478_v8 = vmul.f32 4.0, %v8322_v5  ;;  %v480_v10 = vmul.f32 4.0, %v8317_v2  ;;  %v479_v11 = vmul.f32 4.0, %v8311_v0  ;;  %v8341_v14 = vld [vmem:[%s8308_s14 + $0x28] sm:$0xff]  ;;  %v8351_v18 = vld [vmem:[%s8308_s14 + $0x38] sm:$0xff] }
  0x14   : > { %529 = vrot.lane.b32.xlu1 %v463_v3, %s8211_s15  ;;  %525 = vrot.lane.b32.xlu0 %v461_v4, %s8211_s15  ;;  %v494_v12 = vmul.f32 8.0, %v8322_v5  ;;  %v493_v13 = vmul.f32 8.0, %v8314_v1  ;;  %v496_v16 = vmul.f32 8.0, %v8317_v2  ;;  %v495_v17 = vmul.f32 8.0, %v8311_v0  ;;  %v8354_v19 = vld [vmem:[%s8308_s14 + $0x30] sm:$0xff]  ;;  %v454_v30 = vld [vmem:[%s8308_s14 + $0x48] sm:$0xff] }
  0x15   : > { %v466_v20 = vmul.f32 2.0, %v8341_v14  ;;  %v465_v21 = vmul.f32 2.0, %v8344_v15  ;;  %v468_v22 = vmul.f32 2.0, %v8351_v18  ;;  %v467_v23 = vmul.f32 2.0, %v8354_v19  ;;  %v453_v33 = vld [vmem:[%s8308_s14 + $0x40] sm:$0xff]  ;;  %v456_v36 = vld [vmem:[%s8308_s14 + $0x58] sm:$0xff] }
  0x16   : > { %v482_v24 = vmul.f32 4.0, %v8341_v14  ;;  %v481_v25 = vmul.f32 4.0, %v8344_v15  ;;  %v484_v26 = vmul.f32 4.0, %v8351_v18  ;;  %v483_v27 = vmul.f32 4.0, %v8354_v19  ;;  %v455_v37 = vld [vmem:[%s8308_s14 + $0x50] sm:$0xff]  ;;  %v458_v48 = vld [vmem:[%s8308_s14 + $0x68] sm:$0xff] }
  0x17   : > { %v498_v28 = vmul.f32 8.0, %v8341_v14  ;;  %v497_v29 = vmul.f32 8.0, %v8344_v15  ;;  %v500_v31 = vmul.f32 8.0, %v8351_v18  ;;  %v499_v32 = vmul.f32 8.0, %v8354_v19  ;;  %v457_v49 = vld [vmem:[%s8308_s14 + $0x60] sm:$0xff]  ;;  %v460_v52 = vld [vmem:[%s8308_s14 + $0x78] sm:$0xff] }
  0x18   : > { %531 = vrot.lane.b32.xlu1 %v464_v6, %s8211_s15  ;;  %527 = vrot.lane.b32.xlu0 %v462_v7, %s8211_s15  ;;  %v470_v34 = vmul.f32 2.0, %v454_v30  ;;  %v469_v35 = vmul.f32 2.0, %v453_v33  ;;  %v472_v38 = vmul.f32 2.0, %v456_v36  ;;  %v471_v39 = vmul.f32 2.0, %v455_v37  ;;  %v459_v53 = vld [vmem:[%s8308_s14 + $0x70] sm:$0xff] }
  0x19   : > { %v486_v40 = vmul.f32 4.0, %v454_v30  ;;  %v485_v41 = vmul.f32 4.0, %v453_v33  ;;  %v488_v42 = vmul.f32 4.0, %v456_v36  ;;  %v487_v43 = vmul.f32 4.0, %v455_v37 }
  0x1a   : > { %v502_v44 = vmul.f32 8.0, %v454_v30  ;;  %v501_v45 = vmul.f32 8.0, %v453_v33  ;;  %v504_v46 = vmul.f32 8.0, %v456_v36  ;;  %v503_v47 = vmul.f32 8.0, %v455_v37 }
  0x1b   : > { %v474_v50 = vmul.f32 2.0, %v458_v48  ;;  %v473_v51 = vmul.f32 2.0, %v457_v49  ;;  %v476_v54 = vmul.f32 2.0, %v460_v52  ;;  %v475_v55 = vmul.f32 2.0, %v459_v53 }
  0x1c   : > { %591 = vrot.lane.b32.xlu1 %v478_v8, %s8212_s16  ;;  %589 = vrot.lane.b32.xlu0 %v477_v9, %s8212_s16  ;;  %v490_v56 = vmul.f32 4.0, %v458_v48  ;;  %v489_v57 = vmul.f32 4.0, %v457_v49  ;;  %v492_v58 = vmul.f32 4.0, %v460_v52  ;;  %v491_v59 = vmul.f32 4.0, %v459_v53 }
  0x1d   : > { %v506_v60 = vmul.f32 8.0, %v458_v48  ;;  %v505_v61 = vmul.f32 8.0, %v457_v49  ;;  %v508_v62 = vmul.f32 8.0, %v460_v52  ;;  %v507_v63 = vmul.f32 8.0, %v459_v53 }
  0x20   : > { %595 = vrot.lane.b32.xlu1 %v480_v10, %s8212_s16  ;;  %593 = vrot.lane.b32.xlu0 %v479_v11, %s8212_s16 }
  0x24   : > { %655 = vrot.lane.b32.xlu1 %v494_v12, %s8213_s17  ;;  %653 = vrot.lane.b32.xlu0 %v493_v13, %s8213_s17 }
  0x28   : > { %659 = vrot.lane.b32.xlu1 %v496_v16, %s8213_s17  ;;  %657 = vrot.lane.b32.xlu0 %v495_v17, %s8213_s17 }
  0x2c   : > { %535 = vrot.lane.b32.xlu1 %v466_v20, %s8211_s15  ;;  %533 = vrot.lane.b32.xlu0 %v465_v21, %s8211_s15 }
  0x30   : > { %539 = vrot.lane.b32.xlu1 %v468_v22, %s8211_s15  ;;  %537 = vrot.lane.b32.xlu0 %v467_v23, %s8211_s15 }
  0x34   : > { %599 = vrot.lane.b32.xlu1 %v482_v24, %s8212_s16  ;;  %597 = vrot.lane.b32.xlu0 %v481_v25, %s8212_s16 }
  0x38   : > { %603 = vrot.lane.b32.xlu1 %v484_v26, %s8212_s16  ;;  %601 = vrot.lane.b32.xlu0 %v483_v27, %s8212_s16 }
  0x3c   : > { %663 = vrot.lane.b32.xlu1 %v498_v28, %s8213_s17  ;;  %661 = vrot.lane.b32.xlu0 %v497_v29, %s8213_s17 }
  0x40   : > { %667 = vrot.lane.b32.xlu1 %v500_v31, %s8213_s17  ;;  %665 = vrot.lane.b32.xlu0 %v499_v32, %s8213_s17 }
  0x44   : > { %543 = vrot.lane.b32.xlu1 %v470_v34, %s8211_s15  ;;  %541 = vrot.lane.b32.xlu0 %v469_v35, %s8211_s15 }
  0x48   : > { %547 = vrot.lane.b32.xlu1 %v472_v38, %s8211_s15  ;;  %545 = vrot.lane.b32.xlu0 %v471_v39, %s8211_s15 }
  0x4c   : > { %607 = vrot.lane.b32.xlu1 %v486_v40, %s8212_s16  ;;  %605 = vrot.lane.b32.xlu0 %v485_v41, %s8212_s16 }
  0x50   : > { %611 = vrot.lane.b32.xlu1 %v488_v42, %s8212_s16  ;;  %609 = vrot.lane.b32.xlu0 %v487_v43, %s8212_s16 }
  0x54   : > { %671 = vrot.lane.b32.xlu1 %v502_v44, %s8213_s17  ;;  %669 = vrot.lane.b32.xlu0 %v501_v45, %s8213_s17 }
  0x58   : > { %675 = vrot.lane.b32.xlu1 %v504_v46, %s8213_s17  ;;  %673 = vrot.lane.b32.xlu0 %v503_v47, %s8213_s17 }
  0x5c   : > { %551 = vrot.lane.b32.xlu1 %v474_v50, %s8211_s15  ;;  %549 = vrot.lane.b32.xlu0 %v473_v51, %s8211_s15  ;;  %v11040_v50 = vmov 683565275  }
  0x60   : > { %555 = vrot.lane.b32.xlu1 %v476_v54, %s8211_s15  ;;  %553 = vrot.lane.b32.xlu0 %v475_v55, %s8211_s15  ;;  %v11030_v54 = vmov 2475754826   ;;  %s8221_s15 = smov 67  }
  0x64   : > { %615 = vrot.lane.b32.xlu1 %v490_v56, %s8212_s16  ;;  %613 = vrot.lane.b32.xlu0 %v489_v57, %s8212_s16  ;;  %v11056_v56 = vmov 2131351028  }
  0x68   : > { %619 = vrot.lane.b32.xlu1 %v492_v58, %s8212_s16  ;;  %617 = vrot.lane.b32.xlu0 %v491_v59, %s8212_s16  ;;  %v11052_v58 = vmov 2102212464  }
  0x6c   : > { %679 = vrot.lane.b32.xlu1 %v506_v60, %s8213_s17  ;;  %677 = vrot.lane.b32.xlu0 %v505_v61, %s8213_s17  ;;  %v11037_v60 = vmov 920167782  }
  0x70   : > { %683 = vrot.lane.b32.xlu1 %v508_v62, %s8213_s17  ;;  %681 = vrot.lane.b32.xlu0 %v507_v63, %s8213_s17 }
  0x86   : > { %v8414_v3 = vpop.permute.xlu1 %529  ;;  %v526_v4 = vpop.permute.xlu0 %525 }
  0x87   : > { %v702_v12 = vsel %vm11108_vm0, %v8314_v1, %v526_v4 }
  0x8a   : > { %v532_v6 = vpop.permute.xlu1 %531  ;;  %v528_v7 = vpop.permute.xlu0 %527 }
  0x8b   : > { %v703_v13 = vsel %vm11108_vm0, %v8322_v5, %v528_v7  ;;  %v705_v5 = vsel %vm11108_vm0, %v8317_v2, %v532_v6 }
  0x8e   : > { %v592_v8 = vpop.permute.xlu1 %591  ;;  %v590_v9 = vpop.permute.xlu0 %589 }
  0x8f   : > { %v720_v16 = vsel %vm718_vm1, %v703_v13, %v592_v8  ;;  %v719_v17 = vsel %vm718_vm1, %v702_v12, %v590_v9  ;;  %v11035_v8 = vmov 1326507024  }
  0x92   : > { %v596_v10 = vpop.permute.xlu1 %595  ;;  %v8416_v11 = vpop.permute.xlu0 %593 }
  0x93   : > { %v722_v27 = vsel %vm718_vm1, %v705_v5, %v596_v10 }
  0x96   : > { %v656_v20 = vpop.permute.xlu1 %655  ;;  %v654_v21 = vpop.permute.xlu0 %653 }
  0x97   : > { %v8425_v22 = vsel %vm735_vm2, %v720_v16, %v656_v20  ;;  %v8428_v23 = vsel %vm735_vm2, %v719_v17, %v654_v21 }
  0x98   : > { %v856_v24 = vand.u32 2147483647, %v8425_v22  ;;  %v859_v25 = vand.u32 2139095040, %v8425_v22  ;;  %v752_v1 = vand.u32 2147483647, %v8428_v23  ;;  %v755_v26 = vand.u32 2139095040, %v8428_v23 }
  0x9a   : > { %v860_v28 = vshrl.u32 %v859_v25, 23  ;;  %v660_v29 = vpop.permute.xlu1 %659  ;;  %v863_v30 = vand.u32 8388607, %v856_v24  ;;  %v756_v31 = vshrl.u32 %v755_v26, 23  ;;  %v759_v32 = vand.u32 8388607, %v752_v1 }
  0x9b   : > { %v8442_v33 = vsel %vm735_vm2, %v722_v27, %v660_v29 }
  0x9c   : > { %11110 = vst [vmem:[#allocation2_spill] sm:$0xff] %v8442_v33  ;;  %v7022_v34 = vadd.s32 4294967169, %v860_v28  ;;  %v7018_v35 = vadd.s32 4294967169, %v756_v31  ;;  %v1067_v2 = vand.u32 2139095040, %v8442_v33  ;;  %v864_v37 = vor.u32 8388608, %v863_v30 }
  0x9d   : > { %v760_v38 = vor.u32 8388608, %v759_v32 }
  0x9e   : > { %v866_v36 = vadd.s32 1, %v7022_v34  ;;  %v762_v39 = vadd.s32 1, %v7018_v35  ;;  %v1068_v40 = vshrl.u32 %v1067_v2, 23  ;;  %v8445_v46 = vshll.u32 %v864_v37, 8 }
  0x9f   : > { %v8449_v48 = vshll.u32 %v760_v38, 8 }
  0xa0   : > { %vm867_vm3 = vcmp.gt.s32.totalorder %v866_v36, 0  ;;  %vm763_vm4 = vcmp.gt.s32.totalorder %v762_v39, 0  ;;  %v7030_v42 = vadd.s32 4294967169, %v1068_v40 }
  0xa1   : > { %v868_v41 = vsel %vm867_vm3, %v866_v36, 0  ;;  %v764_v45 = vsel %vm763_vm4, %v762_v39, 0 }
  0xa2   : > { %v869_v43 = vshrl.u32 %v868_v41, 5  ;;  %v870_v44 = vand.u32 31, %v868_v41  ;;  %v8447_v47 = vshrl.u32 %v764_v45, 5  ;;  %v766_v52 = vand.u32 31, %v764_v45 }
  0xa3   : > { %v8452_v53 = vadd.s32 1, %v7030_v42 }
  0xa4   : > { %v871_v49 = vsub.s32 32, %v870_v44  ;;  %v873_v51 = vshll.u32 %v11040_v50, %v870_v44  ;;  %v876_v55 = vshll.u32 %v11030_v54, %v870_v44  ;;  %v879_v57 = vshll.u32 %v11056_v56, %v870_v44 }
  0xa5   : > { %v882_v59 = vshll.u32 %v11052_v58, %v870_v44  ;;  %v885_v61 = vshll.u32 %v11037_v60, %v870_v44  ;;  %vm888_vm5 = vcmp.lt.s32.totalorder %v869_v43, 1  ;;  %vm889_vm6 = vcmp.lt.s32.totalorder %v869_v43, 2 }
  0xa6   : > { %v874_v62 = vshrl.u32 %v11030_v54, %v871_v49  ;;  %v877_v63 = vshrl.u32 %v11056_v56, %v871_v49  ;;  %v880_v4 = vshrl.u32 %v11052_v58, %v871_v49  ;;  %v872_v6 = vshrl.u32 %v11040_v50, %v871_v49 }
  0xa7   : > { %v883_v7 = vshrl.u32 %v11037_v60, %v871_v49  ;;  %v886_v9 = vshrl.u32 %v11035_v8, %v871_v49  ;;  %v767_v16 = vsub.s32 32, %v766_v52  ;;  %vm890_vm7 = vcmp.lt.s32.totalorder %v869_v43, 3 }
  0xa8   : > { %v875_v10 = vor.u32 %v874_v62, %v873_v51  ;;  %v878_v12 = vor.u32 %v877_v63, %v876_v55  ;;  %v881_v13 = vor.u32 %v880_v4, %v879_v57  ;;  %vm891_vm8 = vcmp.lt.s32.totalorder %v869_v43, 4 }
  0xa9   : > { %v884_v17 = vor.u32 %v883_v7, %v882_v59  ;;  %v887_v20 = vor.u32 %v886_v9, %v885_v61  ;;  %v769_v30 = vshll.u32 %v11040_v50, %v766_v52  ;;  %v770_v34 = vshrl.u32 %v11030_v54, %v767_v16 }
  0xaa   : > { %v892_v21 = vsel %vm888_vm5, %v872_v6, %v875_v10  ;;  %v893_v25 = vsel %vm891_vm8, %v881_v13, 2102212464  ;;  %v896_v5 = vsel %vm888_vm5, %v875_v10, %v878_v12  ;;  %v900_v26 = vsel %vm888_vm5, %v878_v12, %v881_v13 }
  0xab   : > { %v894_v27 = vsel %vm890_vm7, %v878_v12, %v893_v25  ;;  %v897_v28 = vsel %vm891_vm8, %v884_v17, 920167782  ;;  %v901_v29 = vsel %vm891_vm8, %v887_v20, 1326507024  ;;  %v772_v35 = vshll.u32 %v11030_v54, %v766_v52 }
  0xac   : > { %v898_v31 = vsel %vm890_vm7, %v881_v13, %v897_v28  ;;  %v902_v32 = vsel %vm890_vm7, %v884_v17, %v901_v29  ;;  %v895_v2 = vsel %vm889_vm6, %v892_v21, %v894_v27  ;;  %v773_v38 = vshrl.u32 %v11056_v56, %v767_v16 }
  0xad   : > { %v899_v36 = vsel %vm889_vm6, %v896_v5, %v898_v31  ;;  %v903_v37 = vsel %vm889_vm6, %v900_v26, %v902_v32  ;;  %v771_v44 = vor.u32 %v770_v34, %v769_v30  ;;  %v775_v49 = vshll.u32 %v11056_v56, %v766_v52 }
  0xae   : > { %v8475_v39 = vmul.u32.u64.low %v8445_v46, %v903_v37  ;;  %v8476_v40 = vmul.u32.u64.high %v8445_v46, %v903_v37, %v8475_v39  ;;  %v8479_v41 = vmul.u32.u64.low %v8445_v46, %v899_v36  ;;  %v8480_v42 = vmul.u32.u64.high %v8445_v46, %v899_v36, %v8479_v41 }
  0xaf   : > { %v774_v45 = vor.u32 %v773_v38, %v772_v35  ;;  %v776_v51 = vshrl.u32 %v11052_v58, %v767_v16  ;;  %v768_v43 = vshrl.u32 %v11040_v50, %v767_v16  ;;  %v778_v55 = vshll.u32 %v11052_v58, %v766_v52 }
  0xb0   : > { %v779_v57 = vshrl.u32 %v11037_v60, %v767_v16  ;;  %v782_v59 = vshrl.u32 %v11035_v8, %v767_v16  ;;  %v911_v61 = vmul.u32 %v8445_v46, %v895_v2  ;;  %v781_v63 = vshll.u32 %v11037_v60, %v766_v52 }
  0xb1   : > { %v777_v62 = vor.u32 %v776_v51, %v775_v49  ;;  %vm784_vm9 = vcmp.lt.s32.totalorder %v8447_v47, 1  ;;  %vm913_vm10 = vc.u32 %v8476_v40, %v8479_v41  ;;  %v914_v4 = vadd.s32 1, %v8480_v42 }
  0xb2   : > { %v780_v6 = vor.u32 %v779_v57, %v778_v55  ;;  %vm785_vm11 = vcmp.lt.s32.totalorder %v8447_v47, 2  ;;  %v783_v7 = vor.u32 %v782_v59, %v781_v63  ;;  %vm786_vm12 = vcmp.lt.s32.totalorder %v8447_v47, 3 }
  0xb3   : > { %vm787_vm13 = vcmp.lt.s32.totalorder %v8447_v47, 4  ;;  %v792_v9 = vsel %vm784_vm9, %v771_v44, %v774_v45  ;;  %v915_v46 = vsel %vm913_vm10, %v914_v4, %v8480_v42  ;;  %v796_v12 = vsel %vm784_vm9, %v774_v45, %v777_v62 }
  0xb4   : > { %v789_v10 = vsel %vm787_vm13, %v777_v62, 2102212464  ;;  %v793_v52 = vsel %vm787_vm13, %v780_v6, 920167782  ;;  %v916_v13 = vadd.s32 %v915_v46, %v911_v61  ;;  %v788_v16 = vsel %vm784_vm9, %v768_v43, %v771_v44 }
  0xb5   : > { %v794_v17 = vsel %vm786_vm12, %v777_v62, %v793_v52  ;;  %v797_v20 = vsel %vm787_vm13, %v783_v7, 1326507024  ;;  %v790_v21 = vsel %vm786_vm12, %v774_v45, %v789_v10  ;;  %vm1075_vm14 = vcmp.gt.s32.totalorder %v8452_v53, 0 }
  0xb6   : > { %v795_v25 = vsel %vm785_vm11, %v792_v9, %v794_v17  ;;  %v798_v5 = vsel %vm786_vm12, %v780_v6, %v797_v20  ;;  %v917_v26 = vadd.s32 536870912, %v916_v13  ;;  %v1076_v32 = vsel %vm1075_vm14, %v8452_v53, 0  ;;  %v658_v53 = vpop.permute.xlu0 %657 }
  0xb7   : > { %v799_v27 = vsel %vm785_vm11, %v796_v12, %v798_v5  ;;  %v8505_v28 = vmul.u32.u64.low %v8449_v48, %v795_v25  ;;  %v8506_v29 = vmul.u32.u64.high %v8449_v48, %v795_v25, %v8505_v28  ;;  %v791_v35 = vsel %vm785_vm11, %v788_v16, %v790_v21 }
  0xb8   : > { %v8510_v30 = vmul.u32.u64.low %v8449_v48, %v799_v27  ;;  %v8511_v31 = vmul.u32.u64.high %v8449_v48, %v799_v27, %v8510_v30  ;;  %v8514_v34 = vshrl.u32 %v917_v26, 30  ;;  %v1064_v2 = vand.u32 2147483647, %v8442_v33 }
  0xb9   : > { %v1078_v36 = vand.u32 31, %v1076_v32  ;;  %v810_v38 = vadd.s32 1, %v8506_v29  ;;  %v704_v42 = vsel %vm11108_vm0, %v8311_v0, %v8414_v3  ;;  %v807_v44 = vmul.u32 %v8449_v48, %v791_v35 }
  0xba   : > { %v919_v37 = vshll.u32 %v8514_v34, 30  ;;  %vm809_vm15 = vc.u32 %v8511_v31, %v8505_v28  ;;  %v721_v47 = vsel %vm718_vm1, %v704_v42, %v8416_v11  ;;  %v1071_v51 = vand.u32 8388607, %v1064_v2 }
  0xbb   : > { %v1079_v39 = vsub.s32 32, %v1078_v36  ;;  %v811_v49 = vsel %vm809_vm15, %v810_v38, %v8506_v29  ;;  %v1081_v55 = vshll.u32 %v11040_v50, %v1078_v36  ;;  %v1084_v57 = vshll.u32 %v11030_v54, %v1078_v36 }
  0xbc   : > { %v8529_v45 = vsub.s32 %v916_v13, %v919_v37  ;;  %v812_v43 = vadd.s32 %v811_v49, %v807_v44  ;;  %v8541_v59 = vsel %vm735_vm2, %v721_v47, %v658_v53  ;;  %v1077_v62 = vshrl.u32 %v1076_v32, 5 }
  0xbd   : > { %v1082_v0 = vshrl.u32 %v11030_v54, %v1079_v39  ;;  %v1085_v3 = vshrl.u32 %v11056_v56, %v1079_v39  ;;  %v1088_v11 = vshrl.u32 %v11052_v58, %v1079_v39  ;;  %11111 = vst [vmem:[#allocation3_spill] sm:$0xff] %v8541_v59  ;;  %v1087_v4 = vshll.u32 %v11056_v56, %v1078_v36 }
  0xbe   : > { %v922_v48 = vsub.s32 0, %v8529_v45  ;;  %v813_v61 = vadd.s32 536870912, %v812_v43  ;;  %v1090_v9 = vshll.u32 %v11052_v58, %v1078_v36  ;;  %v1091_v46 = vshrl.u32 %v11037_v60, %v1079_v39 }
  0xbf   : > { %v1083_v63 = vor.u32 %v1082_v0, %v1081_v55  ;;  %v1086_v7 = vor.u32 %v1085_v3, %v1084_v57  ;;  %v1072_v52 = vor.u32 8388608, %v1071_v51  ;;  %v1089_v12 = vor.u32 %v1088_v11, %v1087_v4 }
  0xc0   : > { %v7023_v6 = vmin.u32 %v922_v48, %v8529_v45  ;;  %v8547_v10 = vshrl.u32 %v813_v61, 30  ;;  %v1094_v13 = vshrl.u32 %v11035_v8, %v1079_v39  ;;  %v1092_v17 = vor.u32 %v1091_v46, %v1090_v9 }
  0xc1   : > { %v1093_v20 = vshll.u32 %v11037_v60, %v1078_v36  ;;  %v963_v21 = vand.u32 2139095040, %v8541_v59  ;;  %vm1096_vm3 = vcmp.lt.s32.totalorder %v1077_v62, 1  ;;  %vm1098_vm4 = vcmp.lt.s32.totalorder %v1077_v62, 3 }
  0xc2   : > { %v924_v16 = vclz %v7023_v6  ;;  %v815_v25 = vshll.u32 %v8547_v10, 30  ;;  %vm1099_vm5 = vcmp.lt.s32.totalorder %v1077_v62, 4  ;;  %v1104_v27 = vsel %vm1096_vm3, %v1083_v63, %v1086_v7 }
  0xc3   : > { %v1095_v26 = vor.u32 %v1094_v13, %v1093_v20  ;;  %v1105_v29 = vsel %vm1099_vm5, %v1092_v17, 920167782  ;;  %vm1097_vm6 = vcmp.lt.s32.totalorder %v1077_v62, 2  ;;  %v1101_v32 = vsel %vm1099_vm5, %v1089_v12, 2102212464 }
  0xc4   : > { %v7024_v5 = vadd.s32 4294967294, %v924_v16  ;;  %v8555_v30 = vsub.s32 %v812_v43, %v815_v25  ;;  %v1106_v35 = vsel %vm1098_vm4, %v1089_v12, %v1105_v29  ;;  %v1080_v36 = vshrl.u32 %v11040_v50, %v1079_v39  ;;  %v534_v16 = vpop.permute.xlu0 %533 }
  0xc5   : > { %v1107_v37 = vsel %vm1097_vm6, %v1104_v27, %v1106_v35  ;;  %v1108_v38 = vsel %vm1096_vm3, %v1086_v7, %v1089_v12  ;;  %v1112_v42 = vshll.u32 %v1072_v52, 8  ;;  %v964_v44 = vshrl.u32 %v963_v21, 23 }
  0xc6   : > { %vm7025_vm7 = vcmp.lt.s32.totalorder %v7024_v5, 0  ;;  %v1100_v53 = vsel %vm1096_vm3, %v1080_v36, %v1083_v63  ;;  %v1102_v47 = vsel %vm1098_vm4, %v1086_v7, %v1101_v32  ;;  %v1109_v49 = vsel %vm1099_vm5, %v1095_v26, 1326507024  ;;  %v536_v63 = vpop.permute.xlu1 %535 }
  0xc7   : > { %v818_v51 = vsub.s32 0, %v8555_v30  ;;  %v1110_v43 = vsel %vm1098_vm4, %v1092_v17, %v1109_v49  ;;  %v8567_v55 = vmul.u32.u64.low %v1112_v42, %v1107_v37  ;;  %v8568_v0 = vmul.u32.u64.high %v1112_v42, %v1107_v37, %v8567_v55 }
  0xc8   : > { %v1111_v39 = vsel %vm1097_vm6, %v1108_v38, %v1110_v43  ;;  %v927_v3 = vsel %vm7025_vm7, 0, %v7024_v5  ;;  %v7026_v11 = vadd.s32 4294967169, %v964_v44  ;;  %v1103_v61 = vsel %vm1097_vm6, %v1100_v53, %v1102_v47  ;;  %v8602_v53 = vpop.permute.xlu0 %537 }
  0xc9   : > { %v8572_v48 = vmul.u32.u64.low %v1112_v42, %v1111_v39  ;;  %v8573_v57 = vmul.u32.u64.high %v1112_v42, %v1111_v39, %v8572_v48  ;;  %v7019_v4 = vmin.u32 %v818_v51, %v8555_v30  ;;  %v1122_v6 = vadd.s32 1, %v8568_v0 }
  0xca   : > { %v970_v7 = vadd.s32 1, %v7026_v11  ;;  %v932_v9 = vsub.s32 4294967266, %v927_v3  ;;  %v1119_v46 = vmul.u32 %v1112_v42, %v1103_v61  ;;  %v928_v52 = vsub.s32 32, %v927_v3  ;;  %v8585_v27 = vpop.permute.xlu1 %539 }
  0xcb   : > { %vm1121_vm8 = vc.u32 %v8573_v57, %v8567_v55  ;;  %v942_v62 = vsub.s32 4, %v8514_v34  ;;  %v820_v17 = vclz %v7019_v4  ;;  %v960_v21 = vand.u32 2147483647, %v8541_v59 }
  0xcc   : > { %vm971_vm9 = vcmp.gt.s32.totalorder %v970_v7, 0  ;;  %v1123_v12 = vsel %vm1121_vm8, %v1122_v6, %v8568_v0  ;;  %v912_v25 = vadd.s32 %v8479_v41, %v8476_v40  ;;  %v933_v5 = vadd.s32 127, %v932_v9 }
  0xcd   : > { %v972_v13 = vsel %vm971_vm9, %v970_v7, 0  ;;  %v1124_v20 = vadd.s32 %v1123_v12, %v1119_v46  ;;  %vm858_vm10 = vcmp.lt.s32.totalorder %v8425_v22, 0  ;;  %v7020_v37 = vadd.s32 4294967294, %v820_v17  ;;  %v598_v12 = vpop.permute.xlu0 %597 }
  0xce   : > { %v974_v26 = vand.u32 31, %v972_v13  ;;  %v930_v32 = vshrl.u32 %v912_v25, %v928_v52  ;;  %v943_v36 = vsel %vm858_vm10, %v942_v62, %v8514_v34  ;;  %v967_v42 = vand.u32 8388607, %v960_v21 }
  0xcf   : > { %v1125_v29 = vadd.s32 536870912, %v1124_v20  ;;  %vm8597_vm11 = vcmp.le.f32.partialorder %v856_v24, 0.7853982  ;;  %v929_v41 = vshll.u32 %v8529_v45, %v927_v3  ;;  %v934_v44 = vshll.u32 %v933_v5, 23 }
  0xd0   : > { %v975_v35 = vsub.s32 32, %v974_v26  ;;  %v8606_v34 = vadd.s32 %v8505_v28, %v8511_v31  ;;  %v8611_v49 = vsel %vm11108_vm0, %v8341_v14, %v536_v63  ;;  %v8615_v24 = vsel %vm11108_vm0, %v8344_v15, %v534_v16  ;;  %v600_v31 = vpop.permute.xlu1 %599 }
  0xd1   : > { %v8591_v38 = vshrl.u32 %v1125_v29, 30  ;;  %v8617_v51 = vor.u32 %v930_v32, %v929_v41  ;;  %v8621_v45 = vsel %vm8597_vm11, 0, %v943_v36  ;;  %vm7021_vm12 = vcmp.lt.s32.totalorder %v7020_v37, 0 }
  0xd2   : > { %v978_v43 = vshrl.u32 %v11030_v54, %v975_v35  ;;  %v981_v28 = vshrl.u32 %v11056_v56, %v975_v35  ;;  %v968_v14 = vor.u32 8388608, %v967_v42  ;;  %v984_v39 = vshrl.u32 %v11052_v58, %v975_v35 }
  0xd3   : > { %v1127_v47 = vshll.u32 %v8591_v38, 30  ;;  %v8628_v3 = vor.u32 4788187, %v934_v44  ;;  %v977_v15 = vshll.u32 %v11040_v50, %v974_v26  ;;  %v980_v48 = vshll.u32 %v11030_v54, %v974_v26 }
  0xd4   : > { %v987_v11 = vshrl.u32 %v11037_v60, %v975_v35  ;;  %v973_v63 = vshrl.u32 %v972_v13, 5  ;;  %v983_v4 = vshll.u32 %v11056_v56, %v974_v26  ;;  %v986_v6 = vshll.u32 %v11052_v58, %v974_v26  ;;  %v8645_v32 = vpop.permute.xlu1 %603 }
  0xd5   : > { %v8625_v0 = vsub.s32 %v1124_v20, %v1127_v47  ;;  %v8636_v7 = vsel %vm7021_vm12, 0, %v7020_v37  ;;  %v979_v9 = vor.u32 %v978_v43, %v977_v15  ;;  %v982_v46 = vor.u32 %v981_v28, %v980_v48 }
  0xd6   : > { %v990_v52 = vshrl.u32 %v11035_v8, %v975_v35  ;;  %v985_v62 = vor.u32 %v984_v39, %v983_v4  ;;  %v988_v17 = vor.u32 %v987_v11, %v986_v6  ;;  %v989_v20 = vshll.u32 %v11037_v60, %v974_v26 }
  0xd7   : > { %v1130_v61 = vsub.s32 0, %v8625_v0  ;;  %v938_v25 = vcvt.s32.f32 %v8617_v51  ;;  %v838_v13 = vsub.s32 4, %v8547_v10  ;;  %v1120_v5 = vadd.s32 %v8567_v55, %v8573_v57 }
  0xd8   : > { %v1008_v29 = vshll.u32 %v968_v14, 8  ;;  %v936_v36 = vand.u32 2147483647, %v8628_v3  ;;  %vm754_vm13 = vcmp.lt.s32.totalorder %v8428_v23, 0  ;;  %v991_v42 = vor.u32 %v990_v52, %v989_v20  ;;  %v8651_v14 = vpop.permute.xlu0 %601  ;;  %v664_v4 = vpop.permute.xlu1 %663 }
  0xd9   : > { %v7031_v16 = vmin.u32 %v1130_v61, %v8625_v0  ;;  %vm992_vm14 = vcmp.lt.s32.totalorder %v973_v63, 1  ;;  %v828_v41 = vsub.s32 4294967266, %v8636_v7  ;;  %v976_v26 = vshrl.u32 %v11040_v50, %v975_v35 }
  0xda   : > { %vm995_vm15 = vcmp.lt.s32.totalorder %v973_v63, 4  ;;  %v1000_v44 = vsel %vm992_vm14, %v979_v9, %v982_v46  ;;  %vm994_vm3 = vcmp.lt.s32.totalorder %v973_v63, 3  ;;  %vm993_vm4 = vcmp.lt.s32.totalorder %v973_v63, 2 }
  0xdb   : > { %v1132_v37 = vclz %v7031_v16  ;;  %v997_v51 = vsel %vm995_vm15, %v985_v62, 2102212464  ;;  %v1001_v55 = vsel %vm995_vm15, %v988_v17, 920167782  ;;  %v996_v57 = vsel %vm992_vm14, %v976_v26, %v979_v9 }
  0xdc   : > { %v1002_v43 = vsel %vm994_vm3, %v985_v62, %v1001_v55  ;;  %v1004_v28 = vsel %vm992_vm14, %v982_v46, %v985_v62  ;;  %v998_v39 = vsel %vm994_vm3, %v982_v46, %v997_v51  ;;  %v1005_v15 = vsel %vm995_vm15, %v991_v42, 1326507024 }
  0xdd   : > { %v7032_v47 = vadd.s32 4294967294, %v1132_v37  ;;  %v1003_v3 = vsel %vm993_vm4, %v1000_v44, %v1002_v43  ;;  %v1006_v11 = vsel %vm994_vm3, %v988_v17, %v1005_v15  ;;  %v829_v6 = vadd.s32 127, %v828_v41 }
  0xde   : > { %v8654_v35 = vmul.u32.u64.low %v1008_v29, %v1003_v3  ;;  %v8655_v61 = vmul.u32.u64.high %v1008_v29, %v1003_v3, %v8654_v35  ;;  %v1007_v9 = vsel %vm993_vm4, %v1004_v28, %v1006_v11  ;;  %vm8661_vm6 = vcmp.le.f32.partialorder %v752_v1, 0.7853982 }
  0xdf   : > { %vm7033_vm5 = vcmp.lt.s32.totalorder %v7032_v47, 0  ;;  %v824_v46 = vsub.s32 32, %v8636_v7  ;;  %v8666_v20 = vmul.u32.u64.low %v1008_v29, %v1007_v9  ;;  %v8667_v17 = vmul.u32.u64.high %v1008_v29, %v1007_v9, %v8666_v20 }
  0xe0   : > { %v1135_v48 = vsel %vm7033_vm5, 0, %v7032_v47  ;;  %v724_v37 = vsel %vm718_vm1, %v8611_v49, %v600_v31  ;;  %v999_v26 = vsel %vm993_vm4, %v996_v57, %v998_v39  ;;  %v839_v1 = vsel %vm754_vm13, %v838_v13, %v8547_v10  ;;  %v662_v49 = vpop.permute.xlu0 %661 }
  0xe1   : > { %v1136_v52 = vsub.s32 32, %v1135_v48  ;;  %v1140_v16 = vsub.s32 4294967266, %v1135_v48  ;;  %v8673_v44 = vsel %vm735_vm2, %v724_v37, %v664_v4  ;;  %vm1066_vm7 = vcmp.lt.s32.totalorder %v8442_v33, 0 }
  0xe2   : > { %11116 = vst [vmem:[#allocation4_spill] sm:$0xff] %v8673_v44  ;;  %v1137_v47 = vshll.u32 %v8625_v0, %v1135_v48  ;;  %v1018_v51 = vadd.s32 1, %v8655_v61  ;;  %v1275_v55 = vand.u32 2139095040, %v8673_v44  ;;  %v939_v31 = vmul.f32 %v938_v25, %v936_v36 }
  0xe3   : > { %v1138_v42 = vshrl.u32 %v1120_v5, %v1136_v52  ;;  %v1141_v41 = vadd.s32 127, %v1140_v16  ;;  %v830_v5 = vshll.u32 %v829_v6, 23  ;;  %v723_v57 = vsel %vm718_vm1, %v8615_v24, %v598_v12 }
  0xe4   : > { %v1015_v28 = vmul.u32 %v1008_v29, %v999_v26  ;;  %vm1017_vm8 = vc.u32 %v8667_v17, %v8654_v35  ;;  %v1276_v10 = vshrl.u32 %v1275_v55, 23  ;;  %v826_v13 = vshrl.u32 %v8606_v34, %v824_v46 }
  0xe5   : > { %v1142_v63 = vshll.u32 %v1141_v41, 23  ;;  %v1139_v43 = vor.u32 %v1138_v42, %v1137_v47  ;;  %v1019_v39 = vsel %vm1017_vm8, %v1018_v51, %v8655_v61  ;;  %v8689_v3 = vsel %vm735_vm2, %v723_v57, %v662_v49 }
  0xe6   : > { %v825_v25 = vshll.u32 %v8555_v30, %v8636_v7  ;;  %v1020_v36 = vadd.s32 %v1019_v39, %v1015_v28  ;;  %v1272_v24 = vand.u32 2147483647, %v8673_v44  ;;  %v7038_v12 = vadd.s32 4294967169, %v1276_v10 }
  0xe7   : > { %v1143_v0 = vor.u32 4788187, %v1142_v63  ;;  %v940_v29 = vxor.u32 2147483648, %v939_v31  ;;  %v831_v15 = vor.u32 4788187, %v830_v5  ;;  %v1150_v11 = vsub.s32 4, %v8591_v38 }
  0xe8   : > { %v1146_v4 = vcvt.s32.f32 %v1139_v43  ;;  %v1021_v34 = vadd.s32 536870912, %v1020_v36  ;;  %v1282_v6 = vadd.s32 1, %v7038_v12  ;;  %v1171_v61 = vand.u32 2139095040, %v8689_v3 }
  0xe9   : > { %v1144_v48 = vand.u32 2147483647, %v1143_v0  ;;  %v8697_v52 = vand.u32 3, %v8621_v45  ;;  %v827_v16 = vor.u32 %v826_v13, %v825_v25  ;;  %v8701_v30 = vsel %vm8661_vm6, 0, %v839_v1 }
  0xea   : > { %vm8705_vm9 = vcmp.le.f32.partialorder %v1064_v2, 0.7853982  ;;  %v8709_v46 = vshrl.u32 %v1021_v34, 30  ;;  %v1279_v20 = vand.u32 8388607, %v1272_v24  ;;  %vm1283_vm12 = vcmp.gt.s32.totalorder %v1282_v6, 0 }
  0xeb   : > { %v1147_v9 = vmul.f32 %v1146_v4, %v1144_v48  ;;  %v941_v37 = vsel %vm858_vm10, %v940_v29, %v939_v31  ;;  %v832_v42 = vand.u32 2147483647, %v831_v15  ;;  %v1151_v41 = vsel %vm1066_vm7, %v1150_v11, %v8591_v38 }
  0xec   : > { %v1284_v26 = vsel %vm1283_vm12, %v1282_v6, 0  ;;  %v1023_v2 = vshll.u32 %v8709_v46, 30  ;;  %v11032_v47 = vand.u32 2147483647, %v8689_v3  ;;  %v1172_v51 = vshrl.u32 %v1171_v61, 23 }
  0xed   : > { %v1286_v1 = vand.u32 31, %v1284_v26  ;;  %v834_v55 = vcvt.s32.f32 %v827_v16  ;;  %v8721_v49 = vand.u32 3, %v8701_v30  ;;  %v709_v31 = vsel %vm11108_vm0, %v8351_v18, %v8585_v27 }
  0xee   : > { %v8729_v5 = vsel %vm11108_vm0, %v8354_v19, %v8602_v53  ;;  %v1148_v38 = vxor.u32 2147483648, %v1147_v9  ;;  %v8731_v63 = vsub.s32 %v1020_v36, %v1023_v2  ;;  %v1280_v57 = vor.u32 8388608, %v1279_v20 }
  0xef   : > { %v1287_v43 = vsub.s32 32, %v1286_v1  ;;  %v8736_v28 = vsel %vm8597_vm11, %v8425_v22, %v941_v37  ;;  %v8738_v10 = vmul.f32 %v834_v55, %v832_v42  ;;  %v8742_v18 = vsel %vm8705_vm9, 0, %v1151_v41 }
  0xf0   : > { %v8746_v19 = vsel %vm718_vm1, %v709_v31, %v8645_v32  ;;  %v1016_v27 = vadd.s32 %v8654_v35, %v8667_v17  ;;  %v1026_v53 = vsub.s32 0, %v8731_v63  ;;  %v7034_v13 = vadd.s32 4294967169, %v1172_v51 }
  0xf1   : > { %v8753_v40 = vand.u32 8388607, %v11032_v47  ;;  %v1289_v0 = vshll.u32 %v11040_v50, %v1286_v1  ;;  %v1290_v39 = vshrl.u32 %v11030_v54, %v1287_v43  ;;  %v1292_v25 = vshll.u32 %v11030_v54, %v1286_v1 }
  0xf2   : > { %v1293_v36 = vshrl.u32 %v11056_v56, %v1287_v43  ;;  %v1149_v32 = vsel %vm1066_vm7, %v1148_v38, %v1147_v9  ;;  %v7027_v35 = vmin.u32 %v1026_v53, %v8731_v63  ;;  %v1285_v17 = vshrl.u32 %v1284_v26, 5 }
  0xf3   : > { %v8762_v12 = vshll.u32 %v1280_v57, 8  ;;  %v1291_v29 = vor.u32 %v1290_v39, %v1289_v0  ;;  %v1295_v48 = vshll.u32 %v11056_v56, %v1286_v1  ;;  %v1296_v11 = vshrl.u32 %v11052_v58, %v1287_v43 }
  0xf4   : > { %v1294_v15 = vor.u32 %v1293_v36, %v1292_v25  ;;  %v1028_v4 = vclz %v7027_v35  ;;  %v1298_v34 = vshll.u32 %v11052_v58, %v1286_v1  ;;  %v1299_v6 = vshrl.u32 %v11037_v60, %v1287_v43 }
  0xf5   : > { %v1178_v61 = vadd.s32 1, %v7034_v13  ;;  %v1288_v16 = vshrl.u32 %v11040_v50, %v1287_v43  ;;  %v1297_v9 = vor.u32 %v1296_v11, %v1295_v48  ;;  %v1301_v20 = vshll.u32 %v11037_v60, %v1286_v1 }
  0xf6   : > { %v1302_v37 = vshrl.u32 %v11035_v8, %v1287_v43  ;;  %v7028_v42 = vadd.s32 4294967294, %v1028_v4  ;;  %v1300_v41 = vor.u32 %v1299_v6, %v1298_v34  ;;  %vm1304_vm10 = vcmp.lt.s32.totalorder %v1285_v17, 1 }
  0xf7   : > { %vm1307_vm11 = vcmp.lt.s32.totalorder %v1285_v17, 4  ;;  %vm1305_vm14 = vcmp.lt.s32.totalorder %v1285_v17, 2  ;;  %v1312_v51 = vsel %vm1304_vm10, %v1291_v29, %v1294_v15  ;;  %vm1306_vm3 = vcmp.lt.s32.totalorder %v1285_v17, 3 }
  0xf8   : > { %v1303_v26 = vor.u32 %v1302_v37, %v1301_v20  ;;  %v1309_v2 = vsel %vm1307_vm11, %v1297_v9, 2102212464  ;;  %vm7029_vm15 = vcmp.lt.s32.totalorder %v7028_v42, 0  ;;  %v1308_v55 = vsel %vm1304_vm10, %v1288_v16, %v1291_v29  ;;  %v668_v16 = vpop.permute.xlu1 %667 }
  0xf9   : > { %v1313_v31 = vsel %vm1307_vm11, %v1300_v41, 920167782  ;;  %v1031_v38 = vsel %vm7029_vm15, 0, %v7028_v42  ;;  %v1316_v53 = vsel %vm1304_vm10, %v1294_v15, %v1297_v9  ;;  %v1310_v39 = vsel %vm1306_vm3, %v1294_v15, %v1309_v2 }
  0xfa   : > { %v1314_v57 = vsel %vm1306_vm3, %v1297_v9, %v1313_v31  ;;  %v1317_v13 = vsel %vm1307_vm11, %v1303_v26, 1326507024  ;;  %v1032_v0 = vsub.s32 32, %v1031_v38  ;;  %v1036_v1 = vsub.s32 4294967266, %v1031_v38 }
  0xfb   : > { %v1315_v43 = vsel %vm1305_vm14, %v1312_v51, %v1314_v57  ;;  %v1033_v25 = vshll.u32 %v8731_v63, %v1031_v38  ;;  %v1318_v36 = vsel %vm1306_vm3, %v1300_v41, %v1317_v13  ;;  %vm1179_vm4 = vcmp.gt.s32.totalorder %v1178_v61, 0 }
  0xfc   : > { %v8774_v35 = vmul.u32.u64.low %v8762_v12, %v1315_v43  ;;  %v8775_v48 = vmul.u32.u64.high %v8762_v12, %v1315_v43, %v8774_v35  ;;  %v1034_v11 = vshrl.u32 %v1016_v27, %v1032_v0  ;;  %v1037_v29 = vadd.s32 127, %v1036_v1 }
  0xfd   : > { %v1319_v4 = vsel %vm1305_vm14, %v1316_v53, %v1318_v36  ;;  %8057 = vcosq.f32 %v8736_v28  ;;  %v1180_v6 = vsel %vm1179_vm4, %v1178_v61, 0  ;;  %v8785_v63 = vadd.s32 3, %v8742_v18 }
  0xfe   : > { %v8781_v34 = vmul.u32.u64.low %v8762_v12, %v1319_v4  ;;  %v8782_v15 = vmul.u32.u64.high %v8762_v12, %v1319_v4, %v8781_v34  ;;  %v1035_v9 = vor.u32 %v1034_v11, %v1033_v25  ;;  %v1038_v20 = vshll.u32 %v1037_v29, 23 }
  0xff   : > { %v1311_v37 = vsel %vm1305_vm14, %v1308_v55, %v1310_v39  ;;  %v1152_v27 = vsel %vm8705_vm9, %v8442_v33, %v1149_v32  ;;  %v8792_v42 = vand.u32 3, %v8742_v18  ;;  %vm962_vm5 = vcmp.lt.s32.totalorder %v8541_v59, 0 }
 0x100   : > { %v1330_v41 = vadd.s32 1, %v8775_v48  ;;  %v1182_v61 = vand.u32 31, %v1180_v6  ;;  %v836_v26 = vxor.u32 2147483648, %v8738_v10  ;;  %v1039_v2 = vor.u32 4788187, %v1038_v20 }
 0x101   : > { %v1176_v51 = vor.u32 8388608, %v8753_v40  ;;  %v8800_v17 = vsel %vm735_vm2, %v8746_v19, %v668_v16  ;;  %vm8804_vm7 = vcmp.le.f32.partialorder %v960_v21, 0.7853982  ;;  %v1046_v18 = vsub.s32 4, %v8709_v46 }
 0x102   : > { %11119 = vst [vmem:[#allocation5_spill] sm:$0xff] %v8800_v17  ;;  %v1327_v32 = vmul.u32 %v8762_v12, %v1311_v37  ;;  %vm1329_vm8 = vc.u32 %v8782_v15, %v8774_v35  ;;  %v1183_v55 = vsub.s32 32, %v1182_v61  ;;  %8059 = vcosq.f32 %v1152_v27 }
 0x103   : > { %v1040_v40 = vand.u32 2147483647, %v1039_v2  ;;  %v1042_v31 = vcvt.s32.f32 %v1035_v9  ;;  %v1331_v19 = vsel %vm1329_vm8, %v1330_v41, %v8775_v48  ;;  %8061 = vsinq.f32 %v1152_v27 }
 0x104   : > { %v1332_v38 = vadd.s32 %v1331_v19, %v1327_v32  ;;  %v1185_v21 = vshll.u32 %v11040_v50, %v1182_v61  ;;  %v1186_v57 = vshrl.u32 %v11030_v54, %v1183_v55  ;;  %v1188_v13 = vshll.u32 %v11030_v54, %v1182_v61 }
 0x105   : > { %v1043_v53 = vmul.f32 %v1042_v31, %v1040_v40  ;;  %v1189_v12 = vshrl.u32 %v11056_v56, %v1183_v55  ;;  %v1192_v0 = vshrl.u32 %v11052_v58, %v1183_v55  ;;  %v1181_v39 = vshrl.u32 %v1180_v6, 5 }
 0x106   : > { %v1333_v1 = vadd.s32 536870912, %v1332_v38  ;;  %v1194_v43 = vshll.u32 %v11052_v58, %v1182_v61  ;;  %v1195_v25 = vshrl.u32 %v11037_v60, %v1183_v55  ;;  %v1187_v48 = vor.u32 %v1186_v57, %v1185_v21 }
 0x107   : > { %v1044_v36 = vxor.u32 2147483648, %v1043_v53  ;;  %v1190_v11 = vor.u32 %v1189_v12, %v1188_v13  ;;  %v1191_v29 = vshll.u32 %v11056_v56, %v1182_v61  ;;  %v1198_v16 = vshrl.u32 %v11035_v8, %v1183_v55 }
 0x108   : > { %v8821_v4 = vshrl.u32 %v1333_v1, 30  ;;  %v1196_v34 = vor.u32 %v1195_v25, %v1194_v43  ;;  %v1483_v9 = vand.u32 2139095040, %v8800_v17  ;;  %v1197_v37 = vshll.u32 %v11037_v60, %v1182_v61 }
 0x109   : > { %v1045_v20 = vsel %vm962_vm5, %v1044_v36, %v1043_v53  ;;  %v1193_v6 = vor.u32 %v1192_v0, %v1191_v29  ;;  %v8828_v27 = vshll.u32 %v1176_v51, 8  ;;  %v1184_v2 = vshrl.u32 %v11040_v50, %v1183_v55 }
 0x10a   : > { %v1335_v41 = vshll.u32 %v8821_v4, 30  ;;  %vm1200_vm9 = vcmp.lt.s32.totalorder %v1181_v39, 1  ;;  %vm1203_vm12 = vcmp.lt.s32.totalorder %v1181_v39, 4  ;;  %v8832_v32 = vpop.eup %8057  ;;  %v1048_v40 = vsel %vm8804_vm7, %v8541_v59, %v1045_v20 }
 0x10b   : > { %v1199_v31 = vor.u32 %v1198_v16, %v1197_v37  ;;  %v1208_v19 = vsel %vm1200_vm9, %v1187_v48, %v1190_v11  ;;  %v1209_v21 = vsel %vm1203_vm12, %v1196_v34, 920167782  ;;  %v1047_v61 = vsel %vm962_vm5, %v1046_v18, %v8709_v46 }
 0x10c   : > { %v8842_v51 = vsub.s32 %v1332_v38, %v1335_v41  ;;  %vm1202_vm10 = vcmp.lt.s32.totalorder %v1181_v39, 3  ;;  %v1484_v55 = vshrl.u32 %v1483_v9, 23  ;;  %vm1201_vm11 = vcmp.lt.s32.totalorder %v1181_v39, 2 }
 0x10d   : > { %v1204_v57 = vsel %vm1200_vm9, %v1184_v2, %v1187_v48  ;;  %v1205_v53 = vsel %vm1203_vm12, %v1193_v6, 2102212464  ;;  %v1210_v13 = vsel %vm1202_vm10, %v1193_v6, %v1209_v21  ;;  %8063 = vcosq.f32 %v1048_v40 }
 0x10e   : > { %v1338_v12 = vsub.s32 0, %v8842_v51  ;;  %v1211_v0 = vsel %vm1201_vm11, %v1208_v19, %v1210_v13  ;;  %v1212_v1 = vsel %vm1200_vm9, %v1190_v11, %v1193_v6  ;;  %8065 = vsinq.f32 %v1048_v40 }
 0x10f   : > { %v1213_v46 = vsel %vm1203_vm12, %v1199_v31, 1326507024  ;;  %v8852_v18 = vmul.u32.u64.low %v8828_v27, %v1211_v0  ;;  %v8853_v38 = vmul.u32.u64.high %v8828_v27, %v1211_v0, %v8852_v18  ;;  %v8856_v43 = vpop.eup %8059  ;;  %v1206_v36 = vsel %vm1202_vm10, %v1190_v11, %v1205_v53 }
 0x110   : > { %11122 = vst [vmem:[#allocation6_spill] sm:$0xff] %v8856_v43  ;;  %v7039_v25 = vmin.u32 %v1338_v12, %v8842_v51  ;;  %v1214_v48 = vsel %vm1202_vm10, %v1196_v34, %v1213_v46  ;;  %v7046_v29 = vadd.s32 4294967169, %v1484_v55  ;;  %v8861_v16 = vpop.eup %8061  ;;  %v837_v9 = vsel %vm754_vm13, %v836_v26, %v8738_v10 }
 0x111   : > { %11123 = vst [vmem:[#allocation7_spill] sm:$0xff] %v8861_v16  ;;  %v1049_v20 = vsel %vm8804_vm7, 0, %v1047_v61  ;;  %v1215_v6 = vsel %vm1201_vm11, %v1212_v1, %v1214_v48  ;;  %v11029_v37 = vand.u32 2147483647, %v8800_v17  ;;  %8067 = vsinq.f32 %v8736_v28  ;;  %v666_v61 = vpop.permute.xlu0 %665 }
 0x112   : > { %v1340_v41 = vclz %v7039_v25  ;;  %v8873_v11 = vmul.u32.u64.low %v8828_v27, %v1215_v6  ;;  %v8874_v34 = vmul.u32.u64.high %v8828_v27, %v1215_v6, %v8873_v11  ;;  %v1490_v2 = vadd.s32 1, %v7046_v29 }
 0x113   : > { %v8878_v40 = vand.u32 3, %v8785_v63  ;;  %v1207_v10 = vsel %vm1201_vm11, %v1204_v57, %v1206_v36  ;;  %v1226_v26 = vadd.s32 1, %v8853_v38  ;;  %vm2820_vm13 = vcmp.eq.s32.totalorder %v8792_v42, 0 }
 0x114   : > { %vm2823_vm14 = vcmp.eq.s32.totalorder %v8792_v42, 2  ;;  %v7040_v7 = vadd.s32 4294967294, %v1340_v41  ;;  %vm1491_vm15 = vcmp.gt.s32.totalorder %v1490_v2, 0  ;;  %v840_v31 = vsel %vm8661_vm6, %v8428_v23, %v837_v9 }
 0x115   : > { %11124 = vst [vmem:[#allocation8_spill] sm:$0xff] %v8878_v40  ;;  %v8887_v19 = vand.u32 3, %v1049_v20  ;;  %v1487_v28 = vand.u32 8388607, %v11029_v37  ;;  %v1492_v63 = vsel %vm1491_vm15, %v1490_v2, 0  ;;  %v11027_v39 = vxor.u32 2147483648, %v8856_v43 }
 0x116   : > { %vm7041_vm3 = vcmp.lt.s32.totalorder %v7040_v7, 0  ;;  %v1223_v21 = vmul.u32 %v8828_v27, %v1207_v10  ;;  %vm1225_vm4 = vc.u32 %v8874_v34, %v8852_v18  ;;  %v11028_v55 = vxor.u32 2147483648, %v8861_v16 }
 0x117   : > { %v8896_v57 = vsel %vm7041_vm3, 0, %v7040_v7  ;;  %v1227_v62 = vsel %vm1225_vm4, %v1226_v26, %v8853_v38  ;;  %v1494_v53 = vand.u32 31, %v1492_v63  ;;  %8069 = vcosq.f32 %v840_v31 }
 0x118   : > { %v725_v13 = vsel %vm718_vm1, %v8729_v5, %v8651_v14  ;;  %v1358_v12 = vsub.s32 4, %v8821_v4  ;;  %v1228_v0 = vadd.s32 %v1227_v62, %v1223_v21  ;;  %v1348_v27 = vsub.s32 4294967266, %v8896_v57 }
 0x119   : > { %v1488_v1 = vor.u32 8388608, %v1487_v28  ;;  %v1495_v46 = vsub.s32 32, %v1494_v53  ;;  %v8905_v25 = vsel %vm735_vm2, %v725_v13, %v666_v61  ;;  %8071 = vsinq.f32 %v840_v31 }
 0x11a   : > { %11125 = vst [vmem:[#allocation9_spill] sm:$0xff] %v8905_v25  ;;  %v8907_v36 = vadd.s32 3, %v1049_v20  ;;  %vm1274_vm6 = vcmp.lt.s32.totalorder %v8673_v44, 0  ;;  %v1229_v38 = vadd.s32 536870912, %v1228_v0  ;;  %v8910_v48 = vpop.eup %8063  ;;  %v8917_v14 = vsel %vm2820_vm13, %v8856_v43, %v11028_v55 }
 0x11b   : > { %11126 = vst [vmem:[#allocation10_spill] sm:$0xff] %v8910_v48  ;;  %v8924_v5 = vsel %vm2823_vm14, %v11027_v39, %v8861_v16  ;;  %vm2717_vm5 = vcmp.eq.s32.totalorder %v8887_v19, 0  ;;  %vm2720_vm7 = vcmp.eq.s32.totalorder %v8887_v19, 2  ;;  %v1344_v29 = vsub.s32 32, %v8896_v57  ;;  %v8929_v9 = vpop.eup %8065 }
 0x11c   : > { %11127 = vst [vmem:[#allocation11_spill] sm:$0xff] %v8929_v9  ;;  %v1328_v20 = vadd.s32 %v8774_v35, %v8782_v15  ;;  %v8936_v6 = vsel %vm1274_vm6, %v1358_v12, %v8821_v4  ;;  %v8938_v41 = vshrl.u32 %v1229_v38, 30  ;;  %v1379_v11 = vand.u32 2139095040, %v8905_v25 }
 0x11d   : > { %v1349_v2 = vadd.s32 127, %v1348_v27  ;;  %v1498_v10 = vshrl.u32 %v11030_v54, %v1495_v46  ;;  %v1501_v26 = vshrl.u32 %v11056_v56, %v1495_v46  ;;  %v8943_v7 = vshll.u32 %v1488_v1, 8 }
 0x11e   : > { %v11033_v31 = vxor.u32 2147483648, %v8910_v48  ;;  %v1231_v35 = vshll.u32 %v8938_v41, 30  ;;  %v8947_v15 = vshrl.u32 %v1492_v63, 5  ;;  %v1497_v4 = vshll.u32 %v11040_v50, %v1494_v53  ;;  %v8953_v13 = vpop.eup %8067 }
 0x11f   : > { %v11034_v28 = vxor.u32 2147483648, %v8929_v9  ;;  %v1346_v21 = vshrl.u32 %v1328_v20, %v1344_v29  ;;  %v1500_v61 = vshll.u32 %v11030_v54, %v1494_v53  ;;  %v1504_v62 = vshrl.u32 %v11052_v58, %v1495_v46 }
 0x120   : > { %v8955_v12 = vsub.s32 %v1228_v0, %v1231_v35  ;;  %v1503_v27 = vshll.u32 %v11056_v56, %v1494_v53  ;;  %v1506_v1 = vshll.u32 %v11052_v58, %v1494_v53  ;;  %v1507_v63 = vshrl.u32 %v11037_v60, %v1495_v46 }
 0x121   : > { %v1350_v38 = vshll.u32 %v1349_v2, 23  ;;  %v1499_v39 = vor.u32 %v1498_v10, %v1497_v4  ;;  %v1502_v55 = vor.u32 %v1501_v26, %v1500_v61  ;;  %v1510_v37 = vshrl.u32 %v11035_v8, %v1495_v46 }
 0x122   : > { %v1234_v29 = vsub.s32 0, %v8955_v12  ;;  %v1505_v20 = vor.u32 %v1504_v62, %v1503_v27  ;;  %v1508_v54 = vor.u32 %v1507_v63, %v1506_v1  ;;  %v1509_v47 = vshll.u32 %v11037_v60, %v1494_v53 }
 0x123   : > { %v2722_v0 = vsel %vm2720_vm7, %v11033_v31, %v8929_v9  ;;  %v1345_v35 = vshll.u32 %v8842_v51, %v8896_v57  ;;  %v1496_v2 = vshrl.u32 %v11040_v50, %v1495_v46  ;;  %v1380_v10 = vshrl.u32 %v1379_v11, 23  ;;  %v9104_v9 = vld [vmem:[%s8308_s14 + $0x48] sm:$0xff] }
 0x124   : > { %vm2819_vm8 = vcmp.lt.s32.totalorder %v8792_v42, 2  ;;  %vm2716_vm9 = vcmp.lt.s32.totalorder %v8887_v19, 2  ;;  %v2719_v53 = vsel %vm2717_vm5, %v8910_v48, %v11034_v28  ;;  %vm8980_vm12 = vcmp.le.f32.partialorder %v1272_v24, 0.7853982  ;;  %v8986_v46 = vpop.eup %8069 }
 0x125   : > { %v7035_v51 = vmin.u32 %v1234_v29, %v8955_v12  ;;  %v1511_v57 = vor.u32 %v1510_v37, %v1509_v47  ;;  %vm1512_vm10 = vcmp.lt.s32.totalorder %v8947_v15, 1  ;;  %v1347_v11 = vor.u32 %v1346_v21, %v1345_v35  ;;  %v8997_v37 = vpop.permute.xlu1 %543 }
 0x126   : > { %v1351_v4 = vor.u32 4788187, %v1350_v38  ;;  %vm1170_vm11 = vcmp.lt.s32.totalorder %v8689_v3, 0  ;;  %vm1515_vm13 = vcmp.lt.s32.totalorder %v8947_v15, 4  ;;  %v1520_v61 = vsel %vm1512_vm10, %v1499_v39, %v1502_v55  ;;  %v8999_v21 = vpop.eup %8071 }
 0x127   : > { %v1236_v24 = vclz %v7035_v51  ;;  %vm1514_vm14 = vcmp.lt.s32.totalorder %v8947_v15, 3  ;;  %v1517_v62 = vsel %vm1515_vm13, %v1505_v20, 2102212464  ;;  %v1521_v47 = vsel %vm1515_vm13, %v1508_v54, 920167782 }
 0x128   : > { %v1254_v27 = vsub.s32 4, %v8938_v41  ;;  %vm1513_vm15 = vcmp.lt.s32.totalorder %v8947_v15, 2  ;;  %v1522_v1 = vsel %vm1514_vm14, %v1505_v20, %v1521_v47  ;;  %v1524_v63 = vsel %vm1512_vm10, %v1502_v55, %v1505_v20 }
 0x129   : > { %vm1156_vm3 = vweird.f32 %v8442_v33  ;;  %v7036_v38 = vadd.s32 4294967294, %v1236_v24  ;;  %v1516_v29 = vsel %vm1512_vm10, %v1496_v2, %v1499_v39  ;;  %v1523_v35 = vsel %vm1513_vm15, %v1520_v61, %v1522_v1  ;;  %v9039_v60 = vpop.permute.xlu1 %547 }
 0x12a   : > { %v1525_v51 = vsel %vm1515_vm13, %v1511_v57, 1326507024  ;;  %vm1052_vm4 = vweird.f32 %v8541_v59  ;;  %v11130_v31 = vand.u32 2147483647, %v8689_v3  ;;  %v1518_v20 = vsel %vm1514_vm14, %v1502_v55, %v1517_v62 }
 0x12b   : > { %v1526_v39 = vsel %vm1514_vm14, %v1508_v54, %v1525_v51  ;;  %v9026_v2 = vmul.u32.u64.low %v8943_v7, %v1523_v35  ;;  %v9027_v61 = vmul.u32.u64.high %v8943_v7, %v1523_v35, %v9026_v2  ;;  %v1352_v57 = vand.u32 2147483647, %v1351_v4 }
 0x12c   : > { %vm9017_vm5 = vcmp.le.f32.partialorder %v11130_v31, 0.7853982  ;;  %vm7037_vm7 = vcmp.lt.s32.totalorder %v7036_v38, 0  ;;  %v1527_v24 = vsel %vm1513_vm15, %v1524_v63, %v1526_v39  ;;  %v7042_v31 = vadd.s32 4294967169, %v1380_v10 }
 0x12d   : > { %v1239_v1 = vsel %vm7037_vm7, 0, %v7036_v38  ;;  %v9033_v28 = vmul.u32.u64.low %v8943_v7, %v1527_v24  ;;  %v9034_v8 = vmul.u32.u64.high %v8943_v7, %v1527_v24, %v9033_v28  ;;  %v11039_v55 = vand.u32 2147483647, %v8905_v25  ;;  %v608_v24 = vpop.permute.xlu1 %607 }
 0x12e   : > { %v1354_v62 = vcvt.s32.f32 %v1347_v11  ;;  %v1244_v54 = vsub.s32 4294967266, %v1239_v1  ;;  %v1519_v35 = vsel %vm1513_vm15, %v1516_v29, %v1518_v20  ;;  %v1386_v51 = vadd.s32 1, %v7042_v31  ;;  %v9054_v29 = vpop.permute.xlu0 %541 }
 0x12f   : > { %v2826_v10 = vsel %vm2819_vm8, %v8917_v14, %v8924_v5  ;;  %v2723_v4 = vsel %vm2716_vm9, %v2719_v53, %v2722_v0  ;;  %v1361_v28 = vsel %vm8980_vm12, 0, %v8936_v6  ;;  %v1538_v11 = vadd.s32 1, %v9027_v61 }
 0x130   : > { %v1355_v63 = vmul.f32 %v1354_v62, %v1352_v57  ;;  %v1245_v15 = vadd.s32 127, %v1244_v54  ;;  %v1255_v38 = vsel %vm1170_vm11, %v1254_v27, %v8938_v41  ;;  %vm1387_vm10 = vcmp.gt.s32.totalorder %v1386_v51, 0 }
 0x131   : > { %v1240_v42 = vsub.s32 32, %v1239_v1  ;;  %v1535_v14 = vmul.u32 %v8943_v7, %v1519_v35  ;;  %vm1537_vm8 = vc.u32 %v9034_v8, %v9026_v2  ;;  %v1388_v19 = vsel %vm1387_vm10, %v1386_v51, 0  ;;  %v9099_v16 = vpop.permute.xlu1 %611 }
 0x132   : > { %v9060_v5 = vand.u32 3, %v8907_v36  ;;  %v1246_v6 = vshll.u32 %v1245_v15, 23  ;;  %v1539_v0 = vsel %vm1537_vm8, %v1538_v11, %v9027_v61  ;;  %v1383_v53 = vand.u32 8388607, %v11039_v55 }
 0x133   : > { %v9067_v41 = vsel %vm1156_vm3, nan, %v2826_v10  ;;  %v1224_v7 = vadd.s32 %v8852_v18, %v8874_v34  ;;  %v1540_v27 = vadd.s32 %v1539_v0, %v1535_v14  ;;  %v1390_v20 = vand.u32 31, %v1388_v19 }
 0x134   : > { %11133 = vst [vmem:[#allocation12_spill] sm:$0xff] %v9060_v5  ;;  %v9073_v39 = vsel %vm1052_vm4, nan, %v2723_v4  ;;  %v9075_v36 = vadd.s32 3, %v1361_v28  ;;  %v9077_v57 = vand.u32 3, %v1361_v28  ;;  %v9081_v61 = vsel %vm9017_vm5, 0, %v1255_v38  ;;  %v9085_v4 = vpop.permute.xlu0 %545 }
 0x135   : > { %v1356_v31 = vxor.u32 2147483648, %v1355_v63  ;;  %v1242_v62 = vshrl.u32 %v1224_v7, %v1240_v42  ;;  %v1541_v54 = vadd.s32 536870912, %v1540_v27  ;;  %v1391_v35 = vsub.s32 32, %v1390_v20 }
 0x136   : > { %11134 = vst [vmem:[#allocation13_spill] sm:$0xff] %v9077_v57  ;;  %v1241_v18 = vshll.u32 %v8955_v12, %v1239_v1  ;;  %v1247_v34 = vor.u32 4788187, %v1246_v6  ;;  %v1384_v51 = vor.u32 8388608, %v1383_v53  ;;  %v1393_v10 = vshll.u32 %v11040_v50, %v1390_v20 }
 0x137   : > { %v9087_v11 = vshrl.u32 %v1541_v54, 30  ;;  %v11135_v28 = vmov 2475754826   ;;  %v1397_v14 = vshrl.u32 %v11056_v56, %v1391_v35  ;;  %v1400_v42 = vshrl.u32 %v11052_v58, %v1391_v35 }
 0x138   : > { %v1394_v15 = vshrl.u32 %v11135_v28, %v1391_v35  ;;  %v1396_v38 = vshll.u32 %v11135_v28, %v1390_v20  ;;  %v1402_v0 = vshll.u32 %v11052_v58, %v1390_v20  ;;  %v11136_v12 = vmov 920167782  }
 0x139   : > { %v1403_v1 = vshrl.u32 %v11136_v12, %v1391_v35  ;;  %v11137_v6 = vmov 1326507024   ;;  %v1243_v7 = vor.u32 %v1242_v62, %v1241_v18  ;;  %v1543_v55 = vshll.u32 %v9087_v11, 30 }
 0x13a   : > { %v1406_v53 = vshrl.u32 %v11137_v6, %v1391_v35  ;;  %v1389_v54 = vshrl.u32 %v1388_v19, 5  ;;  %v1399_v50 = vshll.u32 %v11056_v56, %v1390_v20  ;;  %v1395_v57 = vor.u32 %v1394_v15, %v1393_v10  ;;  %v606_v15 = vpop.permute.xlu0 %605 }
 0x13b   : > { %v1398_v33 = vor.u32 %v1397_v14, %v1396_v38  ;;  %v1404_v59 = vor.u32 %v1403_v1, %v1402_v0  ;;  %v1405_v43 = vshll.u32 %v11136_v12, %v1390_v20  ;;  %v1248_v40 = vand.u32 2147483647, %v1247_v34  ;;  %v672_v0 = vpop.permute.xlu1 %671 }
 0x13c   : > { %v9101_v48 = vsub.s32 %v1540_v27, %v1543_v55  ;;  %v1401_v58 = vor.u32 %v1400_v42, %v1399_v50  ;;  %v711_v62 = vsel %vm11108_vm0, %v9104_v9, %v8997_v37  ;;  %v1357_v19 = vsel %vm1274_vm6, %v1356_v31, %v1355_v63 }
 0x13d   : > { %v1407_v18 = vor.u32 %v1406_v53, %v1405_v43  ;;  %v9111_v10 = vshll.u32 %v1384_v51, 8  ;;  %v728_v20 = vsel %vm718_vm1, %v711_v62, %v608_v24  ;;  %v1250_v38 = vcvt.s32.f32 %v1243_v7 }
 0x13e   : > { %v1546_v55 = vsub.s32 0, %v9101_v48  ;;  %vm1408_vm9 = vcmp.lt.s32.totalorder %v1389_v54, 1  ;;  %vm1411_vm13 = vcmp.lt.s32.totalorder %v1389_v54, 4  ;;  %vm1482_vm14 = vcmp.lt.s32.totalorder %v8800_v17, 0 }
 0x13f   : > { %v11138_v50 = vmov 683565275   ;;  %vm1409_vm15 = vcmp.lt.s32.totalorder %v1389_v54, 2  ;;  %v1416_v37 = vsel %vm1408_vm9, %v1395_v57, %v1398_v33  ;;  %v1417_v34 = vsel %vm1411_vm13, %v1404_v59, 920167782 }
 0x140   : > { %v1392_v27 = vshrl.u32 %v11138_v50, %v1391_v35  ;;  %v1251_v63 = vmul.f32 %v1250_v38, %v1248_v40  ;;  %v7047_v43 = vmin.u32 %v1546_v55, %v9101_v48  ;;  %vm1410_vm6 = vcmp.lt.s32.totalorder %v1389_v54, 3 }
 0x141   : > { %v1413_v31 = vsel %vm1411_vm13, %v1401_v58, 2102212464  ;;  %v1566_v24 = vsub.s32 4, %v9087_v11  ;;  %v1418_v51 = vsel %vm1410_vm6, %v1401_v58, %v1417_v34  ;;  %v1420_v14 = vsel %vm1408_vm9, %v1398_v33, %v1401_v58 }
 0x142   : > { %v1421_v42 = vsel %vm1411_vm13, %v1407_v18, 1326507024  ;;  %v11139_v1 = vand.u32 2147483647, %v8800_v17  ;;  %v1548_v53 = vclz %v7047_v43  ;;  %v1412_v40 = vsel %vm1408_vm9, %v1392_v27, %v1395_v57  ;;  %v9135_v18 = vpop.permute.xlu0 %609 }
 0x143   : > { %v1419_v7 = vsel %vm1409_vm15, %v1416_v37, %v1418_v51  ;;  %v1422_v62 = vsel %vm1410_vm6, %v1404_v59, %v1421_v42  ;;  %v1414_v38 = vsel %vm1410_vm6, %v1398_v33, %v1413_v31  ;;  %v9142_v57 = vsel %vm735_vm2, %v728_v20, %v672_v0 }
 0x144   : > { %vm9123_vm7 = vcmp.le.f32.partialorder %v11139_v1, 0.7853982  ;;  %v1423_v55 = vsel %vm1409_vm15, %v1420_v14, %v1422_v62  ;;  %v9131_v34 = vmul.u32.u64.low %v9111_v10, %v1419_v7  ;;  %v9132_v58 = vmul.u32.u64.high %v9111_v10, %v1419_v7, %v9131_v34  ;;  %11142 = vst [vmem:[#allocation14_spill] sm:$0xff] %v9142_v57 }
 0x145   : > { %v7048_v1 = vadd.s32 4294967294, %v1548_v53  ;;  %v9138_v56 = vmul.u32.u64.low %v9111_v10, %v1423_v55  ;;  %v9139_v5 = vmul.u32.u64.high %v9111_v10, %v1423_v55, %v9138_v56  ;;  %v9146_v33 = vpack.c.bf16 %v9067_v41, %v9073_v39 }
 0x146   : > { %v1360_v59 = vsel %vm8980_vm12, %v8673_v44, %v1357_v19  ;;  %v9152_v27 = vand.u32 3, %v9075_v36  ;;  %v1691_v37 = vand.u32 2139095040, %v9142_v57  ;;  %v1252_v43 = vxor.u32 2147483648, %v1251_v63  ;;  %v9165_v19 = vld [vmem:[%s8308_s14 + $0x40] sm:$0xff]  ;;  %v670_v0 = vpop.permute.xlu0 %669 }
 0x147   : > { %11143 = vst [vmem:[#allocation15_spill] sm:$0xff] %v9146_v33  ;;  %v1261_v56 = vadd.s32 3, %v9081_v61  ;;  %vm7049_vm10 = vcmp.lt.s32.totalorder %v7048_v1, 0  ;;  %v1415_v20 = vsel %vm1409_vm15, %v1412_v40, %v1414_v38  ;;  %v9158_v31 = vand.u32 3, %v9081_v61 }
 0x148   : > { %11144 = vst [vmem:[#allocation16_spill] sm:$0xff] %v9152_v27  ;;  %v1551_v41 = vsel %vm7049_vm10, 0, %v7048_v1  ;;  %v1434_v39 = vadd.s32 1, %v9132_v58  ;;  %v1692_v51 = vshrl.u32 %v1691_v37, 23  ;;  %8073 = vcosq.f32 %v1360_v59 }
 0x149   : > { %11145 = vst [vmem:[#allocation17_spill] sm:$0xff] %v9158_v31  ;;  %v1556_v26 = vsub.s32 4294967266, %v1551_v41  ;;  %v1567_v36 = vsel %vm1482_vm14, %v1566_v24, %v9087_v11  ;;  %v710_v54 = vsel %vm11108_vm0, %v9165_v19, %v9054_v29  ;;  %v1431_v14 = vmul.u32 %v9111_v10, %v1415_v20 }
 0x14a   : > { %vm1433_vm12 = vc.u32 %v9139_v5, %v9131_v34  ;;  %v11059_v61 = vand.u32 2147483647, %v9142_v57  ;;  %v7054_v42 = vadd.s32 4294967169, %v1692_v51  ;;  %v1253_v53 = vsel %vm1170_vm11, %v1252_v43, %v1251_v63  ;;  %v9193_v43 = vld [vmem:[%s8308_s14 + $0x58] sm:$0xff] }
 0x14b   : > { %v1552_v40 = vsub.s32 32, %v1551_v41  ;;  %v1435_v11 = vsel %vm1433_vm12, %v1434_v39, %v9132_v58  ;;  %v727_v24 = vsel %vm718_vm1, %v710_v54, %v606_v15  ;;  %v1557_v7 = vadd.s32 127, %v1556_v26 }
 0x14c   : > { %v1569_v29 = vsel %vm9123_vm7, 0, %v1567_v36  ;;  %v1436_v10 = vadd.s32 %v1435_v11, %v1431_v14  ;;  %v1698_v62 = vadd.s32 1, %v7054_v42  ;;  %8075 = vsinq.f32 %v1360_v59  ;;  %v9205_v36 = vld [vmem:[%s8308_s14 + $0x50] sm:$0xff] }
 0x14d   : > { %v9180_v38 = vand.u32 3, %v1261_v56  ;;  %v1536_v55 = vadd.s32 %v9026_v2, %v9034_v8  ;;  %v9185_v63 = vsel %vm735_vm2, %v727_v24, %v670_v0  ;;  %v1256_v58 = vsel %vm9017_vm5, %v8689_v3, %v1253_v53 }
 0x14e   : > { %v1437_v15 = vadd.s32 536870912, %v1436_v10  ;;  %v1695_v1 = vand.u32 8388607, %v11059_v61  ;;  %vm1699_vm11 = vcmp.gt.s32.totalorder %v1698_v62, 0  ;;  %v1573_v59 = vadd.s32 3, %v1569_v29 }
 0x14f   : > { %11146 = vst [vmem:[#allocation18_spill] sm:$0xff] %v9180_v38  ;;  %v1554_v37 = vshrl.u32 %v1536_v55, %v1552_v40  ;;  %v713_v8 = vsel %vm11108_vm0, %v9193_v43, %v9039_v60  ;;  %v1700_v2 = vsel %vm1699_vm11, %v1698_v62, 0  ;;  %v1558_v56 = vshll.u32 %v1557_v7, 23 }
 0x150   : > { %v9198_v20 = vshrl.u32 %v1437_v15, 30  ;;  %v1702_v47 = vand.u32 31, %v1700_v2  ;;  %v1587_v39 = vand.u32 2139095040, %v9185_v63  ;;  %8077 = vcosq.f32 %v1256_v58 }
 0x151   : > { %v1553_v51 = vshll.u32 %v9101_v48, %v1551_v41  ;;  %v9202_v26 = vand.u32 3, %v1569_v29  ;;  %v9210_v54 = vsel %vm11108_vm0, %v9205_v36, %v9085_v4  ;;  %8079 = vsinq.f32 %v1256_v58 }
 0x152   : > { %v1439_v60 = vshll.u32 %v9198_v20, 30  ;;  %v1696_v14 = vor.u32 8388608, %v1695_v1  ;;  %v1703_v42 = vsub.s32 32, %v1702_v47  ;;  %v9215_v53 = vand.u32 3, %v1573_v59 }
 0x153   : > { %11147 = vst [vmem:[#allocation19_spill] sm:$0xff] %v9202_v26  ;;  %v9213_v0 = vor.u32 %v1554_v37, %v1553_v51  ;;  %v9219_v48 = vadd.s32 %v9131_v34, %v9139_v5  ;;  %v9223_v41 = vsel %vm718_vm1, %v713_v8, %v9099_v16  ;;  %v1559_v40 = vor.u32 4788187, %v1558_v56 }
 0x154   : > { %11148 = vst [vmem:[#allocation20_spill] sm:$0xff] %v9215_v53  ;;  %v9225_v4 = vsub.s32 %v1436_v10, %v1439_v60  ;;  %v1706_v11 = vshrl.u32 %v11135_v28, %v1703_v42  ;;  %v1588_v24 = vshrl.u32 %v1587_v39, 23  ;;  %v1705_v7 = vshll.u32 %v11138_v50, %v1702_v47 }
 0x155   : > { %v1708_v29 = vshll.u32 %v11135_v28, %v1702_v47  ;;  %v11149_v62 = vmov 2131351028   ;;  %v11150_v58 = vmov 2102212464   ;;  %v9232_v5 = vpop.eup %8073  ;;  %v1701_v16 = vshrl.u32 %v1700_v2, 5 }
 0x156   : > { %v1709_v55 = vshrl.u32 %v11149_v62, %v1703_v42  ;;  %v1712_v15 = vshrl.u32 %v11150_v58, %v1703_v42  ;;  %11151 = vst [vmem:[#allocation21_spill] sm:$0xff] %v9232_v5  ;;  %v1442_v34 = vsub.s32 0, %v9225_v4  ;;  %v1711_v1 = vshll.u32 %v11149_v62, %v1702_v47 }
 0x157   : > { %v9236_v10 = vshll.u32 %v1696_v14, 8  ;;  %v1707_v37 = vor.u32 %v1706_v11, %v1705_v7  ;;  %v1714_v8 = vshll.u32 %v11150_v58, %v1702_v47  ;;  %v1715_v56 = vshrl.u32 %v11136_v12, %v1703_v42 }
 0x158   : > { %v1710_v59 = vor.u32 %v1709_v55, %v1708_v29  ;;  %v1560_v39 = vand.u32 2147483647, %v1559_v40  ;;  %v1562_v51 = vcvt.s32.f32 %v9213_v0  ;;  %v7043_v60 = vmin.u32 %v1442_v34, %v9225_v4 }
 0x159   : > { %v1713_v61 = vor.u32 %v1712_v15, %v1711_v1  ;;  %v1716_v26 = vor.u32 %v1715_v56, %v1714_v8  ;;  %v1717_v53 = vshll.u32 %v11136_v12, %v1702_v47  ;;  %v1718_v2 = vshrl.u32 %v11137_v6, %v1703_v42  ;;  %v9244_v14 = vpop.eup %8075 }
 0x15a   : > { %v7050_v31 = vadd.s32 4294967169, %v1588_v24  ;;  %11152 = vst [vmem:[#allocation22_spill] sm:$0xff] %v9244_v14  ;;  %v1444_v11 = vclz %v7043_v60  ;;  %v1704_v7 = vshrl.u32 %v11138_v50, %v1703_v42  ;;  %vm1720_vm5 = vcmp.lt.s32.totalorder %v1701_v16, 1 }
 0x15b   : > { %vm1721_vm8 = vcmp.lt.s32.totalorder %v1701_v16, 2  ;;  %vm1378_vm9 = vcmp.lt.s32.totalorder %v8905_v25, 0  ;;  %v1719_v40 = vor.u32 %v1718_v2, %v1717_v53  ;;  %vm1722_vm13 = vcmp.lt.s32.totalorder %v1701_v16, 3 }
 0x15c   : > { %vm1723_vm15 = vcmp.lt.s32.totalorder %v1701_v16, 4  ;;  %v1728_v0 = vsel %vm1720_vm5, %v1707_v37, %v1710_v59  ;;  %v7044_v29 = vadd.s32 4294967294, %v1444_v11  ;;  %v1732_v47 = vsel %vm1720_vm5, %v1710_v59, %v1713_v61 }
 0x15d   : > { %v1725_v55 = vsel %vm1723_vm15, %v1713_v61, 2102212464  ;;  %v1729_v15 = vsel %vm1723_vm15, %v1716_v26, 920167782  ;;  %v1724_v34 = vsel %vm1720_vm5, %v1704_v7, %v1707_v37  ;;  %v1733_v1 = vsel %vm1723_vm15, %v1719_v40, 1326507024  ;;  %v9249_v56 = vpop.eup %8077 }
 0x15e   : > { %v1730_v24 = vsel %vm1722_vm13, %v1713_v61, %v1729_v15  ;;  %v1594_v8 = vadd.s32 1, %v7050_v31  ;;  %11153 = vst [vmem:[#allocation23_spill] sm:$0xff] %v9249_v56  ;;  %v11154_v42 = vand.u32 2147483647, %v8905_v25  ;;  %vm7045_vm10 = vcmp.lt.s32.totalorder %v7044_v29, 0  ;;  %v9260_v37 = vpop.eup %8079 }
 0x15f   : > { %v1726_v53 = vsel %vm1722_vm13, %v1710_v59, %v1725_v55  ;;  %v1731_v2 = vsel %vm1721_vm8, %v1728_v0, %v1730_v24  ;;  %v1734_v11 = vsel %vm1722_vm13, %v1716_v26, %v1733_v1  ;;  %11157 = vst [vmem:[#allocation24_spill] sm:$0xff] %v9260_v37  ;;  %v1447_v61 = vsel %vm7045_vm10, 0, %v7044_v29  ;;  %v676_v55 = vpop.permute.xlu1 %675  ;;  %v674_v29 = vpop.permute.xlu0 %673 }
 0x160   : > { %vm9253_vm6 = vcmp.le.f32.partialorder %v11154_v42, 0.7853982  ;;  %v1735_v31 = vsel %vm1721_vm8, %v1732_v47, %v1734_v11  ;;  %v9264_v7 = vmul.u32.u64.low %v9236_v10, %v1731_v2  ;;  %v9265_v40 = vmul.u32.u64.high %v9236_v10, %v1731_v2, %v9264_v7 }
 0x161   : > { %v1448_v15 = vsub.s32 32, %v1447_v61  ;;  %v1452_v42 = vsub.s32 4294967266, %v1447_v61  ;;  %v1462_v5 = vsub.s32 4, %v9198_v20  ;;  %v1563_v0 = vmul.f32 %v1562_v51, %v1560_v39 }
 0x162   : > { %v9271_v26 = vmul.u32.u64.low %v9236_v10, %v1735_v31  ;;  %v9272_v24 = vmul.u32.u64.high %v9236_v10, %v1735_v31, %v9271_v26  ;;  %vm1595_vm12 = vcmp.gt.s32.totalorder %v1594_v8, 0  ;;  %v1727_v2 = vsel %vm1721_vm8, %v1724_v34, %v1726_v53 }
 0x163   : > { %v1450_v47 = vshrl.u32 %v9219_v48, %v1448_v15  ;;  %v1453_v1 = vadd.s32 127, %v1452_v42  ;;  %v1596_v11 = vsel %vm1595_vm12, %v1594_v8, 0  ;;  %v729_v14 = vsel %vm718_vm1, %v9210_v54, %v9135_v18 }
 0x164   : > { %v1746_v59 = vadd.s32 1, %v9265_v40  ;;  %v1598_v27 = vand.u32 31, %v1596_v11  ;;  %v9282_v39 = vsel %vm735_vm2, %v9223_v41, %v676_v55  ;;  %v1449_v51 = vshll.u32 %v9225_v4, %v1447_v61 }
 0x165   : > { %v1454_v31 = vshll.u32 %v1453_v1, 23  ;;  %v1463_v48 = vsel %vm1378_vm9, %v1462_v5, %v9198_v20  ;;  %v9289_v16 = vsel %vm735_vm2, %v729_v14, %v674_v29  ;;  %v1743_v34 = vmul.u32 %v9236_v10, %v1727_v2 }
 0x166   : > { %vm1745_vm11 = vc.u32 %v9272_v24, %v9264_v7  ;;  %v11158_v18 = vand.u32 2147483647, %v9185_v63  ;;  %v1599_v41 = vsub.s32 32, %v1598_v27  ;;  %v1564_v8 = vxor.u32 2147483648, %v1563_v0 }
 0x167   : > { %v1451_v53 = vor.u32 %v1450_v47, %v1449_v51  ;;  %v1455_v4 = vor.u32 4788187, %v1454_v31  ;;  %v1747_v61 = vsel %vm1745_vm11, %v1746_v59, %v9265_v40  ;;  %v1465_v20 = vsel %vm9253_vm6, 0, %v1463_v48 }
 0x168   : > { %v1591_v54 = vand.u32 8388607, %v11158_v18  ;;  %v1748_v5 = vadd.s32 %v1747_v61, %v1743_v34  ;;  %v1602_v14 = vshrl.u32 %v11135_v28, %v1599_v41  ;;  %v1605_v10 = vshrl.u32 %v11149_v62, %v1599_v41 }
 0x169   : > { %v9301_v15 = vshrl.u32 %v1596_v11, 5  ;;  %v1601_v42 = vshll.u32 %v11138_v50, %v1598_v27  ;;  %v1604_v55 = vshll.u32 %v11135_v28, %v1598_v27  ;;  %v1608_v26 = vshrl.u32 %v11150_v58, %v1599_v41 }
 0x16a   : > { %v1456_v29 = vand.u32 2147483647, %v1455_v4  ;;  %v1749_v47 = vadd.s32 536870912, %v1748_v5  ;;  %v1610_v40 = vshll.u32 %v11150_v58, %v1598_v27  ;;  %v1611_v59 = vshrl.u32 %v11136_v12, %v1599_v41 }
 0x16b   : > { %v1458_v1 = vcvt.s32.f32 %v1451_v53  ;;  %v1592_v2 = vor.u32 8388608, %v1591_v54  ;;  %v1607_v51 = vshll.u32 %v11149_v62, %v1598_v27  ;;  %v1614_v31 = vshrl.u32 %v11137_v6, %v1599_v41 }
 0x16c   : > { %v9310_v11 = vshrl.u32 %v1749_v47, 30  ;;  %v1603_v48 = vor.u32 %v1602_v14, %v1601_v42  ;;  %v1606_v34 = vor.u32 %v1605_v10, %v1604_v55  ;;  %v1612_v18 = vor.u32 %v1611_v59, %v1610_v40 }
 0x16d   : > { %v1469_v61 = vadd.s32 3, %v1465_v20  ;;  %v1609_v56 = vor.u32 %v1608_v26, %v1607_v51  ;;  %v1613_v4 = vshll.u32 %v11136_v12, %v1598_v27  ;;  %v11071_v44 = vand.u32 2147483647, %v9282_v39 }
 0x16e   : > { %v1565_v37 = vsel %vm1482_vm14, %v1564_v8, %v1563_v0  ;;  %v1459_v53 = vmul.f32 %v1458_v1, %v1456_v29  ;;  %v1751_v54 = vshll.u32 %v9310_v11, 30  ;;  %vm1619_vm5 = vcmp.lt.s32.totalorder %v9301_v15, 4 }
 0x16f   : > { %v1615_v38 = vor.u32 %v1614_v31, %v1613_v4  ;;  %vm1616_vm8 = vcmp.lt.s32.totalorder %v9301_v15, 1  ;;  %v1625_v14 = vsel %vm1619_vm5, %v1612_v18, 920167782  ;;  %v1899_v10 = vand.u32 2139095040, %v9282_v39 }
 0x170   : > { %v9322_v42 = vand.u32 3, %v1465_v20  ;;  %v9324_v27 = vsub.s32 %v1748_v5, %v1751_v54  ;;  %vm1618_vm13 = vcmp.lt.s32.totalorder %v9301_v15, 3  ;;  %v1624_v0 = vsel %vm1616_vm8, %v1603_v48, %v1606_v34  ;;  %v8007_v5 = vld [vmem:[%s11015_s2 + $0x8] sm:$0xff]  }
 0x171   : > { %v1568_v8 = vsel %vm9123_vm7, %v8800_v17, %v1565_v37  ;;  %v1600_v55 = vshrl.u32 %v11138_v50, %v1599_v41  ;;  %v1621_v26 = vsel %vm1619_vm5, %v1609_v56, 2102212464  ;;  %v1626_v20 = vsel %vm1618_vm13, %v1609_v56, %v1625_v14  ;;  %7562 = vmatprep.subr.bf16.mxu0 %v8007_v5  ;;  %v8009_v14 = vld [vmem:[%s11015_s2] sm:$0xff]  }
 0x172   : > { %11159 = vst [vmem:[#allocation25_spill] sm:$0xff] %v9322_v42  ;;  %v1460_v29 = vxor.u32 2147483648, %v1459_v53  ;;  %v1754_v47 = vsub.s32 0, %v9324_v27  ;;  %vm1617_vm14 = vcmp.lt.s32.totalorder %v9301_v15, 2  ;;  %v1628_v35 = vsel %vm1616_vm8, %v1606_v34, %v1609_v56  ;;  %7563 = vmatpush3.bf16.msra.mxu0 %v8007_v5 }
 0x173   : > { %vm1690_vm7 = vcmp.lt.s32.totalorder %v9142_v57, 0  ;;  %v1627_v37 = vsel %vm1617_vm14, %v1624_v0, %v1626_v20  ;;  %v1629_v41 = vsel %vm1619_vm5, %v1615_v38, 1326507024  ;;  %v1632_v40 = vshll.u32 %v1592_v2, 8  ;;  %7564 = vmatprep.subr.bf16.mxu0 %v8009_v14 }
 0x174   : > { %v1900_v59 = vshrl.u32 %v1899_v10, 23  ;;  %v7055_v1 = vmin.u32 %v1754_v47, %v9324_v27  ;;  %v1620_v51 = vsel %vm1616_vm8, %v1600_v55, %v1603_v48  ;;  %v1622_v31 = vsel %vm1618_vm13, %v1606_v34, %v1621_v26 }
 0x175   : > { %v1630_v56 = vsel %vm1618_vm13, %v1612_v18, %v1629_v41  ;;  %v9358_v54 = vmul.u32.u64.low %v1632_v40, %v1627_v37  ;;  %v9359_v38 = vmul.u32.u64.high %v1632_v40, %v1627_v37, %v9358_v54  ;;  %v1461_v48 = vsel %vm1378_vm9, %v1460_v29, %v1459_v53  ;;  %v9373_v18 = vld [vmem:[%s11014_s1] sm:$0xf] }
 0x176   : > { %v1631_v4 = vsel %vm1617_vm14, %v1628_v35, %v1630_v56  ;;  %v7062_v2 = vadd.s32 4294967169, %v1900_v59  ;;  %v1756_v34 = vclz %v7055_v1  ;;  %8081 = vcosq.f32 %v1568_v8  ;;  %7565 = vmatpush3.bf16.msra.mxu0 %v8009_v14 }
 0x177   : > { %v9367_v10 = vmul.u32.u64.low %v1632_v40, %v1631_v4  ;;  %v9368_v0 = vmul.u32.u64.high %v1632_v40, %v1631_v4, %v9367_v10  ;;  %v9375_v55 = vand.u32 3, %v1469_v61  ;;  %v1623_v26 = vsel %vm1617_vm14, %v1620_v51, %v1622_v31 }
 0x178   : > { %v1906_v20 = vadd.s32 1, %v7062_v2  ;;  %8083 = vsinq.f32 %v1568_v8  ;;  %v7056_v5 = vadd.s32 4294967294, %v1756_v34  ;;  %v1774_v53 = vsub.s32 4, %v9310_v11 }
 0x179   : > { %11160 = vst [vmem:[#allocation26_spill] sm:$0xff] %v9375_v55  ;;  %vm11109_vm9 = vcmask 1043456   ;;  %v9383_v29 = vsel %vm9253_vm6, %v8905_v25, %v1461_v48  ;;  %v1642_v47 = vadd.s32 1, %v9359_v38  ;;  %v1903_v61 = vand.u32 8388607, %v11071_v44 }
 0x17a   : > { %vm1907_vm15 = vcmp.gt.s32.totalorder %v1906_v20, 0  ;;  %7922 = vmatprep.subr.msk.bf16.mxu1 %vm11109_vm9, %v9373_v18  ;;  %vm7057_vm10 = vcmp.lt.s32.totalorder %v7056_v5, 0  ;;  %v1639_v15 = vmul.u32 %v1632_v40, %v1623_v26  ;;  %vm1641_vm12 = vc.u32 %v9368_v0, %v9358_v54 }
 0x17b   : > { %v1908_v8 = vsel %vm1907_vm15, %v1906_v20, 0  ;;  %v11161_v35 = vand.u32 2147483647, %v9142_v57  ;;  %v1744_v37 = vadd.s32 %v9264_v7, %v9272_v24  ;;  %v1759_v41 = vsel %vm7057_vm10, 0, %v7056_v5 }
 0x17c   : > { %v1643_v59 = vsel %vm1641_vm12, %v1642_v47, %v9359_v38  ;;  %v1910_v1 = vand.u32 31, %v1908_v8  ;;  %v1760_v51 = vsub.s32 32, %v1759_v41  ;;  %v1764_v31 = vsub.s32 4294967266, %v1759_v41 }
 0x17d   : > { %vm9394_vm11 = vcmp.le.f32.partialorder %v11161_v35, 0.7853982  ;;  %v1775_v40 = vsel %vm1690_vm7, %v1774_v53, %v9310_v11  ;;  %v1644_v56 = vadd.s32 %v1643_v59, %v1639_v15  ;;  %8085 = vcosq.f32 %v9383_v29 }
 0x17e   : > { %v1904_v4 = vor.u32 8388608, %v1903_v61  ;;  %v1911_v2 = vsub.s32 32, %v1910_v1  ;;  %v1795_v14 = vand.u32 2139095040, %v9289_v16  ;;  %v1761_v48 = vshll.u32 %v9324_v27, %v1759_v41 }
 0x17f   : > { %v1762_v7 = vshrl.u32 %v1744_v37, %v1760_v51  ;;  %v1765_v24 = vadd.s32 127, %v1764_v31  ;;  %v1645_v34 = vadd.s32 536870912, %v1644_v56  ;;  %v1913_v38 = vshll.u32 %v11138_v50, %v1910_v1 }
 0x180   : > { %v1914_v10 = vshrl.u32 %v11135_v28, %v1911_v2  ;;  %v1917_v26 = vshrl.u32 %v11149_v62, %v1911_v2  ;;  %v1920_v11 = vshrl.u32 %v11150_v58, %v1911_v2  ;;  %v1916_v53 = vshll.u32 %v11135_v28, %v1910_v1 }
 0x181   : > { %v1766_v20 = vshll.u32 %v1765_v24, 23  ;;  %v1646_v5 = vshrl.u32 %v1645_v34, 30  ;;  %v1923_v47 = vshrl.u32 %v11136_v12, %v1911_v2  ;;  %v1763_v61 = vor.u32 %v1762_v7, %v1761_v48 }
 0x182   : > { %v1909_v15 = vshrl.u32 %v1908_v8, 5  ;;  %v1919_v27 = vshll.u32 %v11149_v62, %v1910_v1  ;;  %v1922_v35 = vshll.u32 %v11150_v58, %v1910_v1  ;;  %v1915_v59 = vor.u32 %v1914_v10, %v1913_v38 }
 0x183   : > { %v1767_v37 = vor.u32 4788187, %v1766_v20  ;;  %v1647_v41 = vshll.u32 %v1646_v5, 30  ;;  %v1918_v51 = vor.u32 %v1917_v26, %v1916_v53  ;;  %v1925_v42 = vshll.u32 %v11136_v12, %v1910_v1  ;;  %v9417_v34 = vpop.eup %8081 }
 0x184   : > { %v1921_v31 = vor.u32 %v1920_v11, %v1919_v27  ;;  %v1924_v44 = vor.u32 %v1923_v47, %v1922_v35  ;;  %v1926_v24 = vshrl.u32 %v11137_v6, %v1911_v2  ;;  %11164 = vst [vmem:[#allocation27_spill] sm:$0xff] %v9417_v34  ;;  %v1777_v8 = vsel %vm9394_vm11, 0, %v1775_v40 }
 0x185   : > { %v1768_v55 = vand.u32 2147483647, %v1767_v37  ;;  %vm1586_vm6 = vcmp.lt.s32.totalorder %v9185_v63, 0  ;;  %v9422_v48 = vsub.s32 %v1644_v56, %v1647_v41  ;;  %v9424_v7 = vshll.u32 %v1904_v4, 8  ;;  %v9426_v38 = vpop.eup %8083 }
 0x186   : > { %11165 = vst [vmem:[#allocation28_spill] sm:$0xff] %v9426_v38  ;;  %v1770_v10 = vcvt.s32.f32 %v1763_v61  ;;  %v1912_v26 = vshrl.u32 %v11138_v50, %v1911_v2  ;;  %v1927_v1 = vor.u32 %v1926_v24, %v1925_v42  ;;  %v1796_v11 = vshrl.u32 %v1795_v14, 23  ;;  %v552_v38 = vpop.permute.xlu1 %551 }
 0x187   : > { %v1650_v20 = vsub.s32 0, %v9422_v48  ;;  %v1670_v53 = vsub.s32 4, %v1646_v5  ;;  %vm1928_vm5 = vcmp.lt.s32.totalorder %v1909_v15, 1  ;;  %vm1931_vm8 = vcmp.lt.s32.totalorder %v1909_v15, 4 }
 0x188   : > { %v1771_v47 = vmul.f32 %v1770_v10, %v1768_v55  ;;  %v11166_v40 = vand.u32 2147483647, %v9185_v63  ;;  %v1933_v4 = vsel %vm1931_vm8, %v1921_v31, 2102212464  ;;  %v1936_v27 = vsel %vm1928_vm5, %v1915_v59, %v1918_v51 }
 0x189   : > { %v1937_v35 = vsel %vm1931_vm8, %v1924_v44, 920167782  ;;  %v7051_v61 = vmin.u32 %v1650_v20, %v9422_v48  ;;  %vm1929_vm14 = vcmp.lt.s32.totalorder %v1909_v15, 2  ;;  %vm1930_vm15 = vcmp.lt.s32.totalorder %v1909_v15, 3 }
 0x18a   : > { %vm9432_vm13 = vcmp.le.f32.partialorder %v11166_v40, 0.7853982  ;;  %v1940_v42 = vsel %vm1928_vm5, %v1918_v51, %v1921_v31  ;;  %v1932_v2 = vsel %vm1928_vm5, %v1912_v26, %v1915_v59  ;;  %v1938_v14 = vsel %vm1930_vm15, %v1921_v31, %v1937_v35  ;;  %v9437_v24 = vpop.eup %8085  ;;  %v8189_v35 = vld [vmem:[%s8308_s14] sm:$0xff] }
 0x18b   : > { %v1941_v37 = vsel %vm1931_vm8, %v1927_v1, 1326507024  ;;  %v7058_v41 = vadd.s32 4294967169, %v1796_v11  ;;  %11169 = vst [vmem:[#allocation29_spill] sm:$0xff] %v9437_v24  ;;  %v1652_v55 = vclz %v7051_v61  ;;  %v1934_v10 = vsel %vm1930_vm15, %v1918_v51, %v1933_v4  ;;  %v9457_v4 = vpop.permute.xlu0 %549  ;;  %v8190_v61 = vld [vmem:[%s8308_s14 + $0x8] sm:$0xff] }
 0x18c   : > { %v1939_v40 = vsel %vm1929_vm14, %v1936_v27, %v1938_v14  ;;  %v1942_v34 = vsel %vm1930_vm15, %v1924_v44, %v1941_v37  ;;  %v1772_v17 = vxor.u32 2147483648, %v1771_v47  ;;  %8087 = vsinq.f32 %v9383_v29  ;;  %v8008_v44 = vld [vmem:[%s11016_s3 + $0x8] sm:$0xff]  }
 0x18d   : > { %v1943_v20 = vsel %vm1929_vm14, %v1940_v42, %v1942_v34  ;;  %v9442_v25 = vmul.u32.u64.low %v9424_v7, %v1939_v40  ;;  %v9443_v33 = vmul.u32.u64.high %v9424_v7, %v1939_v40, %v9442_v25  ;;  %v7052_v59 = vadd.s32 4294967294, %v1652_v55  ;;  %v8191_v55 = vld [vmem:[%s8308_s14 + $0x10] sm:$0xff] }
 0x18e   : > { %v9448_v31 = vmul.u32.u64.low %v9424_v7, %v1943_v20  ;;  %v9449_v51 = vmul.u32.u64.high %v9424_v7, %v1943_v20, %v9448_v31  ;;  %v1781_v26 = vadd.s32 3, %v1777_v8  ;;  %v1671_v34 = vsel %vm1586_vm6, %v1670_v53, %v1646_v5 }
 0x18f   : > { %v1935_v1 = vsel %vm1929_vm14, %v1932_v2, %v1934_v10  ;;  %v1802_v11 = vadd.s32 1, %v7058_v41  ;;  %vm7053_vm10 = vcmp.lt.s32.totalorder %v7052_v59, 0  ;;  %v11081_v29 = vand.u32 2147483647, %v9289_v16  ;;  %v9476_v41 = vpop.permute.xlu1 %555 }
 0x190   : > { %v4255_v27 = vsel %vm11109_vm9, %v9373_v18, 0  ;;  %v9464_v42 = vpack.c.bf16 %v8190_v61, %v8189_v35  ;;  %v1773_v14 = vsel %vm1690_vm7, %v1772_v17, %v1771_v47  ;;  %v1655_v5 = vsel %vm7053_vm10, 0, %v7052_v59 }
 0x191   : > { %v1954_v15 = vadd.s32 1, %v9443_v33  ;;  %vm1803_vm12 = vcmp.gt.s32.totalorder %v1802_v11, 0  ;;  %7583 = vmatpush3.bf16.msra.mxu1 %v4255_v27  ;;  %v9469_v53 = vand.u32 3, %v1777_v8  ;;  %v1660_v2 = vsub.s32 4294967266, %v1655_v5  ;;  %v8192_v8 = vld [vmem:[%s8308_s14 + $0x18] sm:$0xff]  ;;  %v9496_v27 = vpop.permute.xlu0 %553 }
 0x192   : > { %11170 = vst [vmem:[#allocation30_spill] sm:$0xff] %v9464_v42  ;;  %v1673_v18 = vsel %vm9432_vm13, 0, %v1671_v34  ;;  %v1951_v37 = vmul.u32 %v9424_v7, %v1935_v1  ;;  %7584 = vmatprep.mubr.msk.bf16.mxu1 %vm11108_vm0, %v9464_v42  ;;  %7600 = vmatprep.subr.bf16.mxu1 %v8008_v44  ;;  %v1656_v17 = vsub.s32 32, %v1655_v5  ;;  %vm1953_vm7 = vc.u32 %v9449_v51, %v9442_v25 }
 0x193   : > { %11171 = vst [vmem:[#allocation31_spill] sm:$0xff] %v9469_v53  ;;  %v1804_v47 = vsel %vm1803_vm12, %v1802_v11, 0  ;;  %v9482_v10 = vpack.c.bf16 %v8192_v8, %v8191_v55  ;;  %v1776_v7 = vsel %vm9394_vm11, %v9142_v57, %v1773_v14  ;;  %v1661_v40 = vadd.s32 127, %v1660_v2 }
 0x194   : > { %v1955_v20 = vsel %vm1953_vm7, %v1954_v15, %v9443_v33  ;;  %v1799_v59 = vand.u32 8388607, %v11081_v29  ;;  %v9490_v31 = vand.u32 3, %v1781_v26  ;;  %v1640_v34 = vadd.s32 %v9358_v54, %v9368_v0  ;;  %v9501_v33 = vld [vmem:[%s8308_s14 + $0x68] sm:$0xff] }
 0x195   : > { %11172 = vst [vmem:[#allocation32_spill] sm:$0xff] %v9482_v10  ;;  %v1956_v1 = vadd.s32 %v1955_v20, %v1951_v37  ;;  %v1806_v11 = vand.u32 31, %v1804_v47  ;;  %7585 = vmatmul.mubr.msk.bf16.vlgmr.msra.gmra.mxu1 %vm11108_vm0, %v9482_v10  ;;  %v1662_v60 = vshll.u32 %v1661_v40, 23  ;;  %v1677_v35 = vadd.s32 3, %v1673_v18  ;;  %v9523_v10 = vpop.permute.xlu0 %613 }
 0x196   : > { %11173 = vst [vmem:[#allocation33_spill] sm:$0xff] %v9490_v31  ;;  %v9498_v61 = vand.u32 3, %v1673_v18  ;;  %v9505_v26 = vsel %vm11108_vm0, %v9501_v33, %v552_v38  ;;  %7601 = vmatpush3.bf16.msra.mxu1 %v8008_v44  ;;  %8089 = vcosq.f32 %v1776_v7  ;;  %v1658_v54 = vshrl.u32 %v1640_v34, %v1656_v17  ;;  %v9511_v18 = vpop.permute.xlu1 %615 }
 0x197   : > { %v1957_v0 = vadd.s32 536870912, %v1956_v1  ;;  %v1807_v14 = vsub.s32 32, %v1806_v11  ;;  %v1657_v15 = vshll.u32 %v9422_v48, %v1655_v5  ;;  %v1800_v2 = vor.u32 8388608, %v1799_v59 }
 0x198   : > { %11174 = vst [vmem:[#allocation34_spill] sm:$0xff] %v9498_v61  ;;  %v9508_v37 = vshrl.u32 %v1804_v47, 5  ;;  %v1809_v55 = vshll.u32 %v11138_v50, %v1806_v11  ;;  %v1812_v38 = vshll.u32 %v11135_v28, %v1806_v11  ;;  %v1663_v20 = vor.u32 4788187, %v1662_v60 }
 0x199   : > { %v1958_v8 = vshrl.u32 %v1957_v0, 30  ;;  %v1810_v40 = vshrl.u32 %v11135_v28, %v1807_v14  ;;  %v1813_v44 = vshrl.u32 %v11149_v62, %v1807_v14  ;;  %v1816_v17 = vshrl.u32 %v11150_v58, %v1807_v14  ;;  %v9519_v5 = vpop.eup %8087 }
 0x19a   : > { %v1818_v34 = vshll.u32 %v11150_v58, %v1806_v11  ;;  %v1819_v48 = vshrl.u32 %v11136_v12, %v1807_v14  ;;  %11175 = vst [vmem:[#allocation35_spill] sm:$0xff] %v9519_v5  ;;  %v1659_v47 = vor.u32 %v1658_v54, %v1657_v15  ;;  %v1815_v0 = vshll.u32 %v11149_v62, %v1806_v11 }
 0x19b   : > { %v1959_v59 = vshll.u32 %v1958_v8, 30  ;;  %v1821_v29 = vshll.u32 %v11136_v12, %v1806_v11  ;;  %vm1898_vm11 = vcmp.lt.s32.totalorder %v9282_v39, 0  ;;  %v1811_v60 = vor.u32 %v1810_v40, %v1809_v55  ;;  %v9534_v11 = vld [vmem:[%s8308_s14 + $0x60] sm:$0xff]  ;;  %v9539_v40 = vpop.permute.xlu1 %619 }
 0x19c   : > { %v1814_v42 = vor.u32 %v1813_v44, %v1812_v38  ;;  %v1820_v53 = vor.u32 %v1819_v48, %v1818_v34  ;;  %v1822_v61 = vshrl.u32 %v11137_v6, %v1807_v14  ;;  %8091 = vsinq.f32 %v1776_v7 }
 0x19d   : > { %v9527_v31 = vand.u32 3, %v1677_v35  ;;  %v9529_v57 = vsub.s32 %v1956_v1, %v1959_v59  ;;  %v1817_v54 = vor.u32 %v1816_v17, %v1815_v0  ;;  %v1664_v15 = vand.u32 2147483647, %v1663_v20  ;;  %v9556_v17 = vpop.permute.xlu0 %617 }
 0x19e   : > { %v1823_v24 = vor.u32 %v1822_v61, %v1821_v29  ;;  %v9531_v5 = vshll.u32 %v1800_v2, 8  ;;  %v714_v55 = vsel %vm11108_vm0, %v9534_v11, %v9457_v4  ;;  %v11177_v38 = vand.u32 2147483647, %v9282_v39 }
 0x19f   : > { %11176 = vst [vmem:[#allocation36_spill] sm:$0xff] %v9527_v31  ;;  %v1962_v1 = vsub.s32 0, %v9529_v57  ;;  %vm1824_vm8 = vcmp.lt.s32.totalorder %v9508_v37, 1  ;;  %vm1825_vm14 = vcmp.lt.s32.totalorder %v9508_v37, 2  ;;  %vm1827_vm15 = vcmp.lt.s32.totalorder %v9508_v37, 4 }
 0x1a0   : > { %vm9543_vm5 = vcmp.le.f32.partialorder %v11177_v38, 0.7853982  ;;  %v1666_v29 = vcvt.s32.f32 %v1659_v47  ;;  %v1808_v35 = vshrl.u32 %v11138_v50, %v1807_v14  ;;  %v1832_v4 = vsel %vm1824_vm8, %v1811_v60, %v1814_v42 }
 0x1a1   : > { %v1833_v61 = vsel %vm1827_vm15, %v1820_v53, 920167782  ;;  %v7063_v2 = vmin.u32 %v1962_v1, %v9529_v57  ;;  %v1982_v44 = vsub.s32 4, %v1958_v8  ;;  %vm1826_vm10 = vcmp.lt.s32.totalorder %v9508_v37, 3 }
 0x1a2   : > { %v1829_v20 = vsel %vm1827_vm15, %v1817_v54, 2102212464  ;;  %v1667_v34 = vmul.f32 %v1666_v29, %v1664_v15  ;;  %v1834_v48 = vsel %vm1826_vm10, %v1817_v54, %v1833_v61  ;;  %v1836_v59 = vsel %vm1824_vm8, %v1814_v42, %v1817_v54  ;;  %v680_v61 = vpop.permute.xlu1 %679 }
 0x1a3   : > { %v1837_v47 = vsel %vm1827_vm15, %v1823_v24, 1326507024  ;;  %v1964_v14 = vclz %v7063_v2  ;;  %v1828_v0 = vsel %vm1824_vm8, %v1808_v35, %v1811_v60  ;;  %v1835_v38 = vsel %vm1825_vm14, %v1832_v4, %v1834_v48  ;;  %v9564_v31 = vpop.eup %8089  ;;  %v8196_v48 = vld [vmem:[%s8308_s14 + $0x20] sm:$0xff] }
 0x1a4   : > { %v1838_v1 = vsel %vm1826_vm10, %v1820_v53, %v1837_v47  ;;  %v1830_v15 = vsel %vm1826_vm10, %v1814_v42, %v1829_v20  ;;  %v9569_v24 = vmul.u32.u64.low %v9531_v5, %v1835_v38  ;;  %v9570_v54 = vmul.u32.u64.high %v9531_v5, %v1835_v38, %v9569_v24  ;;  %v8195_v20 = vld [vmem:[%s8308_s14 + $0x28] sm:$0xff]  ;;  %v8197_v47 = vld [vmem:[%s8308_s14 + $0x38] sm:$0xff] }
 0x1a5   : > { %v1839_v29 = vsel %vm1825_vm14, %v1836_v59, %v1838_v1  ;;  %v7064_v60 = vadd.s32 4294967294, %v1964_v14  ;;  %v1983_v35 = vsel %vm1898_vm11, %v1982_v44, %v1958_v8  ;;  %v1952_v42 = vadd.s32 %v9442_v25, %v9449_v51  ;;  %v8198_v14 = vld [vmem:[%s8308_s14 + $0x30] sm:$0xff]  ;;  %v9595_v44 = vld [vmem:[%s8308_s14 + $0x78] sm:$0xff] }
 0x1a6   : > { %v9576_v4 = vmul.u32.u64.low %v9531_v5, %v1839_v29  ;;  %v9577_v53 = vmul.u32.u64.high %v9531_v5, %v1839_v29, %v9576_v4  ;;  %v732_v2 = vsel %vm718_vm1, %v9505_v26, %v9511_v18  ;;  %v9586_v59 = vpack.c.bf16 %v8195_v20, %v8196_v48  ;;  %v678_v26 = vpop.permute.xlu0 %677 }
 0x1a7   : > { %v9590_v38 = vpack.c.bf16 %v8197_v47, %v8198_v14  ;;  %vm7065_vm12 = vcmp.lt.s32.totalorder %v7064_v60, 0  ;;  %v1831_v8 = vsel %vm1825_vm14, %v1828_v0, %v1830_v15  ;;  %v9600_v25 = vsel %vm11108_vm0, %v9595_v44, %v9476_v41 }
 0x1a8   : > { %11180 = vst [vmem:[#allocation37_spill] sm:$0xff] %v9586_v59  ;;  %v9603_v51 = vsel %vm735_vm2, %v732_v2, %v680_v61  ;;  %v1668_v18 = vxor.u32 2147483648, %v1667_v34  ;;  %v1967_v1 = vsel %vm7065_vm12, 0, %v7064_v60  ;;  %v1985_v29 = vsel %vm9543_vm5, 0, %v1983_v35  ;;  %7588 = vmatprep.mubr.msk.bf16.mxu1 %vm11108_vm0, %v9586_v59 }
 0x1a9   : > { %11181 = vst [vmem:[#allocation38_spill] sm:$0xff] %v9590_v38  ;;  %v1850_v4 = vadd.s32 1, %v9570_v54  ;;  %v1968_v37 = vsub.s32 32, %v1967_v1  ;;  %v1972_v0 = vsub.s32 4294967266, %v1967_v1  ;;  %v731_v41 = vsel %vm718_vm1, %v714_v55, %v9523_v10  ;;  %7589 = vmatmul.mubr.msk.bf16.gmra.mxu1 %vm11108_vm0, %v9590_v38  ;;  %v9615_v61 = vpop.eup %8091 }
 0x1aa   : > { %v1847_v60 = vmul.u32 %v9531_v5, %v1831_v8  ;;  %vm1849_vm7 = vc.u32 %v9577_v53, %v9569_v24  ;;  %v2107_v35 = vand.u32 2139095040, %v9603_v51  ;;  %v9622_v2 = vsel %vm735_vm2, %v731_v41, %v678_v26 }
 0x1ab   : > { %v1969_v20 = vshll.u32 %v9529_v57, %v1967_v1  ;;  %v1970_v10 = vshrl.u32 %v1952_v42, %v1968_v37  ;;  %v1973_v55 = vadd.s32 127, %v1972_v0  ;;  %vm1794_vm8 = vcmp.lt.s32.totalorder %v9289_v16, 0 }
 0x1ac   : > { %v1851_v48 = vsel %vm1849_vm7, %v1850_v4, %v9570_v54  ;;  %v1669_v5 = vsel %vm1586_vm6, %v1668_v18, %v1667_v34  ;;  %v1989_v47 = vadd.s32 3, %v1985_v29  ;;  %v2108_v8 = vshrl.u32 %v2107_v35, 23  ;;  %v9641_v34 = vld [vmem:[%s8308_s14 + $0x70] sm:$0xff] }
 0x1ad   : > { %v1852_v14 = vadd.s32 %v1851_v48, %v1847_v60  ;;  %v1971_v15 = vor.u32 %v1970_v10, %v1969_v20  ;;  %v1974_v38 = vshll.u32 %v1973_v55, 23  ;;  %v11182_v26 = vand.u32 2147483647, %v9603_v51  ;;  %v8010_v20 = vld [vmem:[%s11016_s3] sm:$0xff]  }
 0x1ae   : > { %v2003_v57 = vand.u32 2139095040, %v9622_v2  ;;  %v9632_v1 = vand.u32 3, %v1985_v29  ;;  %v11184_v42 = vand.u32 2147483647, %v9289_v16  ;;  %v716_v18 = vsel %vm11108_vm0, %v9641_v34, %v9496_v27  ;;  %7602 = vmatprep.subr.bf16.mxu1 %v8010_v20 }
 0x1af   : > { %v2111_v41 = vand.u32 8388607, %v11182_v26  ;;  %v1853_v54 = vadd.s32 536870912, %v1852_v14  ;;  %v7070_v4 = vadd.s32 4294967169, %v2108_v8  ;;  %v1672_v0 = vsel %vm9432_vm13, %v9185_v63, %v1669_v5  ;;  %7603 = vmatpush3.bf16.msra.mxu1 %v8010_v20 }
 0x1b0   : > { %11183 = vst [vmem:[#allocation39_spill] sm:$0xff] %v9632_v1  ;;  %vm9636_vm14 = vcmp.le.f32.partialorder %v11184_v42, 0.7853982  ;;  %v1975_v29 = vor.u32 4788187, %v1974_v38  ;;  %v2004_v35 = vshrl.u32 %v2003_v57, 23  ;;  %v9657_v27 = vpack.c.bf16 %v9104_v9, %v9165_v19 }
 0x1b1   : > { %v11093_v60 = vand.u32 2147483647, %v9622_v2  ;;  %v9653_v10 = vand.u32 3, %v1989_v47  ;;  %v1854_v55 = vshrl.u32 %v1853_v54, 30  ;;  %v2114_v48 = vadd.s32 1, %v7070_v4 }
 0x1b2   : > { %11188 = vst [vmem:[#allocation41_spill] sm:$0xff] %v9657_v27  ;;  %v1976_v8 = vand.u32 2147483647, %v1975_v29  ;;  %v1978_v26 = vcvt.s32.f32 %v1971_v15  ;;  %v2112_v56 = vor.u32 8388608, %v2111_v41  ;;  %v9661_v38 = vpack.c.bf16 %v9193_v43, %v9205_v36  ;;  %7592 = vmatprep.mubr.msk.bf16.mxu1 %vm11108_vm0, %v9657_v27  ;;  %v684_v41 = vpop.permute.xlu1 %683 }
 0x1b3   : > { %11187 = vst [vmem:[#allocation40_spill] sm:$0xff] %v9653_v10  ;;  %v1855_v5 = vshll.u32 %v1854_v55, 30  ;;  %v1878_v57 = vsub.s32 4, %v1854_v55  ;;  %vm2115_vm6 = vcmp.gt.s32.totalorder %v2114_v48, 0  ;;  %v7066_v42 = vadd.s32 4294967169, %v2004_v35 }
 0x1b4   : > { %11189 = vst [vmem:[#allocation42_spill] sm:$0xff] %v9661_v38  ;;  %8093 = vcosq.f32 %v1672_v0  ;;  %v1979_v47 = vmul.f32 %v1978_v26, %v1976_v8  ;;  %v2116_v9 = vsel %vm2115_vm6, %v2114_v48, 0  ;;  %v9667_v19 = vand.u32 8388607, %v11093_v60  ;;  %7593 = vmatmul.mubr.msk.bf16.gmra.mxu1 %vm11108_vm0, %v9661_v38 }
 0x1b5   : > { %8095 = vsinq.f32 %v1672_v0  ;;  %v9671_v43 = vsub.s32 %v1852_v14, %v1855_v5  ;;  %v1879_v36 = vsel %vm1794_vm8, %v1878_v57, %v1854_v55  ;;  %v2118_v15 = vand.u32 31, %v2116_v9 }
 0x1b6   : > { %v1980_v54 = vxor.u32 2147483648, %v1979_v47  ;;  %v1848_v4 = vadd.s32 %v9569_v24, %v9577_v53  ;;  %v734_v29 = vsel %vm718_vm1, %v9600_v25, %v9539_v40  ;;  %v9682_v35 = vsel %vm718_vm1, %v716_v18, %v9556_v17 }
 0x1b7   : > { %v1858_v14 = vsub.s32 0, %v9671_v43  ;;  %v2119_v0 = vsub.s32 32, %v2118_v15  ;;  %v9685_v20 = vshll.u32 %v2112_v56, 8  ;;  %v2010_v55 = vadd.s32 1, %v7066_v42 }
 0x1b8   : > { %v1881_v48 = vsel %vm9636_vm14, 0, %v1879_v36  ;;  %v2117_v8 = vshrl.u32 %v2116_v9, 5  ;;  %v2008_v24 = vor.u32 8388608, %v9667_v19  ;;  %v9691_v53 = vsel %vm735_vm2, %v734_v29, %v684_v41 }
 0x1b9   : > { %v1981_v40 = vsel %vm1898_vm11, %v1980_v54, %v1979_v47  ;;  %v7059_v17 = vmin.u32 %v1858_v14, %v9671_v43  ;;  %v2121_v25 = vshll.u32 %v11138_v50, %v2118_v15  ;;  %v2124_v18 = vshll.u32 %v11135_v28, %v2118_v15 }
 0x1ba   : > { %v2122_v26 = vshrl.u32 %v11135_v28, %v2119_v0  ;;  %v2125_v56 = vshrl.u32 %v11149_v62, %v2119_v0  ;;  %v2127_v5 = vshll.u32 %v11149_v62, %v2118_v15  ;;  %v2128_v57 = vshrl.u32 %v11150_v58, %v2119_v0 }
 0x1bb   : > { %v1860_v42 = vclz %v7059_v17  ;;  %v2130_v9 = vshll.u32 %v11150_v58, %v2118_v15  ;;  %v2131_v19 = vshrl.u32 %v11136_v12, %v2119_v0  ;;  %vm2011_vm1 = vcmp.gt.s32.totalorder %v2010_v55, 0 }
 0x1bc   : > { %v9707_v47 = vsel %vm9543_vm5, %v9282_v39, %v1981_v40  ;;  %v2123_v36 = vor.u32 %v2122_v26, %v2121_v25  ;;  %v2126_v41 = vor.u32 %v2125_v56, %v2124_v18  ;;  %v2129_v54 = vor.u32 %v2128_v57, %v2127_v5 }
 0x1bd   : > { %v7060_v29 = vadd.s32 4294967294, %v1860_v42  ;;  %v2132_v14 = vor.u32 %v2131_v19, %v2130_v9  ;;  %v2133_v60 = vshll.u32 %v11136_v12, %v2118_v15  ;;  %v2134_v38 = vshrl.u32 %v11137_v6, %v2119_v0 }
 0x1be   : > { %v2120_v17 = vshrl.u32 %v11138_v50, %v2119_v0  ;;  %vm2136_vm13 = vcmp.lt.s32.totalorder %v2117_v8, 1  ;;  %vm2137_vm11 = vcmp.lt.s32.totalorder %v2117_v8, 2  ;;  %vm2139_vm15 = vcmp.lt.s32.totalorder %v2117_v8, 4 }
 0x1bf   : > { %vm7061_vm10 = vcmp.lt.s32.totalorder %v7060_v29, 0  ;;  %v2135_v27 = vor.u32 %v2134_v38, %v2133_v60  ;;  %vm2138_vm12 = vcmp.lt.s32.totalorder %v2117_v8, 3  ;;  %v2141_v7 = vsel %vm2139_vm15, %v2129_v54, 2102212464 }
 0x1c0   : > { %v1863_v40 = vsel %vm7061_vm10, 0, %v7060_v29  ;;  %v2140_v25 = vsel %vm2136_vm13, %v2120_v17, %v2123_v36  ;;  %v2144_v18 = vsel %vm2136_vm13, %v2123_v36, %v2126_v41  ;;  %v2145_v26 = vsel %vm2139_vm15, %v2132_v14, 920167782 }
 0x1c1   : > { %v9714_v56 = vpop.eup %8093  ;;  %v1864_v15 = vsub.s32 32, %v1863_v40  ;;  %v1868_v5 = vsub.s32 4294967266, %v1863_v40  ;;  %v2142_v57 = vsel %vm2138_vm12, %v2126_v41, %v2141_v7  ;;  %v2148_v0 = vsel %vm2136_vm13, %v2126_v41, %v2129_v54 }
 0x1c2   : > { %v9717_v42 = vpop.eup %8095  ;;  %v1865_v9 = vshll.u32 %v9671_v43, %v1863_v40  ;;  %v2146_v60 = vsel %vm2138_vm12, %v2129_v54, %v2145_v26  ;;  %v2149_v38 = vsel %vm2139_vm15, %v2135_v27, 1326507024  ;;  %v2012_v19 = vsel %vm2011_vm1, %v2010_v55, 0 }
 0x1c3   : > { %v1866_v36 = vshrl.u32 %v1848_v4, %v1864_v15  ;;  %v1869_v29 = vadd.s32 127, %v1868_v5  ;;  %v2147_v17 = vsel %vm2137_vm11, %v2144_v18, %v2146_v60  ;;  %v2150_v59 = vsel %vm2138_vm12, %v2132_v14, %v2149_v38 }
 0x1c4   : > { %v2143_v1 = vsel %vm2137_vm11, %v2140_v25, %v2142_v57  ;;  %v2151_v41 = vsel %vm2137_vm11, %v2148_v0, %v2150_v59  ;;  %v9728_v7 = vmul.u32.u64.low %v9685_v20, %v2147_v17  ;;  %v9729_v10 = vmul.u32.u64.high %v9685_v20, %v2147_v17, %v9728_v7 }
 0x1c5   : > { %v1867_v43 = vor.u32 %v1866_v36, %v1865_v9  ;;  %v1870_v54 = vshll.u32 %v1869_v29, 23  ;;  %v9733_v27 = vmul.u32.u64.low %v9685_v20, %v2151_v41  ;;  %v9734_v55 = vmul.u32.u64.high %v9685_v20, %v2151_v41, %v9733_v27 }
 0x1c6   : > { %v9736_v4 = vadd.s32 3, %v1881_v48  ;;  %v2014_v40 = vand.u32 31, %v2012_v19  ;;  %v9738_v18 = vshll.u32 %v2008_v24, 8  ;;  %8097 = vcosq.f32 %v9707_v47 }
 0x1c7   : > { %v1871_v59 = vor.u32 4788187, %v1870_v54  ;;  %v9742_v8 = vand.u32 3, %v1881_v48  ;;  %v2159_v25 = vmul.u32 %v9685_v20, %v2143_v1  ;;  %v1874_v26 = vcvt.s32.f32 %v1867_v43 }
 0x1c8   : > { %v2162_v15 = vadd.s32 1, %v9729_v10  ;;  %v9746_v5 = vshrl.u32 %v2012_v19, 5  ;;  %v2015_v57 = vsub.s32 32, %v2014_v40  ;;  %vm2161_vm5 = vc.u32 %v9734_v55, %v9728_v7 }
 0x1c9   : > { %11190 = vst [vmem:[#allocation43_spill] sm:$0xff] %v9742_v8  ;;  %v1872_v0 = vand.u32 2147483647, %v1871_v59  ;;  %v2017_v24 = vshll.u32 %v11138_v50, %v2014_v40  ;;  %v2020_v9 = vshll.u32 %v11135_v28, %v2014_v40  ;;  %vm2106_vm7 = vcmp.lt.s32.totalorder %v9603_v51, 0 }
 0x1ca   : > { %v2163_v48 = vsel %vm2161_vm5, %v2162_v15, %v9729_v10  ;;  %v2018_v1 = vshrl.u32 %v11135_v28, %v2015_v57  ;;  %v2021_v20 = vshrl.u32 %v11149_v62, %v2015_v57  ;;  %v2023_v60 = vshll.u32 %v11149_v62, %v2014_v40 }
 0x1cb   : > { %v1875_v38 = vmul.f32 %v1874_v26, %v1872_v0  ;;  %v2164_v19 = vadd.s32 %v2163_v48, %v2159_v25  ;;  %v2024_v36 = vshrl.u32 %v11150_v58, %v2015_v57  ;;  %v2026_v29 = vshll.u32 %v11150_v58, %v2014_v40 }
 0x1cc   : > { %v2019_v17 = vor.u32 %v2018_v1, %v2017_v24  ;;  %v2022_v41 = vor.u32 %v2021_v20, %v2020_v9  ;;  %v2027_v43 = vshrl.u32 %v11136_v12, %v2015_v57  ;;  %v2029_v54 = vshll.u32 %v11136_v12, %v2014_v40 }
 0x1cd   : > { %v1876_v27 = vxor.u32 2147483648, %v1875_v38  ;;  %v11191_v10 = vand.u32 2147483647, %v9603_v51  ;;  %v2165_v15 = vadd.s32 536870912, %v2164_v19  ;;  %v2025_v26 = vor.u32 %v2024_v36, %v2023_v60 }
 0x1ce   : > { %v2030_v25 = vshrl.u32 %v11137_v6, %v2015_v57  ;;  %8099 = vsinq.f32 %v9707_v47  ;;  %v2028_v0 = vor.u32 %v2027_v43, %v2026_v29  ;;  %vm2032_vm1 = vcmp.lt.s32.totalorder %v9746_v5, 1 }
 0x1cf   : > { %vm9763_vm6 = vcmp.le.f32.partialorder %v11191_v10, 0.7853982  ;;  %vm2033_vm13 = vcmp.lt.s32.totalorder %v9746_v5, 2  ;;  %v1877_v40 = vsel %vm1794_vm8, %v1876_v27, %v1875_v38  ;;  %v2166_v24 = vshrl.u32 %v2165_v15, 30 }
 0x1d0   : > { %v2031_v9 = vor.u32 %v2030_v25, %v2029_v54  ;;  %vm2035_vm11 = vcmp.lt.s32.totalorder %v9746_v5, 4  ;;  %v2016_v48 = vshrl.u32 %v11138_v50, %v2015_v57  ;;  %vm2034_vm15 = vcmp.lt.s32.totalorder %v9746_v5, 3 }
 0x1d1   : > { %v2040_v1 = vsel %vm2032_vm1, %v2019_v17, %v2022_v41  ;;  %v2041_v20 = vsel %vm2035_vm11, %v2028_v0, 920167782  ;;  %v2167_v60 = vshll.u32 %v2166_v24, 30  ;;  %v2190_v47 = vsub.s32 4, %v2166_v24 }
 0x1d2   : > { %v2037_v36 = vsel %vm2035_vm11, %v2025_v26, 2102212464  ;;  %v2044_v29 = vsel %vm2032_vm1, %v2022_v41, %v2025_v26  ;;  %v1880_v43 = vsel %vm9636_vm14, %v9289_v16, %v1877_v40  ;;  %v2036_v10 = vsel %vm2032_vm1, %v2016_v48, %v2019_v17  ;;  %v682_v40 = vpop.permute.xlu0 %681 }
 0x1d3   : > { %v2042_v38 = vsel %vm2034_vm15, %v2025_v26, %v2041_v20  ;;  %v2045_v54 = vsel %vm2035_vm11, %v2031_v9, 1326507024  ;;  %v9781_v27 = vsub.s32 %v2164_v19, %v2167_v60  ;;  %v2191_v57 = vsel %vm2106_vm7, %v2190_v47, %v2166_v24  ;;  %v9789_v14 = vpop.eup %8097  ;;  %v9815_v47 = vld [vmem:[%s11018_s5 + $0x8] sm:$0xff]  }
 0x1d4   : > { %v2043_v15 = vsel %vm2033_vm13, %v2040_v1, %v2042_v38  ;;  %v2046_v25 = vsel %vm2034_vm15, %v2028_v0, %v2045_v54  ;;  %11194 = vst [vmem:[#allocation44_spill] sm:$0xff] %v9789_v14  ;;  %v2038_v37 = vsel %vm2034_vm15, %v2022_v41, %v2037_v36  ;;  %8101 = vcosq.f32 %v1880_v43  ;;  %7620 = vmatprep.subr.bf16.mxu0 %v9815_v47 }
 0x1d5   : > { %v2047_v17 = vsel %vm2033_vm13, %v2044_v29, %v2046_v25  ;;  %v9796_v19 = vmul.u32.u64.low %v9738_v18, %v2043_v15  ;;  %v9797_v26 = vmul.u32.u64.high %v9738_v18, %v2043_v15, %v9796_v19  ;;  %v9800_v24 = vand.u32 3, %v9736_v4  ;;  %v4551_v4 = vld [vmem:[%s11017_s4] sm:$0xf] }
 0x1d6   : > { %v2170_v9 = vsub.s32 0, %v9781_v27  ;;  %v2315_v0 = vand.u32 2139095040, %v9691_v53  ;;  %v2193_v48 = vsel %vm9763_vm6, 0, %v2191_v57  ;;  %v11195_v20 = vand.u32 2147483647, %v9691_v53  ;;  %7923 = vmatprep.subr.msk.bf16.mxu1 %vm11109_vm9, %v4551_v4 }
 0x1d7   : > { %v9807_v41 = vmul.u32.u64.low %v9738_v18, %v2047_v17  ;;  %v9808_v1 = vmul.u32.u64.high %v9738_v18, %v2047_v17, %v9807_v41  ;;  %v2039_v29 = vsel %vm2033_vm13, %v2036_v10, %v2038_v37  ;;  %v9825_v54 = vsel %vm735_vm2, %v9682_v35, %v682_v40 }
 0x1d8   : > { %v2319_v60 = vand.u32 8388607, %v11195_v20  ;;  %v7071_v36 = vmin.u32 %v2170_v9, %v9781_v27  ;;  %v2316_v38 = vshrl.u32 %v2315_v0, 23  ;;  %8103 = vsinq.f32 %v1880_v43 }
 0x1d9   : > { %v2160_v57 = vadd.s32 %v9728_v7, %v9734_v55  ;;  %v2058_v15 = vadd.s32 1, %v9797_v26  ;;  %v11099_v25 = vand.u32 2147483647, %v9825_v54  ;;  %v2197_v5 = vadd.s32 3, %v2193_v48 }
 0x1da   : > { %v2172_v17 = vclz %v7071_v36  ;;  %v7078_v10 = vadd.s32 4294967169, %v2316_v38  ;;  %v2211_v37 = vand.u32 2139095040, %v9825_v54  ;;  %v9834_v9 = vand.u32 3, %v2193_v48 }
 0x1db   : > { %v2055_v35 = vmul.u32 %v9738_v18, %v2039_v29  ;;  %vm2057_vm2 = vc.u32 %v9808_v1, %v9796_v19  ;;  %v2320_v43 = vor.u32 8388608, %v2319_v60  ;;  %v9838_v40 = vpop.eup %8099  ;;  %vm2002_vm8 = vcmp.lt.s32.totalorder %v9622_v2, 0 }
 0x1dc   : > { %11196 = vst [vmem:[#allocation45_spill] sm:$0xff] %v9834_v9  ;;  %11197 = vst [vmem:[#allocation46_spill] sm:$0xff] %v9838_v40  ;;  %v7072_v7 = vadd.s32 4294967294, %v2172_v17  ;;  %v2059_v55 = vsel %vm2057_vm2, %v2058_v15, %v9797_v26  ;;  %v2322_v0 = vadd.s32 1, %v7078_v10  ;;  %v2212_v41 = vshrl.u32 %v2211_v37, 23 }
 0x1dd   : > { %v11198_v20 = vand.u32 2147483647, %v9622_v2  ;;  %v2060_v48 = vadd.s32 %v2059_v55, %v2055_v35  ;;  %v2215_v18 = vand.u32 8388607, %v11099_v25  ;;  %v9852_v60 = vpack.c.bf16 %v9501_v33, %v9534_v11 }
 0x1de   : > { %v9856_v36 = vpack.c.bf16 %v9595_v44, %v9641_v34  ;;  %vm7073_vm10 = vcmp.lt.s32.totalorder %v7072_v7, 0  ;;  %v9858_v26 = vand.u32 3, %v2197_v5  ;;  %vm2323_vm12 = vcmp.gt.s32.totalorder %v2322_v0, 0 }
 0x1df   : > { %vm9844_vm14 = vcmp.le.f32.partialorder %v11198_v20, 0.7853982  ;;  %11201 = vst [vmem:[#allocation47_spill] sm:$0xff] %v9852_v60  ;;  %v7074_v29 = vadd.s32 4294967169, %v2212_v41  ;;  %v2175_v38 = vsel %vm7073_vm10, 0, %v7072_v7  ;;  %v2061_v15 = vadd.s32 536870912, %v2060_v48  ;;  %7596 = vmatprep.mubr.msk.bf16.mxu1 %vm11108_vm0, %v9852_v60 }
 0x1e0   : > { %11202 = vst [vmem:[#allocation48_spill] sm:$0xff] %v9856_v36  ;;  %11203 = vst [vmem:[#allocation49_spill] sm:$0xff] %v9858_v26  ;;  %v2324_v17 = vsel %vm2323_vm12, %v2322_v0, 0  ;;  %v2216_v10 = vor.u32 8388608, %v2215_v18  ;;  %v2176_v37 = vsub.s32 32, %v2175_v38  ;;  %v2180_v35 = vsub.s32 4294967266, %v2175_v38  ;;  %7597 = vmatmul.mubr.msk.bf16.gmra.mxu1 %vm11108_vm0, %v9856_v36 }
 0x1e1   : > { %v9863_v33 = vadd.s32 %v9796_v19, %v9808_v1  ;;  %v9865_v11 = vshrl.u32 %v2324_v17, 5  ;;  %v2177_v44 = vshll.u32 %v9781_v27, %v2175_v38  ;;  %v2062_v34 = vshrl.u32 %v2061_v15, 30  ;;  %v9876_v18 = vpop.eup %8101 }
 0x1e2   : > { %v2326_v5 = vand.u32 31, %v2324_v17  ;;  %v9870_v7 = vshll.u32 %v2320_v43, 8  ;;  %v2178_v55 = vshrl.u32 %v2160_v57, %v2176_v37  ;;  %v2181_v0 = vadd.s32 127, %v2180_v35  ;;  %11204 = vst [vmem:[#allocation50_spill] sm:$0xff] %v9876_v18 }
 0x1e3   : > { %v9872_v41 = vadd.s32 1, %v7074_v29  ;;  %v9874_v20 = vshll.u32 %v2216_v10, 8  ;;  %v2063_v19 = vshll.u32 %v2062_v34, 30  ;;  %v2086_v1 = vsub.s32 4, %v2062_v34 }
 0x1e4   : > { %v2327_v25 = vsub.s32 32, %v2326_v5  ;;  %vm2344_vm5 = vcmp.lt.s32.totalorder %v9865_v11, 1  ;;  %v2179_v36 = vor.u32 %v2178_v55, %v2177_v44  ;;  %v2182_v60 = vshll.u32 %v2181_v0, 23 }
 0x1e5   : > { %v2329_v27 = vshll.u32 %v11138_v50, %v2326_v5  ;;  %v2332_v43 = vshll.u32 %v11135_v28, %v2326_v5  ;;  %v9881_v38 = vsub.s32 %v2060_v48, %v2063_v19  ;;  %v2087_v57 = vsel %vm2002_vm8, %v2086_v1, %v2062_v34  ;;  %v9888_v17 = vpop.eup %8103 }
 0x1e6   : > { %v2330_v29 = vshrl.u32 %v11135_v28, %v2327_v25  ;;  %v2335_v15 = vshll.u32 %v11149_v62, %v2326_v5  ;;  %vm2345_vm1 = vcmp.lt.s32.totalorder %v9865_v11, 2  ;;  %v2183_v10 = vor.u32 4788187, %v2182_v60 }
 0x1e7   : > { %v2089_v37 = vsel %vm9844_vm14, 0, %v2087_v57  ;;  %v2328_v35 = vshrl.u32 %v11138_v50, %v2327_v25  ;;  %v2333_v48 = vshrl.u32 %v11149_v62, %v2327_v25  ;;  %v2186_v44 = vcvt.s32.f32 %v2179_v36 }
 0x1e8   : > { %v2066_v55 = vsub.s32 0, %v9881_v38  ;;  %v2093_v34 = vadd.s32 3, %v2089_v37  ;;  %v2331_v0 = vor.u32 %v2330_v29, %v2329_v27  ;;  %v2184_v19 = vand.u32 2147483647, %v2183_v10 }
 0x1e9   : > { %v9895_v1 = vand.u32 3, %v2089_v37  ;;  %v2334_v9 = vor.u32 %v2333_v48, %v2332_v43  ;;  %v2336_v26 = vshrl.u32 %v11150_v58, %v2327_v25  ;;  %v2338_v8 = vshll.u32 %v11150_v58, %v2326_v5 }
 0x1ea   : > { %v7067_v60 = vmin.u32 %v2066_v55, %v9881_v38  ;;  %v2339_v57 = vshrl.u32 %v11136_v12, %v2327_v25  ;;  %v2341_v14 = vshll.u32 %v11136_v12, %v2326_v5  ;;  %v2187_v40 = vmul.f32 %v2186_v44, %v2184_v19 }
 0x1eb   : > { %v2337_v36 = vor.u32 %v2336_v26, %v2335_v15  ;;  %v2342_v18 = vshrl.u32 %v11137_v6, %v2327_v25  ;;  %vm2346_vm13 = vcmp.lt.s32.totalorder %v9865_v11, 3  ;;  %vm2347_vm11 = vcmp.lt.s32.totalorder %v9865_v11, 4 }
 0x1ec   : > { %v2068_v27 = vclz %v7067_v60  ;;  %v2340_v29 = vor.u32 %v2339_v57, %v2338_v8  ;;  %v2348_v43 = vsel %vm2344_vm5, %v2328_v35, %v2331_v0  ;;  %v2188_v10 = vxor.u32 2147483648, %v2187_v40 }
 0x1ed   : > { %v2343_v37 = vor.u32 %v2342_v18, %v2341_v14  ;;  %v2349_v48 = vsel %vm2347_vm11, %v2337_v36, 2102212464  ;;  %v2352_v55 = vsel %vm2344_vm5, %v2331_v0, %v2334_v9  ;;  %v2356_v15 = vsel %vm2344_vm5, %v2334_v9, %v2337_v36 }
 0x1ee   : > { %v7068_v5 = vadd.s32 4294967294, %v2068_v27  ;;  %v2350_v26 = vsel %vm2346_vm13, %v2334_v9, %v2349_v48  ;;  %v2353_v25 = vsel %vm2347_vm11, %v2340_v29, 920167782  ;;  %v2189_v8 = vsel %vm2106_vm7, %v2188_v10, %v2187_v40 }
 0x1ef   : > { %v2351_v35 = vsel %vm2345_vm1, %v2348_v43, %v2350_v26  ;;  %v2354_v14 = vsel %vm2346_vm13, %v2337_v36, %v2353_v25  ;;  %v2357_v18 = vsel %vm2347_vm11, %v2343_v37, 1326507024  ;;  %v2192_v44 = vsel %vm9763_vm6, %v9603_v51, %v2189_v8 }
 0x1f0   : > { %vm7069_vm15 = vcmp.lt.s32.totalorder %v7068_v5, 0  ;;  %v2355_v0 = vsel %vm2345_vm1, %v2352_v55, %v2354_v14  ;;  %v2358_v9 = vsel %vm2346_vm13, %v2340_v29, %v2357_v18  ;;  %8105 = vcosq.f32 %v2192_v44 }
 0x1f1   : > { %v2071_v40 = vsel %vm7069_vm15, 0, %v7068_v5  ;;  %v9926_v19 = vand.u32 3, %v2093_v34  ;;  %v2359_v60 = vsel %vm2345_vm1, %v2356_v15, %v2358_v9  ;;  %v2367_v59 = vmul.u32 %v9870_v7, %v2351_v35 }
 0x1f2   : > { %v2072_v57 = vsub.s32 32, %v2071_v40  ;;  %v2073_v36 = vshll.u32 %v9881_v38, %v2071_v40  ;;  %v2076_v27 = vsub.s32 4294967266, %v2071_v40  ;;  %vm2219_vm7 = vcmp.gt.s32.totalorder %v9872_v41, 0 }
 0x1f3   : > { %v9933_v43 = vmul.u32.u64.low %v9870_v7, %v2359_v60  ;;  %v9934_v10 = vmul.u32.u64.high %v9870_v7, %v2359_v60, %v9933_v43  ;;  %v9937_v37 = vmul.u32.u64.low %v9870_v7, %v2355_v0  ;;  %v9938_v29 = vmul.u32.u64.high %v9870_v7, %v2355_v0, %v9937_v37 }
 0x1f4   : > { %v2074_v34 = vshrl.u32 %v9863_v33, %v2072_v57  ;;  %v2077_v48 = vadd.s32 127, %v2076_v27  ;;  %v845_v11 = vadd.s32 3, %v8701_v30  ;;  %8107 = vsinq.f32 %v2192_v44 }
 0x1f5   : > { %v2220_v38 = vsel %vm2219_vm7, %v9872_v41, 0  ;;  %v849_v55 = vxor.u32 2147483648, %v8999_v21  ;;  %v852_v5 = vxor.u32 2147483648, %v8986_v46  ;;  %v9949_v8 = vadd.s32 %v9937_v37, %v9934_v10 }
 0x1f6   : > { %v2075_v26 = vor.u32 %v2074_v34, %v2073_v36  ;;  %v2078_v25 = vshll.u32 %v2077_v48, 23  ;;  %v9946_v15 = vshrl.u32 %v2220_v38, 5  ;;  %v2222_v7 = vand.u32 31, %v2220_v38 }
 0x1f7   : > { %vm2369_vm6 = vc.u32 %v9934_v10, %v9937_v37  ;;  %v2370_v33 = vadd.s32 1, %v9938_v29  ;;  %v9953_v30 = vand.u32 3, %v845_v11  ;;  %vm2314_vm2 = vcmp.lt.s32.totalorder %v9691_v53, 0 }
 0x1f8   : > { %v2079_v35 = vor.u32 4788187, %v2078_v25  ;;  %v2082_v41 = vcvt.s32.f32 %v2075_v26  ;;  %v2223_v14 = vsub.s32 32, %v2222_v7  ;;  %v2225_v18 = vshll.u32 %v11138_v50, %v2222_v7 }
 0x1f9   : > { %v2371_v44 = vsel %vm2369_vm6, %v2370_v33, %v9938_v29  ;;  %v2228_v0 = vshll.u32 %v11135_v28, %v2222_v7  ;;  %v2231_v9 = vshll.u32 %v11149_v62, %v2222_v7  ;;  %v2234_v40 = vshll.u32 %v11150_v58, %v2222_v7 }
 0x1fa   : > { %v2080_v60 = vand.u32 2147483647, %v2079_v35  ;;  %v11205_v57 = vand.u32 2147483647, %v9691_v53  ;;  %v2372_v27 = vadd.s32 %v2371_v44, %v2367_v59  ;;  %v2224_v43 = vshrl.u32 %v11138_v50, %v2223_v14 }
 0x1fb   : > { %v2226_v10 = vshrl.u32 %v11135_v28, %v2223_v14  ;;  %v2229_v37 = vshrl.u32 %v11149_v62, %v2223_v14  ;;  %v2232_v29 = vshrl.u32 %v11150_v58, %v2223_v14  ;;  %v2235_v34 = vshrl.u32 %v11136_v12, %v2223_v14 }
 0x1fc   : > { %vm9963_vm10 = vcmp.le.f32.partialorder %v11205_v57, 0.7853982  ;;  %v2237_v48 = vshll.u32 %v11136_v12, %v2222_v7  ;;  %v2083_v11 = vmul.f32 %v2082_v41, %v2080_v60  ;;  %v2373_v38 = vadd.s32 536870912, %v2372_v27 }
 0x1fd   : > { %v2227_v26 = vor.u32 %v2226_v10, %v2225_v18  ;;  %v2238_v25 = vshrl.u32 %v11137_v6, %v2223_v14  ;;  %v2230_v33 = vor.u32 %v2229_v37, %v2228_v0  ;;  %v2233_v35 = vor.u32 %v2232_v29, %v2231_v9  ;;  %v9975_v50 = vpop.eup %8105 }
 0x1fe   : > { %v2236_v59 = vor.u32 %v2235_v34, %v2234_v40  ;;  %vm2240_vm12 = vcmp.lt.s32.totalorder %v9946_v15, 1  ;;  %v2084_v28 = vxor.u32 2147483648, %v2083_v11  ;;  %v2374_v62 = vshrl.u32 %v2373_v38, 30 }
 0x1ff   : > { %v2239_v44 = vor.u32 %v2238_v25, %v2237_v48  ;;  %vm2241_vm5 = vcmp.lt.s32.totalorder %v9946_v15, 2  ;;  %vm2242_vm1 = vcmp.lt.s32.totalorder %v9946_v15, 3  ;;  %vm2243_vm13 = vcmp.lt.s32.totalorder %v9946_v15, 4 }
 0x200   : > { %v2244_v12 = vsel %vm2240_vm12, %v2224_v43, %v2227_v26  ;;  %v2248_v6 = vsel %vm2240_vm12, %v2227_v26, %v2230_v33  ;;  %v2085_v58 = vsel %vm2002_vm8, %v2084_v28, %v2083_v11  ;;  %v2375_v7 = vshll.u32 %v2374_v62, 30 }
 0x201   : > { %v2398_v41 = vsub.s32 4, %v2374_v62  ;;  %v2245_v14 = vsel %vm2243_vm13, %v2233_v35, 2102212464  ;;  %v2088_v18 = vsel %vm9844_vm14, %v9622_v2, %v2085_v58  ;;  %v2249_v9 = vsel %vm2243_vm13, %v2236_v59, 920167782  ;;  %v9998_v60 = vpop.eup %8107 }
 0x202   : > { %v2246_v0 = vsel %vm2242_vm1, %v2230_v33, %v2245_v14  ;;  %v2252_v40 = vsel %vm2240_vm12, %v2230_v33, %v2233_v35  ;;  %vm844_vm8 = vweird.f32 %v8428_v23  ;;  %8109 = vcosq.f32 %v2088_v18 }
 0x203   : > { %v10000_v57 = vsub.s32 %v2372_v27, %v2375_v7  ;;  %v2399_v4 = vsel %vm2314_vm2, %v2398_v41, %v2374_v62  ;;  %v2247_v43 = vsel %vm2241_vm5, %v2244_v12, %v2246_v0  ;;  %8111 = vsinq.f32 %v2088_v18 }
 0x204   : > { %v2401_v10 = vsel %vm9963_vm10, 0, %v2399_v4  ;;  %v2250_v37 = vsel %vm2242_vm1, %v2233_v35, %v2249_v9  ;;  %v2253_v29 = vsel %vm2243_vm13, %v2239_v44, 1326507024  ;;  %v2263_v33 = vmul.u32 %v9874_v20, %v2247_v43 }
 0x205   : > { %v2378_v34 = vsub.s32 0, %v10000_v57  ;;  %v2405_v27 = vadd.s32 3, %v2401_v10  ;;  %v10013_v48 = vand.u32 3, %v2401_v10  ;;  %v2251_v11 = vsel %vm2241_vm5, %v2248_v6, %v2250_v37 }
 0x206   : > { %v2254_v38 = vsel %vm2242_vm1, %v2236_v59, %v2253_v29  ;;  %v10020_v26 = vmul.u32.u64.low %v9874_v20, %v2251_v11  ;;  %v10021_v25 = vmul.u32.u64.high %v9874_v20, %v2251_v11, %v10020_v26  ;;  %vm847_vm14 = vcmp.lt.s32.totalorder %v9953_v30, 2 }
 0x207   : > { %v7079_v35 = vmin.u32 %v2378_v34, %v10000_v57  ;;  %v10025_v28 = vand.u32 3, %v2405_v27  ;;  %v2255_v62 = vsel %vm2241_vm5, %v2252_v40, %v2254_v38  ;;  %vm848_vm11 = vcmp.eq.s32.totalorder %v9953_v30, 0 }
 0x208   : > { %v10031_v44 = vmul.u32.u64.low %v9874_v20, %v2255_v62  ;;  %v10032_v12 = vmul.u32.u64.high %v9874_v20, %v2255_v62, %v10031_v44  ;;  %vm851_vm15 = vcmp.eq.s32.totalorder %v9953_v30, 2  ;;  %vm948_vm7 = vweird.f32 %v8425_v22  ;;  %v11212_v22 = vld [vmem:[#allocation11_spill] sm:$0xff] }
 0x209   : > { %v2380_v59 = vclz %v7079_v35  ;;  %v850_v6 = vsel %vm848_vm11, %v8986_v46, %v849_v55  ;;  %v853_v15 = vsel %vm851_vm15, %v852_v5, %v8999_v21  ;;  %v949_v58 = vadd.s32 3, %v8621_v45 }
 0x20a   : > { %v2266_v20 = vadd.s32 1, %v10021_v25  ;;  %v854_v7 = vsel %vm847_vm14, %v850_v6, %v853_v15  ;;  %v953_v41 = vxor.u32 2147483648, %v8953_v13  ;;  %v956_v30 = vxor.u32 2147483648, %v8832_v32 }
 0x20b   : > { %v7080_v14 = vadd.s32 4294967294, %v2380_v59  ;;  %v855_v18 = vsel %vm844_vm8, nan, %v854_v7  ;;  %v950_v0 = vand.u32 3, %v949_v58  ;;  %vm2510_vm6 = vcmp.lt.s32.totalorder %v8721_v49, 2 }
 0x20c   : > { %v10051_v9 = vadd.s32 %v10020_v26, %v10032_v12  ;;  %vm2265_vm12 = vc.u32 %v10032_v12, %v10020_v26  ;;  %vm2511_vm5 = vcmp.eq.s32.totalorder %v8721_v49, 0  ;;  %vm2514_vm1 = vcmp.eq.s32.totalorder %v8721_v49, 2 }
 0x20d   : > { %vm7081_vm13 = vcmp.lt.s32.totalorder %v7080_v14, 0  ;;  %vm2210_vm14 = vcmp.lt.s32.totalorder %v9825_v54, 0  ;;  %v2267_v45 = vsel %vm2265_vm12, %v2266_v20, %v10021_v25  ;;  %vm951_vm11 = vcmp.lt.s32.totalorder %v950_v0, 2 }
 0x20e   : > { %vm952_vm15 = vcmp.eq.s32.totalorder %v950_v0, 0  ;;  %v2383_v40 = vsel %vm7081_vm13, 0, %v7080_v14  ;;  %v11208_v4 = vand.u32 2147483647, %v9825_v54  ;;  %v2268_v10 = vadd.s32 %v2267_v45, %v2263_v33 }
 0x20f   : > { %v954_v37 = vsel %vm952_vm15, %v8832_v32, %v953_v41  ;;  %vm955_vm9 = vcmp.eq.s32.totalorder %v950_v0, 2  ;;  %v2384_v29 = vsub.s32 32, %v2383_v40  ;;  %v2385_v34 = vshll.u32 %v10000_v57, %v2383_v40  ;;  %v10067_v38 = vpop.eup %8109 }
 0x210   : > { %vm10060_vm0 = vcmp.le.f32.partialorder %v11208_v4, 0.7853982  ;;  %v2388_v27 = vsub.s32 4294967266, %v2383_v40  ;;  %v957_v11 = vsel %vm955_vm9, %v956_v30, %v8953_v13  ;;  %v2269_v26 = vadd.s32 536870912, %v2268_v10  ;;  %v10079_v57 = vpop.eup %8111 }
 0x211   : > { %v958_v25 = vsel %vm951_vm11, %v954_v37, %v957_v11  ;;  %v2513_v35 = vsel %vm2511_vm5, %v8986_v46, %v849_v55  ;;  %v2516_v33 = vsel %vm2514_vm1, %v852_v5, %v8999_v21  ;;  %v2386_v62 = vshrl.u32 %v9949_v8, %v2384_v29 }
 0x212   : > { %v2389_v44 = vadd.s32 127, %v2388_v27  ;;  %v959_v12 = vsel %vm948_vm7, nan, %v958_v25  ;;  %v2517_v59 = vsel %vm2510_vm6, %v2513_v35, %v2516_v33  ;;  %v2270_v6 = vshrl.u32 %v2269_v26, 30  ;;  %v11217_v35 = vld [vmem:[#allocation7_spill] sm:$0xff] }
 0x213   : > { %v2518_v55 = vsel %vm844_vm8, nan, %v2517_v59  ;;  %vm2613_vm9 = vcmp.lt.s32.totalorder %v8697_v52, 2  ;;  %vm2614_vm12 = vcmp.eq.s32.totalorder %v8697_v52, 0  ;;  %v2387_v46 = vor.u32 %v2386_v62, %v2385_v34  ;;  %v11215_v34 = vld [vmem:[#allocation8_spill] sm:$0xff]  ;;  %v11219_v62 = vld [vmem:[#allocation6_spill] sm:$0xff] }
 0x214   : > { %v2390_v21 = vshll.u32 %v2389_v44, 23  ;;  %v2616_v5 = vsel %vm2614_vm12, %v8832_v32, %v953_v41  ;;  %vm2617_vm5 = vcmp.eq.s32.totalorder %v8697_v52, 2  ;;  %v2271_v8 = vshll.u32 %v2270_v6, 30  ;;  %v11211_v52 = vld [vmem:[#allocation12_spill] sm:$0xff] }
 0x215   : > { %v2294_v15 = vsub.s32 4, %v2270_v6  ;;  %v2619_v58 = vsel %vm2617_vm5, %v956_v30, %v8953_v13  ;;  %v10093_v49 = vpack.c.bf16 %v959_v12, %v855_v18  ;;  %v2394_v7 = vcvt.s32.f32 %v2387_v46  ;;  %v11220_v12 = vld [vmem:[#allocation15_spill] sm:$0xff] }
 0x216   : > { %v2391_v20 = vor.u32 4788187, %v2390_v21  ;;  %v2620_v23 = vsel %vm2613_vm9, %v2616_v5, %v2619_v58  ;;  %vm4107_vm8 = vcmask 261120   ;;  %v10095_v14 = vsub.s32 %v2268_v10, %v2271_v8  ;;  %v11214_v10 = vld [vmem:[#allocation10_spill] sm:$0xff] }
 0x217   : > { %v2295_v0 = vsel %vm2210_vm14, %v2294_v15, %v2270_v6  ;;  %v2621_v32 = vsel %vm948_vm7, nan, %v2620_v23  ;;  %7566 = vmatprep.mubr.msk.bf16.mxu0 %vm4107_vm8, %v10093_v49  ;;  %vm1055_vm6 = vcmp.lt.s32.totalorder %v11211_v52, 2  ;;  %vm1056_vm1 = vcmp.eq.s32.totalorder %v11211_v52, 0 }
 0x218   : > { %v2392_v13 = vand.u32 2147483647, %v2391_v20  ;;  %v2297_v41 = vsel %vm10060_vm0, 0, %v2295_v0  ;;  %v10106_v30 = vpack.c.bf16 %v2621_v32, %v2518_v55  ;;  %v2274_v18 = vsub.s32 0, %v10095_v14  ;;  %v11221_v55 = vld [vmem:[#allocation18_spill] sm:$0xff]  ;;  %v11225_v0 = vld [vmem:[#allocation4_spill] sm:$0xff] }
 0x219   : > { %v2301_v45 = vadd.s32 3, %v2297_v41  ;;  %v10110_v40 = vand.u32 3, %v2297_v41  ;;  %v11213_v4 = vxor.u32 2147483648, %v11212_v22  ;;  %vm1260_vm7 = vweird.f32 %v8689_v3  ;;  %v11236_v3 = vld [vmem:[#allocation35_spill] sm:$0xff] }
 0x21a   : > { %v2395_v29 = vmul.f32 %v2394_v7, %v2392_v13  ;;  %7604 = vmatprep.mubr.msk.bf16.mxu1 %vm4107_vm8, %v10106_v30  ;;  %vm1059_vm13 = vcmp.eq.s32.totalorder %v11211_v52, 2  ;;  %vm1159_vm11 = vcmp.lt.s32.totalorder %v11215_v34, 2  ;;  %vm1160_vm15 = vcmp.eq.s32.totalorder %v11215_v34, 0  ;;  %v11224_v7 = vld [vmem:[#allocation24_spill] sm:$0xff] }
 0x21b   : > { %v1058_v37 = vsel %vm1056_vm1, %v11214_v10, %v11213_v4  ;;  %v7075_v27 = vmin.u32 %v2274_v18, %v10095_v14  ;;  %v10122_v11 = vand.u32 3, %v2301_v45  ;;  %v11216_v26 = vxor.u32 2147483648, %v11214_v10  ;;  %7605 = vmatmul.mubr.msk.bf16.vlgmr.msra.gmra.mxu1 %vm4107_vm8, %v11220_v12  ;;  %v11227_v18 = vld [vmem:[#allocation23_spill] sm:$0xff]  ;;  %v11228_v10 = vld [vmem:[#allocation16_spill] sm:$0xff] }
 0x21c   : > { %v11218_v33 = vxor.u32 2147483648, %v11217_v35  ;;  %v2396_v59 = vxor.u32 2147483648, %v2395_v29  ;;  %vm1163_vm9 = vcmp.eq.s32.totalorder %v11215_v34, 2  ;;  %vm1263_vm12 = vcmp.lt.s32.totalorder %v11221_v55, 2 }
 0x21d   : > { %v1061_v25 = vsel %vm1059_vm13, %v11216_v26, %v11212_v22  ;;  %v2276_v46 = vclz %v7075_v27  ;;  %v11223_v8 = vxor.u32 2147483648, %v11219_v62  ;;  %vm1264_vm5 = vcmp.eq.s32.totalorder %v11221_v55, 0  ;;  %v11229_v27 = vld [vmem:[#allocation22_spill] sm:$0xff] }
 0x21e   : > { %v1162_v44 = vsel %vm1160_vm15, %v11219_v62, %v11218_v33  ;;  %v1062_v6 = vsel %vm1055_vm6, %v1058_v37, %v1061_v25  ;;  %v2397_v58 = vsel %vm2314_vm2, %v2396_v59, %v2395_v29  ;;  %v1265_v23 = vxor.u32 2147483648, %v11224_v7  ;;  %v8012_v37 = vld [vmem:[%s11018_s5] sm:$0xff]  }
 0x21f   : > { %v1063_v5 = vsel %vm1052_vm4, nan, %v1062_v6  ;;  %v1165_v15 = vsel %vm1163_vm9, %v11223_v8, %v11217_v35  ;;  %vm1267_vm6 = vcmp.eq.s32.totalorder %v11221_v55, 2  ;;  %vm1364_vm1 = vweird.f32 %v11225_v0  ;;  %v10181_v55 = vld [vmem:[%s11019_s6 + $0x8] sm:$0xff]  }
 0x220   : > { %v1166_v20 = vsel %vm1159_vm11, %v1162_v44, %v1165_v15  ;;  %v2400_v32 = vsel %vm9963_vm10, %v9691_v53, %v2397_v58  ;;  %v7076_v52 = vadd.s32 4294967294, %v2276_v46  ;;  %v1268_v45 = vxor.u32 2147483648, %v11227_v18  ;;  %v11230_v44 = vld [vmem:[#allocation21_spill] sm:$0xff] }
 0x221   : > { %v1167_v41 = vsel %vm1156_vm3, nan, %v1166_v20  ;;  %8113 = vcosq.f32 %v2400_v32  ;;  %v1266_v4 = vsel %vm1264_vm5, %v11227_v18, %v1265_v23  ;;  %vm1367_vm4 = vcmp.lt.s32.totalorder %v11228_v10, 2  ;;  %v11231_v46 = vld [vmem:[#allocation17_spill] sm:$0xff] }
 0x222   : > { %v10155_v22 = vpack.c.bf16 %v1167_v41, %v1063_v5  ;;  %8115 = vsinq.f32 %v2400_v32  ;;  %vm7077_vm2 = vcmp.lt.s32.totalorder %v7076_v52, 0  ;;  %v1269_v36 = vsel %vm1267_vm6, %v1268_v45, %v11224_v7  ;;  %v11233_v58 = vld [vmem:[#allocation13_spill] sm:$0xff] }
 0x223   : > { %vm1368_vm10 = vcmp.eq.s32.totalorder %v11228_v10, 0  ;;  %v2279_v29 = vsel %vm7077_vm2, 0, %v7076_v52  ;;  %v1270_v34 = vsel %vm1263_vm12, %v1266_v4, %v1269_v36  ;;  %v1369_v26 = vxor.u32 2147483648, %v11229_v27  ;;  %v11234_v41 = vld [vmem:[#allocation5_spill] sm:$0xff]  ;;  %v11235_v36 = vld [vmem:[#allocation26_spill] sm:$0xff] }
 0x224   : > { %7567 = vmatmul.mubr.msk.bf16.vlgmr.msra.gmra.mxu0 %vm4107_vm8, %v10155_v22  ;;  %vm1371_vm3 = vcmp.eq.s32.totalorder %v11228_v10, 2  ;;  %v2280_v25 = vsub.s32 32, %v2279_v29  ;;  %v2281_v35 = vshll.u32 %v10095_v14, %v2279_v29  ;;  %v2284_v33 = vsub.s32 4294967266, %v2279_v29 }
 0x225   : > { %v1271_v62 = vsel %vm1260_vm7, nan, %v1270_v34  ;;  %7621 = vmatpush3.bf16.msra.mxu0 %v9815_v47  ;;  %v1370_v59 = vsel %vm1368_vm10, %v11230_v44, %v1369_v26  ;;  %v1372_v6 = vxor.u32 2147483648, %v11230_v44  ;;  %vm2922_vm13 = vcmp.lt.s32.totalorder %v11231_v46, 2  ;;  %v11232_v47 = vld [vmem:[#allocation9_spill] sm:$0xff] }
 0x226   : > { %vm2923_vm11 = vcmp.eq.s32.totalorder %v11231_v46, 0  ;;  %7622 = vmatprep.subr.bf16.mxu0 %v8012_v37  ;;  %v2282_v14 = vshrl.u32 %v10051_v9, %v2280_v25  ;;  %v2285_v21 = vadd.s32 127, %v2284_v33  ;;  %vm2926_vm15 = vcmp.eq.s32.totalorder %v11231_v46, 2  ;;  %v11237_v25 = vld [vmem:[#allocation29_spill] sm:$0xff]  ;;  %v11239_v46 = vld [vmem:[#allocation28_spill] sm:$0xff] }
 0x227   : > { %v2925_v5 = vsel %vm2923_vm11, %v11227_v18, %v1265_v23  ;;  %vm1468_vm9 = vweird.f32 %v11232_v47  ;;  %v1373_v8 = vsel %vm1371_vm3, %v1372_v6, %v11229_v27  ;;  %v2928_v15 = vsel %vm2926_vm15, %v1268_v45, %v11224_v7 }
 0x228   : > { %vm3025_vm12 = vcmp.lt.s32.totalorder %v11233_v58, 2  ;;  %vm3026_vm5 = vcmp.eq.s32.totalorder %v11233_v58, 0  ;;  %v2283_v20 = vor.u32 %v2282_v14, %v2281_v35  ;;  %v2286_v32 = vshll.u32 %v2285_v21, 23 }
 0x229   : > { %v1374_v9 = vsel %vm1367_vm4, %v1370_v59, %v1373_v8  ;;  %v2929_v23 = vsel %vm2922_vm13, %v2925_v5, %v2928_v15  ;;  %7623 = vmatpush3.bf16.msra.mxu0 %v8012_v37  ;;  %v3028_v7 = vsel %vm3026_vm5, %v11230_v44, %v1369_v26  ;;  %vm3029_vm6 = vcmp.eq.s32.totalorder %v11233_v58, 2  ;;  %v11240_v5 = vld [vmem:[#allocation27_spill] sm:$0xff]  ;;  %v11241_v15 = vld [vmem:[#allocation25_spill] sm:$0xff] }
 0x22a   : > { %v1375_v52 = vsel %vm1364_vm1, nan, %v1374_v9  ;;  %v2930_v13 = vsel %vm1260_vm7, nan, %v2929_v23  ;;  %7658 = vmatprep.subr.bf16.mxu0 %v10181_v55  ;;  %vm1572_vm2 = vweird.f32 %v11234_v41  ;;  %v2287_v18 = vor.u32 4788187, %v2286_v32 }
 0x22b   : > { %v2290_v45 = vcvt.s32.f32 %v2283_v20  ;;  %v10205_v4 = vpack.c.bf16 %v1375_v52, %v1271_v62  ;;  %v3031_v10 = vsel %vm3029_vm6, %v1372_v6, %v11229_v27  ;;  %vm1471_vm4 = vcmp.lt.s32.totalorder %v11235_v36, 2  ;;  %v11238_v62 = vld [vmem:[#allocation20_spill] sm:$0xff]  ;;  %v11242_v52 = vld [vmem:[#allocation19_spill] sm:$0xff] }
 0x22c   : > { %v3032_v37 = vsel %vm3025_vm12, %v3028_v7, %v3031_v10  ;;  %vm1472_vm7 = vcmp.eq.s32.totalorder %v11235_v36, 0  ;;  %v1473_v29 = vxor.u32 2147483648, %v11236_v3  ;;  %v2288_v34 = vand.u32 2147483647, %v2287_v18  ;;  %v11243_v10 = vld [vmem:[#allocation14_spill] sm:$0xff] }
 0x22d   : > { %7570 = vmatprep.mubr.msk.bf16.mxu0 %vm4107_vm8, %v10205_v4  ;;  %v3033_v26 = vsel %vm1364_vm1, nan, %v3032_v37  ;;  %vm1475_vm10 = vcmp.eq.s32.totalorder %v11235_v36, 2  ;;  %v1476_v27 = vxor.u32 2147483648, %v11237_v25  ;;  %vm1575_vm3 = vcmp.lt.s32.totalorder %v11238_v62, 2 }
 0x22e   : > { %v10219_v35 = vpack.c.bf16 %v3033_v26, %v2930_v13  ;;  %v1474_v33 = vsel %vm1472_vm7, %v11237_v25, %v1473_v29  ;;  %vm1576_vm13 = vcmp.eq.s32.totalorder %v11238_v62, 0  ;;  %v10224_v44 = vpop.eup %8113  ;;  %v2291_v59 = vmul.f32 %v2290_v45, %v2288_v34 }
 0x22f   : > { %v1477_v6 = vsel %vm1475_vm10, %v1476_v27, %v11236_v3  ;;  %v1577_v0 = vxor.u32 2147483648, %v11239_v46  ;;  %vm1579_vm1 = vcmp.eq.s32.totalorder %v11238_v62, 2  ;;  %v10229_v14 = vpop.eup %8115  ;;  %v1580_v8 = vxor.u32 2147483648, %v11240_v5 }
 0x230   : > { %7608 = vmatprep.mubr.msk.bf16.mxu1 %vm4107_vm8, %v10219_v35  ;;  %v1478_v21 = vsel %vm1471_vm4, %v1474_v33, %v1477_v6  ;;  %vm3128_vm11 = vcmp.lt.s32.totalorder %v11241_v15, 2  ;;  %vm3129_vm15 = vcmp.eq.s32.totalorder %v11241_v15, 0  ;;  %v2292_v58 = vxor.u32 2147483648, %v2291_v59 }
 0x231   : > { %v1479_v20 = vsel %vm1468_vm9, nan, %v1478_v21  ;;  %v1578_v32 = vsel %vm1576_vm13, %v11240_v5, %v1577_v0  ;;  %v3131_v9 = vsel %vm3129_vm15, %v11237_v25, %v1473_v29  ;;  %vm1676_vm12 = vweird.f32 %v9185_v63  ;;  %v11244_v25 = vld [vmem:[#allocation36_spill] sm:$0xff] }
 0x232   : > { %v1581_v23 = vsel %vm1579_vm1, %v1580_v8, %v11239_v46  ;;  %vm3132_vm5 = vcmp.eq.s32.totalorder %v11241_v15, 2  ;;  %vm3231_vm6 = vcmp.lt.s32.totalorder %v11242_v52, 2  ;;  %vm3232_vm4 = vcmp.eq.s32.totalorder %v11242_v52, 0 }
 0x233   : > { %v2293_v13 = vsel %vm2210_vm14, %v2292_v58, %v2291_v59  ;;  %v1582_v7 = vsel %vm1575_vm3, %v1578_v32, %v1581_v23  ;;  %v3134_v18 = vsel %vm3132_vm5, %v1476_v27, %v11236_v3  ;;  %v3234_v45 = vsel %vm3232_vm4, %v11240_v5, %v1577_v0  ;;  %v11245_v59 = vld [vmem:[#allocation33_spill] sm:$0xff]  ;;  %v11247_v23 = vld [vmem:[#allocation31_spill] sm:$0xff] }
 0x234   : > { %vm1780_vm7 = vweird.f32 %v11243_v10  ;;  %v2296_v37 = vsel %vm10060_vm0, %v9825_v54, %v2293_v13  ;;  %v1583_v36 = vsel %vm1572_vm2, nan, %v1582_v7  ;;  %v3135_v29 = vsel %vm3128_vm11, %v3131_v9, %v3134_v18  ;;  %v11251_v10 = vld [vmem:[#allocation44_spill] sm:$0xff] }
 0x235   : > { %vm3235_vm14 = vcmp.eq.s32.totalorder %v11242_v52, 2  ;;  %8117 = vcosq.f32 %v2296_v37  ;;  %v10262_v34 = vpack.c.bf16 %v1583_v36, %v1479_v20  ;;  %v3136_v3 = vsel %vm1468_vm9, nan, %v3135_v29  ;;  %v11248_v36 = vld [vmem:[#allocation50_spill] sm:$0xff]  ;;  %v11249_v29 = vld [vmem:[#allocation40_spill] sm:$0xff] }
 0x236   : > { %v3237_v26 = vsel %vm3235_vm14, %v1580_v8, %v11239_v46  ;;  %8119 = vsinq.f32 %v2296_v37  ;;  %vm1679_vm0 = vcmp.lt.s32.totalorder %v11244_v25, 2  ;;  %vm1680_vm10 = vcmp.eq.s32.totalorder %v11244_v25, 0  ;;  %v11246_v8 = vld [vmem:[#allocation34_spill] sm:$0xff] }
 0x237   : > { %v3238_v43 = vsel %vm3231_vm6, %v3234_v45, %v3237_v26  ;;  %7571 = vmatmul.mubr.msk.bf16.gmra.mxu0 %vm4107_vm8, %v10262_v34  ;;  %v1681_v33 = vxor.u32 2147483648, %v9717_v42  ;;  %vm1683_vm9 = vcmp.eq.s32.totalorder %v11244_v25, 2  ;;  %v1684_v47 = vxor.u32 2147483648, %v9714_v56  ;;  %v11250_v26 = vld [vmem:[#allocation46_spill] sm:$0xff] }
 0x238   : > { %v3239_v27 = vsel %vm1572_vm2, nan, %v3238_v43  ;;  %vm1783_vm3 = vcmp.lt.s32.totalorder %v11245_v59, 2  ;;  %vm1784_vm13 = vcmp.eq.s32.totalorder %v11245_v59, 0  ;;  %v1785_v6 = vxor.u32 2147483648, %v9615_v61 }
 0x239   : > { %v10278_v62 = vpack.c.bf16 %v3239_v27, %v3136_v3  ;;  %v1682_v46 = vsel %vm1680_vm10, %v9714_v56, %v1681_v33  ;;  %v1685_v0 = vsel %vm1683_vm9, %v1684_v47, %v9717_v42  ;;  %vm1787_vm2 = vcmp.eq.s32.totalorder %v11245_v59, 2 }
 0x23a   : > { %v1788_v41 = vxor.u32 2147483648, %v9564_v31  ;;  %v1686_v21 = vsel %vm1679_vm0, %v1682_v46, %v1685_v0  ;;  %v1786_v5 = vsel %vm1784_vm13, %v9564_v31, %v1785_v6  ;;  %vm3334_vm1 = vcmp.lt.s32.totalorder %v11246_v8, 2 }
 0x23b   : > { %7609 = vmatmul.mubr.msk.bf16.gmra.mxu1 %vm4107_vm8, %v10278_v62  ;;  %vm3335_vm11 = vcmp.eq.s32.totalorder %v11246_v8, 0  ;;  %vm1884_vm15 = vweird.f32 %v9289_v16  ;;  %v1687_v15 = vsel %vm1676_vm12, nan, %v1686_v21  ;;  %vm3338_vm5 = vcmp.eq.s32.totalorder %v11246_v8, 2  ;;  %v11253_v8 = vld [vmem:[#allocation39_spill] sm:$0xff] }
 0x23c   : > { %v1789_v58 = vsel %vm1787_vm2, %v1788_v41, %v9615_v61  ;;  %v3337_v20 = vsel %vm3335_vm11, %v9714_v56, %v1681_v33  ;;  %v3340_v9 = vsel %vm3338_vm5, %v1684_v47, %v9717_v42  ;;  %vm3437_vm6 = vcmp.lt.s32.totalorder %v11247_v23, 2  ;;  %v11252_v47 = vld [vmem:[#allocation43_spill] sm:$0xff] }
 0x23d   : > { %v1790_v32 = vsel %vm1783_vm3, %v1786_v5, %v1789_v58  ;;  %vm3438_vm4 = vcmp.eq.s32.totalorder %v11247_v23, 0  ;;  %vm1988_vm14 = vweird.f32 %v9282_v39  ;;  %v3341_v13 = vsel %vm3334_vm1, %v3337_v20, %v3340_v9 }
 0x23e   : > { %v1791_v52 = vsel %vm1780_vm7, nan, %v1790_v32  ;;  %v3440_v7 = vsel %vm3438_vm4, %v9564_v31, %v1785_v6  ;;  %vm3441_vm0 = vcmp.eq.s32.totalorder %v11247_v23, 2  ;;  %v3342_v18 = vsel %vm1676_vm12, nan, %v3341_v13 }
 0x23f   : > { %v10310_v56 = vpack.c.bf16 %v1791_v52, %v1687_v15  ;;  %v3443_v42 = vsel %vm3441_vm0, %v1788_v41, %v9615_v61  ;;  %vm1887_vm10 = vcmp.lt.s32.totalorder %v9800_v24, 2  ;;  %vm1888_vm9 = vcmp.eq.s32.totalorder %v9800_v24, 0 }
 0x240   : > { %v3444_v45 = vsel %vm3437_vm6, %v3440_v7, %v3443_v42  ;;  %v1889_v37 = vxor.u32 2147483648, %v9888_v17  ;;  %vm1891_vm3 = vcmp.eq.s32.totalorder %v9800_v24, 2  ;;  %v1892_v63 = vxor.u32 2147483648, %v11248_v36 }
 0x241   : > { %7574 = vmatprep.mubr.msk.bf16.mxu0 %vm4107_vm8, %v10310_v56  ;;  %v3445_v31 = vsel %vm1780_vm7, nan, %v3444_v45  ;;  %vm1991_vm12 = vcmp.lt.s32.totalorder %v11249_v29, 2  ;;  %vm1992_vm13 = vcmp.eq.s32.totalorder %v11249_v29, 0  ;;  %v1993_v43 = vxor.u32 2147483648, %v11250_v26 }
 0x242   : > { %v10326_v61 = vpack.c.bf16 %v3445_v31, %v3342_v18  ;;  %v1890_v3 = vsel %vm1888_vm9, %v11248_v36, %v1889_v37  ;;  %vm1995_vm2 = vcmp.eq.s32.totalorder %v11249_v29, 2  ;;  %v10331_v25 = vpop.eup %8117  ;;  %v1893_v27 = vsel %vm1891_vm3, %v1892_v63, %v9888_v17  ;;  %v11254_v18 = vld [vmem:[#allocation49_spill] sm:$0xff] }
 0x243   : > { %v1996_v33 = vxor.u32 2147483648, %v11251_v10  ;;  %vm3540_vm7 = vcmp.lt.s32.totalorder %v11252_v47, 2  ;;  %vm3541_vm1 = vcmp.eq.s32.totalorder %v11252_v47, 0  ;;  %v10337_v59 = vpop.eup %8119  ;;  %vm2092_vm11 = vweird.f32 %v9622_v2 }
 0x244   : > { %7612 = vmatprep.mubr.msk.bf16.mxu1 %vm4107_vm8, %v10326_v61  ;;  %v1894_v6 = vsel %vm1887_vm10, %v1890_v3, %v1893_v27  ;;  %v1994_v46 = vsel %vm1992_vm13, %v11251_v10, %v1993_v43  ;;  %v3543_v0 = vsel %vm3541_vm1, %v11248_v36, %v1889_v37  ;;  %vm3544_vm5 = vcmp.eq.s32.totalorder %v11252_v47, 2 }
 0x245   : > { %v1895_v41 = vsel %vm1884_vm15, nan, %v1894_v6  ;;  %v1997_v21 = vsel %vm1995_vm2, %v1996_v33, %v11250_v26  ;;  %v3546_v5 = vsel %vm3544_vm5, %v1892_v63, %v9888_v17  ;;  %vm3643_vm6 = vcmp.lt.s32.totalorder %v11253_v8, 2 }
 0x246   : > { %vm2196_vm4 = vweird.f32 %v9603_v51  ;;  %v1998_v24 = vsel %vm1991_vm12, %v1994_v46, %v1997_v21  ;;  %v3547_v15 = vsel %vm3540_vm7, %v3543_v0, %v3546_v5  ;;  %vm3644_vm0 = vcmp.eq.s32.totalorder %v11253_v8, 0 }
 0x247   : > { %vm3647_vm10 = vcmp.eq.s32.totalorder %v11253_v8, 2  ;;  %v1999_v58 = vsel %vm1988_vm14, nan, %v1998_v24  ;;  %v3548_v20 = vsel %vm1884_vm15, nan, %v3547_v15  ;;  %v3646_v17 = vsel %vm3644_vm0, %v11251_v10, %v1993_v43  ;;  %v11255_v43 = vld [vmem:[#allocation45_spill] sm:$0xff] }
 0x248   : > { %v3649_v32 = vsel %vm3647_vm10, %v1996_v33, %v11250_v26  ;;  %v10363_v9 = vpack.c.bf16 %v1999_v58, %v1895_v41  ;;  %vm2095_vm9 = vcmp.lt.s32.totalorder %v9926_v19, 2  ;;  %vm2096_vm3 = vcmp.eq.s32.totalorder %v9926_v19, 0 }
 0x249   : > { %v3650_v23 = vsel %vm3643_vm6, %v3646_v17, %v3649_v32  ;;  %v2097_v13 = vxor.u32 2147483648, %v10079_v57  ;;  %vm2099_vm12 = vcmp.eq.s32.totalorder %v9926_v19, 2  ;;  %v2100_v16 = vxor.u32 2147483648, %v10067_v38 }
 0x24a   : > { %v3651_v52 = vsel %vm1988_vm14, nan, %v3650_v23  ;;  %7575 = vmatmul.mubr.msk.bf16.gmra.mxu0 %vm4107_vm8, %v10363_v9  ;;  %vm2199_vm15 = vcmp.lt.s32.totalorder %v11254_v18, 2  ;;  %vm2200_vm13 = vcmp.eq.s32.totalorder %v11254_v18, 0  ;;  %v2201_v42 = vxor.u32 2147483648, %v9998_v60 }
 0x24b   : > { %v10374_v7 = vpack.c.bf16 %v3651_v52, %v3548_v20  ;;  %v2098_v39 = vsel %vm2096_vm3, %v10067_v38, %v2097_v13  ;;  %v2101_v45 = vsel %vm2099_vm12, %v2100_v16, %v10079_v57  ;;  %vm2203_vm14 = vcmp.eq.s32.totalorder %v11254_v18, 2  ;;  %v11271_v18 = vld [vmem:[#allocation48_spill] sm:$0xff] }
 0x24c   : > { %v2204_v37 = vxor.u32 2147483648, %v9975_v50  ;;  %v2102_v31 = vsel %vm2095_vm9, %v2098_v39, %v2101_v45  ;;  %v2202_v36 = vsel %vm2200_vm13, %v9975_v50, %v2201_v42  ;;  %vm3746_vm2 = vcmp.lt.s32.totalorder %v9895_v1, 2 }
 0x24d   : > { %7613 = vmatmul.mubr.msk.bf16.gmra.mxu1 %vm4107_vm8, %v10374_v7  ;;  %vm3747_vm7 = vcmp.eq.s32.totalorder %v9895_v1, 0  ;;  %vm2300_vm1 = vweird.f32 %v9825_v54  ;;  %v2103_v63 = vsel %vm2092_vm11, nan, %v2102_v31  ;;  %vm3750_vm5 = vcmp.eq.s32.totalorder %v9895_v1, 2 }
 0x24e   : > { %v2205_v29 = vsel %vm2203_vm14, %v2204_v37, %v9998_v60  ;;  %v3749_v3 = vsel %vm3747_vm7, %v10067_v38, %v2097_v13  ;;  %v3752_v26 = vsel %vm3750_vm5, %v2100_v16, %v10079_v57  ;;  %vm3849_vm6 = vcmp.lt.s32.totalorder %v11255_v43, 2  ;;  %v11267_v13 = vld [vmem:[#allocation42_spill] sm:$0xff]  ;;  %v11269_v16 = vld [vmem:[#allocation47_spill] sm:$0xff] }
 0x24f   : > { %v2206_v19 = vsel %vm2199_vm15, %v2202_v36, %v2205_v29  ;;  %vm3850_vm0 = vcmp.eq.s32.totalorder %v11255_v43, 0  ;;  %vm2404_vm10 = vweird.f32 %v9691_v53  ;;  %v3753_v10 = vsel %vm3746_vm2, %v3749_v3, %v3752_v26  ;;  %v11259_v53 = vld [vmem:[#allocation32_spill] sm:$0xff] }
 0x250   : > { %v2207_v27 = vsel %vm2196_vm4, nan, %v2206_v19  ;;  %v3852_v33 = vsel %vm3850_vm0, %v9975_v50, %v2201_v42  ;;  %vm3853_vm9 = vcmp.eq.s32.totalorder %v11255_v43, 2  ;;  %v3754_v38 = vsel %vm2092_vm11, nan, %v3753_v10 }
 0x251   : > { %v10406_v1 = vpack.c.bf16 %v2207_v27, %v2103_v63  ;;  %v3855_v57 = vsel %vm3853_vm9, %v2204_v37, %v9998_v60  ;;  %vm2303_vm3 = vcmp.lt.s32.totalorder %v10122_v11, 2  ;;  %vm2304_vm12 = vcmp.eq.s32.totalorder %v10122_v11, 0 }
 0x252   : > { %v3856_v47 = vsel %vm3849_vm6, %v3852_v33, %v3855_v57  ;;  %v2305_v6 = vxor.u32 2147483648, %v10337_v59  ;;  %vm2307_vm15 = vcmp.eq.s32.totalorder %v10122_v11, 2  ;;  %v2308_v2 = vxor.u32 2147483648, %v10331_v25 }
 0x253   : > { %7578 = vmatprep.mubr.msk.bf16.mxu0 %vm4107_vm8, %v10406_v1  ;;  %v3857_v50 = vsel %vm2196_vm4, nan, %v3856_v47  ;;  %vm2407_vm11 = vcmp.lt.s32.totalorder %v10025_v28, 2  ;;  %vm2408_vm13 = vcmp.eq.s32.totalorder %v10025_v28, 0  ;;  %v2409_v0 = vxor.u32 2147483648, %v10229_v14  ;;  %v10545_v47 = vld [vmem:[%s11021_s8] sm:$0xff] }
 0x254   : > { %v10422_v60 = vpack.c.bf16 %v3857_v50, %v3754_v38  ;;  %v2306_v46 = vsel %vm2304_vm12, %v10331_v25, %v2305_v6  ;;  %vm2411_vm14 = vcmp.eq.s32.totalorder %v10025_v28, 2  ;;  %v2309_v41 = vsel %vm2307_vm15, %v2308_v2, %v10337_v59  ;;  %v8201_v28 = vld [vmem:[%s11017_s4] sm:$0xf] }
 0x255   : > { %v2412_v21 = vxor.u32 2147483648, %v10224_v44  ;;  %vm3952_vm4 = vcmp.lt.s32.totalorder %v10110_v40, 2  ;;  %vm3953_vm2 = vcmp.eq.s32.totalorder %v10110_v40, 0  ;;  %v2310_v51 = vsel %vm2303_vm3, %v2306_v46, %v2309_v41 }
 0x256   : > { %7616 = vmatprep.mubr.msk.bf16.mxu1 %vm4107_vm8, %v10422_v60  ;;  %v2410_v5 = vsel %vm2408_vm13, %v10224_v44, %v2409_v0  ;;  %v3955_v8 = vsel %vm3953_vm2, %v10331_v25, %v2305_v6  ;;  %vm3956_vm7 = vcmp.eq.s32.totalorder %v10110_v40, 2  ;;  %v2311_v24 = vsel %vm2300_vm1, nan, %v2310_v51 }
 0x257   : > { %v2413_v15 = vsel %vm2411_vm14, %v2412_v21, %v10229_v14  ;;  %v3958_v58 = vsel %vm3956_vm7, %v2308_v2, %v10337_v59  ;;  %vm4055_vm5 = vcmp.lt.s32.totalorder %v10013_v48, 2  ;;  %vm4056_vm6 = vcmp.eq.s32.totalorder %v10013_v48, 0 }
 0x258   : > { %v2414_v20 = vsel %vm2407_vm11, %v2410_v5, %v2413_v15  ;;  %v3959_v11 = vsel %vm3952_vm4, %v3955_v8, %v3958_v58  ;;  %vm4059_vm0 = vcmp.eq.s32.totalorder %v10013_v48, 2  ;;  %v4058_v17 = vsel %vm4056_vm6, %v10224_v44, %v2409_v0  ;;  %v11257_v44 = vld [vmem:[#allocation30_spill] sm:$0xff] }
 0x259   : > { %v2415_v40 = vsel %vm2404_vm10, nan, %v2414_v20  ;;  %v3960_v25 = vsel %vm2300_vm1, nan, %v3959_v11  ;;  %v4061_v59 = vsel %vm4059_vm0, %v2412_v21, %v10229_v14  ;;  %vm11256_vm9 = vcmask 1043456   ;;  %v8014_v14 = vld [vmem:[%s11019_s6] sm:$0xff]  }
 0x25a   : > { %v4079_v32 = vpack.c.bf16 %v2415_v40, %v2311_v24  ;;  %v4062_v23 = vsel %vm4055_vm5, %v4058_v17, %v4061_v59  ;;  %v4666_v52 = vsel %vm11256_vm9, %v8201_v28, 0  ;;  %vm11258_vm1 = vcmask 64512  }
 0x25b   : > { %v4063_v48 = vsel %vm2404_vm10, nan, %v4062_v23  ;;  %7641 = vmatpush3.bf16.msra.mxu1 %v4666_v52  ;;  %vm11260_vm10 = vmmov %vm11258_vm1  ;;  %v4507_v26 = vlaneseq  ;;  %vm4930_vm4 = vcmask 523264   ;;  %vm6936_vm2 = vcmask 31768  }
 0x25c   : > { %7579 = vmatmul.mubr.msk.bf16.gmra.mxu0 %vm4107_vm8, %v4079_v32  ;;  %v4087_v54 = vpack.c.bf16 %v4063_v48, %v3960_v25  ;;  %vm11262_vm3 = vmmov %vm11258_vm1 }
 0x25d   : > { %7624 = vmatprep.mubr.msk.bf16.mxu0 %vm4107_vm8, %v10093_v49  ;;  %v11261_v49 = vld [vmem:[#allocation37_spill] sm:$0xff]  ;;  %vm11264_vm12 = vmmov %vm11258_vm1  ;;  %v10539_v27 = vshrl.u32 %v4507_v26, 7 }
 0x25e   : > { %7617 = vmatmul.mubr.msk.bf16.gmra.mxu1 %vm4107_vm8, %v4087_v54  ;;  %vm11266_vm15 = vmmov %vm11258_vm1 }
 0x25f   : > { %7642 = vmatprep.mubr.msk.bf16.mxu1 %vm11258_vm1, %v11257_v44  ;;  %vm11268_vm11 = vmmov %vm11258_vm1  ;;  %v4509_v38 = vsub.s32 0, %v10539_v27 }
 0x260   : > { %vm11270_vm13 = vmmov %vm11258_vm1 }
 0x261   : > { %vm11272_vm14 = vmmov %vm11258_vm1  ;;  %v10550_v41 = vrot.slane %v10545_v47, %v4509_v38 }
 0x264   : > { %7625 = vmatmul.mubr.msk.bf16.vlgmr.msra.gmra.mxu0 %vm4107_vm8, %v10155_v22  ;;  %v11263_v22 = vld [vmem:[#allocation38_spill] sm:$0xff] }
 0x265   : > { %7628 = vmatprep.mubr.msk.bf16.mxu0 %vm4107_vm8, %v10205_v4  ;;  %7659 = vmatpush3.bf16.msra.mxu0 %v10181_v55  ;;  %v11265_v4 = vld [vmem:[#allocation41_spill] sm:$0xff] }
 0x266   : > { %7643 = vmatmul.mubr.msk.bf16.vlgmr.msra.gmra.mxu1 %vm11260_vm10, %v11259_v53  ;;  %7660 = vmatprep.subr.bf16.mxu0 %v8014_v14  ;;  %v8015_v55 = vld [vmem:[%s11020_s7 + $0x18] sm:$0xff]  }
 0x267   : > { %7646 = vmatprep.mubr.msk.bf16.mxu1 %vm11262_vm3, %v11261_v49  ;;  %7678 = vmatprep.subr.bf16.mxu1 %v8015_v55 }
 0x268   : > { %7679 = vmatpush3.bf16.msra.mxu1 %v8015_v55 }
 0x269   : > { %7661 = vmatpush3.bf16.msra.mxu0 %v8014_v14 }
 0x26c   : > { %7629 = vmatmul.mubr.msk.bf16.gmra.mxu0 %vm4107_vm8, %v10262_v34  ;;  %v8016_v34 = vld [vmem:[%s11020_s7 + $0x10] sm:$0xff]  }
 0x26d   : > { %7632 = vmatprep.mubr.msk.bf16.mxu0 %vm4107_vm8, %v10310_v56  ;;  %v8017_v56 = vld [vmem:[%s11020_s7 + $0x8] sm:$0xff]   ;;  %7680 = vmatprep.subr.bf16.mxu1 %v8016_v34 }
 0x26e   : > { %7647 = vmatmul.mubr.msk.bf16.gmra.mxu1 %vm11264_vm12, %v11263_v22 }
 0x26f   : > { %7650 = vmatprep.mubr.msk.bf16.mxu1 %vm11266_vm15, %v11265_v4  ;;  %7681 = vmatpush3.bf16.msra.mxu1 %v8016_v34 }
 0x270   : > { %7682 = vmatprep.subr.bf16.mxu1 %v8017_v56 }
 0x273   : > { %7683 = vmatpush3.bf16.msra.mxu1 %v8017_v56 }
 0x274   : > { %7633 = vmatmul.mubr.msk.bf16.gmra.mxu0 %vm4107_vm8, %v10363_v9  ;;  %v8018_v9 = vld [vmem:[%s11020_s7] sm:$0xff]  }
 0x275   : > { %7636 = vmatprep.mubr.msk.bf16.mxu0 %vm4107_vm8, %v10406_v1  ;;  %7684 = vmatprep.subr.bf16.mxu1 %v8018_v9 }
 0x276   : > { %7651 = vmatmul.mubr.msk.bf16.gmra.mxu1 %vm11268_vm11, %v11267_v13 }
 0x277   : > { %7654 = vmatprep.mubr.msk.bf16.mxu1 %vm11270_vm13, %v11269_v16  ;;  %7685 = vmatpush3.bf16.msra.mxu1 %v8018_v9 }
 0x27c   : > { %7637 = vmatmul.mubr.msk.bf16.gmra.mxu0 %vm4107_vm8, %v4079_v32 }
 0x27d   : > { %7662 = vmatprep.mubr.msk.bf16.mxu0 %vm4107_vm8, %v10106_v30  ;;  %v7586_v30 = vpop.f32.mrf.mxu1 }
 0x27e   : > { %7655 = vmatmul.mubr.msk.bf16.gmra.mxu1 %vm11272_vm14, %v11271_v18 }
 0x27f   : > { %v4291_v42 = vpop.f32.mrf.mxu1 }
 0x284   : > { %7663 = vmatmul.mubr.msk.bf16.vlgmr.msra.gmra.mxu0 %vm4107_vm8, %v11220_v12  ;;  %v7587_v12 = vpop.f32.mrf.mxu1 }
 0x285   : > { %7666 = vmatprep.mubr.msk.bf16.mxu0 %vm4107_vm8, %v10219_v35 }
 0x286   : > { %v4294_v39 = vpop.f32.mrf.mxu1 }
 0x288   : > { %v7590_v45 = vpop.f32.mrf.mxu1 }
 0x28a   : > { %v4307_v35 = vpop.f32.mrf.mxu1 }
 0x28c   : > { %7667 = vmatmul.mubr.msk.bf16.gmra.mxu0 %vm4107_vm8, %v10278_v62  ;;  %v7591_v37 = vpop.f32.mrf.mxu1 }
 0x28d   : > { %7670 = vmatprep.mubr.msk.bf16.mxu0 %vm4107_vm8, %v10326_v61 }
 0x28e   : > { %v4310_v31 = vpop.f32.mrf.mxu1 }
 0x290   : > { %v10523_v62 = vpop.f32.mrf.mxu1 }
 0x292   : > { %v10525_v36 = vpop.f32.mrf.mxu1 }
 0x294   : > { %7671 = vmatmul.mubr.msk.bf16.gmra.mxu0 %vm4107_vm8, %v10374_v7  ;;  %v10527_v61 = vpop.f32.mrf.mxu1 }
 0x295   : > { %7674 = vmatprep.mubr.msk.bf16.mxu0 %vm4107_vm8, %v10422_v60 }
 0x296   : > { %v10529_v7 = vpop.f32.mrf.mxu1 }
 0x29c   : > { %7675 = vmatmul.mubr.msk.bf16.gmra.mxu0 %vm4107_vm8, %v4087_v54 }
 0x2a0   : > { %v10531_v63 = vpop.f32.mrf.mxu1 }
 0x2a2   : > { %v10533_v29 = vpop.f32.mrf.mxu1 }
 0x2a4   : > { %v10535_v3 = vpop.f32.mrf.mxu1 }
 0x2a6   : > { %v10537_v19 = vpop.f32.mrf.mxu1 }
 0x2db   : > { %v7606_v43 = vpop.f32.mrf.mxu1 }
 0x2dd   : > { %v4428_v33 = vpop.f32.mrf.mxu1 }
 0x2df   : > { %v7607_v2 = vpop.f32.mrf.mxu1 }
 0x2e1   : > { %v4431_v8 = vpop.f32.mrf.mxu1 }
 0x2e4   : > { %v7568_v10 = vpop.f32.mrf.mxu0 }
 0x2e5   : > { %v4300_v1 = vadd.f32 %v7586_v30, %v7568_v10 }
 0x2e6   : > { %v4166_v57 = vpop.f32.mrf.mxu0 }
 0x2e7   : > { %v4292_v6 = vadd.f32 %v4291_v42, %v4166_v57  ;;  %v4493_v0 = vadd.f32 %v7606_v43, %v4300_v1 }
 0x2e8   : > { %v7569_v50 = vpop.f32.mrf.mxu0 }
 0x2e9   : > { %v4491_v60 = vadd.f32 %v4428_v33, %v4292_v6  ;;  %v4303_v46 = vadd.f32 %v7587_v12, %v7569_v50  ;;  %v4513_v20 = vadd.f32 %v10550_v41, %v4493_v0 }
 0x2ea   : > { %v4169_v21 = vpop.f32.mrf.mxu0 }
 0x2eb   : > { %v4494_v51 = vadd.f32 %v7607_v2, %v4303_v46  ;;  %v4295_v5 = vadd.f32 %v4294_v39, %v4169_v21  ;;  %5614 = vrot.lane.b32.xlu0 %v4491_v60, %s8220_s22  ;;  %v4511_v24 = vadd.f32 %v10550_v41, %v4491_v60  ;;  %v4529_v59 = vmax.f32 %v4513_v20, 0.0 }
 0x2ed   : > { %v4514_v15 = vadd.f32 %v10550_v41, %v4494_v51  ;;  %v4492_v58 = vadd.f32 %v4431_v8, %v4295_v5  ;;  %v4527_v25 = vmax.f32 %v4511_v24, 0.0 }
 0x2ef   : > { %v4512_v11 = vadd.f32 %v10550_v41, %v4492_v58  ;;  %5618 = vrot.lane.b32.xlu0 %v4493_v0, %s8220_s22  ;;  %5616 = vrot.lane.b32.xlu1 %v4492_v58, %s8220_s22  ;;  %v4530_v40 = vmax.f32 %v4514_v15, 0.0 }
 0x2f1   : > { %v4528_v17 = vmax.f32 %v4512_v11, 0.0  ;;  %v4544_v23 = vpack.c.bf16 %v4530_v40, %v4529_v59  ;;  %v8019_v59 = vld [vmem:[%s11020_s7 + $0x38] sm:$0xff]  }
 0x2f2   : > { %7702 = vmatprep.subr.bf16.mxu0 %v8019_v59 }
 0x2f3   : > { %v4543_v32 = vpack.c.bf16 %v4528_v17, %v4527_v25  ;;  %5620 = vrot.lane.b32.xlu1 %v4494_v51, %s8220_s22  ;;  %7703 = vmatpush3.bf16.msra.mxu0 %v8019_v59 }
 0x2f5   : > { %7686 = vmatprep.mubr.msk.bf16.mxu1 %vm4930_vm4, %v4543_v32 }
 0x2f6   : > { %7687 = vmatmul.mubr.msk.bf16.vlgmr.msra.gmra.mxu1 %vm4930_vm4, %v4544_v23 }
 0x2f7   : > { %v7572_v28 = vpop.f32.mrf.mxu0 }
 0x2f8   : > { %v4316_v48 = vadd.f32 %v7590_v45, %v7572_v28 }
 0x2f9   : > { %v4182_v52 = vpop.f32.mrf.mxu0 }
 0x2fa   : > { %v4308_v44 = vadd.f32 %v4307_v35, %v4182_v52 }
 0x2fb   : > { %v7610_v54 = vpop.f32.mrf.mxu1  ;;  %v7573_v14 = vpop.f32.mrf.mxu0 }
 0x2fc   : > { %v4319_v49 = vadd.f32 %v7591_v37, %v7573_v14  ;;  %v4497_v55 = vadd.f32 %v7610_v54, %v4316_v48 }
 0x2fd   : > { %v4444_v53 = vpop.f32.mrf.mxu1  ;;  %v4185_v4 = vpop.f32.mrf.mxu0 }
 0x2fe   : > { %v4495_v22 = vadd.f32 %v4444_v53, %v4308_v44  ;;  %v4311_v56 = vadd.f32 %v4310_v31, %v4185_v4  ;;  %v4517_v42 = vadd.f32 %v10550_v41, %v4497_v55 }
 0x2ff   : > { %v7611_v34 = vpop.f32.mrf.mxu1 }
 0x300   : > { %v4498_v13 = vadd.f32 %v7611_v34, %v4319_v49  ;;  %5622 = vrot.lane.b32.xlu0 %v4495_v22, %s8220_s22  ;;  %v4515_v9 = vadd.f32 %v10550_v41, %v4495_v22  ;;  %v4533_v37 = vmax.f32 %v4517_v42, 0.0 }
 0x301   : > { %v4447_v16 = vpop.f32.mrf.mxu1 }
 0x302   : > { %v4518_v18 = vadd.f32 %v10550_v41, %v4498_v13  ;;  %v4496_v30 = vadd.f32 %v4447_v16, %v4311_v56  ;;  %v4531_v45 = vmax.f32 %v4515_v9, 0.0 }
 0x304   : > { %v4516_v12 = vadd.f32 %v10550_v41, %v4496_v30  ;;  %5626 = vrot.lane.b32.xlu0 %v4497_v55, %s8220_s22  ;;  %5624 = vrot.lane.b32.xlu1 %v4496_v30, %s8220_s22  ;;  %v4534_v39 = vmax.f32 %v4518_v18, 0.0 }
 0x306   : > { %v4532_v35 = vmax.f32 %v4516_v12, 0.0  ;;  %v4546_v26 = vpack.c.bf16 %v4534_v39, %v4533_v37 }
 0x308   : > { %v4545_v31 = vpack.c.bf16 %v4532_v35, %v4531_v45  ;;  %5628 = vrot.lane.b32.xlu1 %v4498_v13, %s8220_s22 }
 0x30a   : > { %7690 = vmatprep.mubr.msk.bf16.mxu1 %vm4930_vm4, %v4545_v31  ;;  %v7576_v43 = vpop.f32.mrf.mxu0 }
 0x30b   : > { %7691 = vmatmul.mubr.msk.bf16.gmra.mxu1 %vm4930_vm4, %v4546_v26  ;;  %v4332_v10 = vadd.f32 %v10523_v62, %v7576_v43 }
 0x30c   : > { %v4198_v1 = vpop.f32.mrf.mxu0 }
 0x30d   : > { %v7614_v33 = vpop.f32.mrf.mxu1  ;;  %v4324_v57 = vadd.f32 %v10525_v36, %v4198_v1 }
 0x30e   : > { %v7577_v50 = vpop.f32.mrf.mxu0  ;;  %v4501_v46 = vadd.f32 %v7614_v33, %v4332_v10 }
 0x30f   : > { %v4460_v6 = vpop.f32.mrf.mxu1  ;;  %v4335_v60 = vadd.f32 %v10527_v61, %v7577_v50 }
 0x310   : > { %v4499_v2 = vadd.f32 %v4460_v6, %v4324_v57  ;;  %v4201_v21 = vpop.f32.mrf.mxu0  ;;  %v4521_v36 = vadd.f32 %v10550_v41, %v4501_v46 }
 0x311   : > { %v7615_v0 = vpop.f32.mrf.mxu1  ;;  %v4327_v5 = vadd.f32 %v10529_v7, %v4201_v21 }
 0x312   : > { %v4502_v51 = vadd.f32 %v7615_v0, %v4335_v60  ;;  %5630 = vrot.lane.b32.xlu0 %v4499_v2, %s8220_s22  ;;  %v4519_v62 = vadd.f32 %v10550_v41, %v4499_v2  ;;  %v4537_v7 = vmax.f32 %v4521_v36, 0.0 }
 0x313   : > { %v4463_v8 = vpop.f32.mrf.mxu1 }
 0x314   : > { %v4522_v24 = vadd.f32 %v10550_v41, %v4502_v51  ;;  %v4500_v15 = vadd.f32 %v4463_v8, %v4327_v5  ;;  %v4535_v20 = vmax.f32 %v4519_v62, 0.0 }
 0x316   : > { %v4520_v58 = vadd.f32 %v10550_v41, %v4500_v15  ;;  %5634 = vrot.lane.b32.xlu0 %v4501_v46, %s8220_s22  ;;  %5632 = vrot.lane.b32.xlu1 %v4500_v15, %s8220_s22  ;;  %v4538_v61 = vmax.f32 %v4522_v24, 0.0 }
 0x318   : > { %v4536_v11 = vmax.f32 %v4520_v58, 0.0  ;;  %v4548_v25 = vpack.c.bf16 %v4538_v61, %v4537_v7 }
 0x31a   : > { %v4547_v40 = vpack.c.bf16 %v4536_v11, %v4535_v20  ;;  %5636 = vrot.lane.b32.xlu1 %v4502_v51, %s8220_s22 }
 0x31c   : > { %7694 = vmatprep.mubr.msk.bf16.mxu1 %vm4930_vm4, %v4547_v40  ;;  %v7580_v17 = vpop.f32.mrf.mxu0 }
 0x31d   : > { %7695 = vmatmul.mubr.msk.bf16.gmra.mxu1 %vm4930_vm4, %v4548_v25  ;;  %v4348_v32 = vadd.f32 %v10531_v63, %v7580_v17 }
 0x31e   : > { %v7618_v23 = vpop.f32.mrf.mxu1  ;;  %v4214_v28 = vpop.f32.mrf.mxu0 }
 0x31f   : > { %v4340_v52 = vadd.f32 %v10533_v29, %v4214_v28  ;;  %v4505_v53 = vadd.f32 %v7618_v23, %v4348_v32  ;;  %v8020_v23 = vld [vmem:[%s11020_s7 + $0x30] sm:$0xff]  }
 0x320   : > { %v4476_v48 = vpop.f32.mrf.mxu1  ;;  %v7581_v54 = vpop.f32.mrf.mxu0  ;;  %7704 = vmatprep.subr.bf16.mxu0 %v8020_v23 }
 0x321   : > { %v4503_v44 = vadd.f32 %v4476_v48, %v4340_v52  ;;  %v4351_v14 = vadd.f32 %v10535_v3, %v7581_v54  ;;  %v4525_v16 = vadd.f32 %v10550_v41, %v4505_v53  ;;  %7705 = vmatpush3.bf16.msra.mxu0 %v8020_v23 }
 0x322   : > { %v7619_v49 = vpop.f32.mrf.mxu1  ;;  %v4217_v22 = vpop.f32.mrf.mxu0 }
 0x323   : > { %v4506_v4 = vadd.f32 %v7619_v49, %v4351_v14  ;;  %v4343_v55 = vadd.f32 %v10537_v19, %v4217_v22  ;;  %5638 = vrot.lane.b32.xlu0 %v4503_v44, %s8220_s22  ;;  %v4523_v56 = vadd.f32 %v10550_v41, %v4503_v44  ;;  %v4541_v37 = vmax.f32 %v4525_v16, 0.0 }
 0x324   : > { %v4479_v63 = vpop.f32.mrf.mxu1  ;;  %v7626_v34 = vpop.f32.mrf.mxu0 }
 0x325   : > { %v4526_v29 = vadd.f32 %v10550_v41, %v4506_v4  ;;  %v4504_v13 = vadd.f32 %v4479_v63, %v4343_v55  ;;  %v4539_v39 = vmax.f32 %v4523_v56, 0.0  ;;  %v8022_v55 = vld [vmem:[%s11020_s7 + $0x20] sm:$0xff]  }
 0x326   : > { %v7644_v9 = vpop.f32.mrf.mxu1  ;;  %v4602_v18 = vpop.f32.mrf.mxu0 }
 0x327   : > { %v4524_v3 = vadd.f32 %v10550_v41, %v4504_v13  ;;  %v4711_v30 = vadd.f32 %v7644_v9, %v7626_v34  ;;  %5642 = vrot.lane.b32.xlu0 %v4505_v53, %s8220_s22  ;;  %5640 = vrot.lane.b32.xlu1 %v4504_v13, %s8220_s22  ;;  %v4542_v19 = vmax.f32 %v4526_v29, 0.0 }
 0x328   : > { %v4702_v42 = vpop.f32.mrf.mxu1  ;;  %v7627_v12 = vpop.f32.mrf.mxu0 }
 0x329   : > { %v4540_v45 = vmax.f32 %v4524_v3, 0.0  ;;  %v4703_v35 = vadd.f32 %v4702_v42, %v4602_v18  ;;  %v4550_v33 = vpack.c.bf16 %v4542_v19, %v4541_v37 }
 0x32a   : > { %v7645_v31 = vpop.f32.mrf.mxu1  ;;  %v4605_v26 = vpop.f32.mrf.mxu0 }
 0x32b   : > { %v4549_v43 = vpack.c.bf16 %v4540_v45, %v4539_v39  ;;  %v4714_v10 = vadd.f32 %v7645_v31, %v7627_v12  ;;  %5644 = vrot.lane.b32.xlu1 %v4506_v4, %s8220_s22  ;;  %v8021_v4 = vld [vmem:[%s11020_s7 + $0x28] sm:$0xff]   ;;  %s10936_s22 = scalar_lea.vmem %s11026_s13, %s7015_s28 }
 0x32c   : > { %v4705_v41 = vpop.f32.mrf.mxu1  ;;  %v7630_v1 = vpop.f32.mrf.mxu0  ;;  %7706 = vmatprep.subr.bf16.mxu0 %v8021_v4 }
 0x32d   : > { %v4706_v57 = vadd.f32 %v4705_v41, %v4605_v26  ;;  %7698 = vmatprep.mubr.msk.bf16.mxu1 %vm4930_vm4, %v4549_v43  ;;  %7707 = vmatpush3.bf16.msra.mxu0 %v8021_v4 }
 0x32e   : > { %v7648_v6 = vpop.f32.mrf.mxu1  ;;  %v4618_v50 = vpop.f32.mrf.mxu0  ;;  %7699 = vmatmul.mubr.msk.bf16.gmra.mxu1 %vm4930_vm4, %v4550_v33  ;;  %7708 = vmatprep.subr.bf16.mxu0 %v8022_v55 }
 0x32f   : > { %v4727_v2 = vadd.f32 %v7648_v6, %v7630_v1 }
 0x330   : > { %v4718_v60 = vpop.f32.mrf.mxu1  ;;  %v7631_v46 = vpop.f32.mrf.mxu0 }
 0x331   : > { %v4719_v0 = vadd.f32 %v4718_v60, %v4618_v50  ;;  %7709 = vmatpush3.bf16.msra.mxu0 %v8022_v55 }
 0x332   : > { %v7649_v21 = vpop.f32.mrf.mxu1  ;;  %v4621_v51 = vpop.f32.mrf.mxu0 }
 0x333   : > { %v4730_v5 = vadd.f32 %v7649_v21, %v7631_v46 }
 0x334   : > { %v4721_v8 = vpop.f32.mrf.mxu1  ;;  %v7634_v62 = vpop.f32.mrf.mxu0 }
 0x335   : > { %v4722_v24 = vadd.f32 %v4721_v8, %v4621_v51  ;;  %v4904_v51 = vsub.s32 1, %v10539_v27 }
 0x336   : > { %v7652_v15 = vpop.f32.mrf.mxu1  ;;  %v4634_v36 = vpop.f32.mrf.mxu0 }
 0x337   : > { %v4743_v58 = vadd.f32 %v7652_v15, %v7634_v62  ;;  %v4905_v8 = vrot.slane %v10545_v47, %v4904_v51 }
 0x338   : > { %v4734_v61 = vpop.f32.mrf.mxu1  ;;  %v7635_v20 = vpop.f32.mrf.mxu0 }
 0x339   : > { %v4735_v11 = vadd.f32 %v4734_v61, %v4634_v36 }
 0x33a   : > { %v7653_v7 = vpop.f32.mrf.mxu1  ;;  %v4637_v40 = vpop.f32.mrf.mxu0 }
 0x33b   : > { %v4746_v25 = vadd.f32 %v7653_v7, %v7635_v20 }
 0x33c   : > { %v4737_v17 = vpop.f32.mrf.mxu1  ;;  %v7638_v59 = vpop.f32.mrf.mxu0 }
 0x33d   : > { %v4738_v32 = vadd.f32 %v4737_v17, %v4637_v40 }
 0x33e   : > { %v7656_v28 = vpop.f32.mrf.mxu1  ;;  %v4650_v52 = vpop.f32.mrf.mxu0 }
 0x33f   : > { %v4759_v48 = vadd.f32 %v7656_v28, %v7638_v59 }
 0x340   : > { %v4750_v54 = vpop.f32.mrf.mxu1  ;;  %v7639_v44 = vpop.f32.mrf.mxu0 }
 0x341   : > { %v4751_v14 = vadd.f32 %v4750_v54, %v4650_v52 }
 0x342   : > { %v7657_v53 = vpop.f32.mrf.mxu1  ;;  %v10606_v49 = vpop.f32.mrf.mxu0 }
 0x343   : > { %v4762_v22 = vadd.f32 %v7657_v53, %v7639_v44 }
 0x344   : > { %v7664_v63 = vpop.f32.mrf.mxu0  ;;  %v10647_v21 = vpop.f32.mrf.mxu1 }
 0x345   : > { %v10614_v34 = vadd.f32 %v7664_v63, %v4711_v30 }
 0x346   : > { %v4815_v56 = vpop.f32.mrf.mxu0 }
 0x347   : > { %v10616_v29 = vadd.f32 %v4815_v56, %v4703_v35 }
 0x348   : > { %v7665_v13 = vpop.f32.mrf.mxu0 }
 0x349   : > { %v10618_v16 = vadd.f32 %v7665_v13, %v4714_v10 }
 0x34a   : > { %v4818_v9 = vpop.f32.mrf.mxu0 }
 0x34b   : > { %v10620_v18 = vadd.f32 %v4818_v9, %v4706_v57 }
 0x34c   : > { %v7668_v3 = vpop.f32.mrf.mxu0 }
 0x34d   : > { %v10622_v19 = vadd.f32 %v7668_v3, %v4727_v2 }
 0x34e   : > { %v4831_v42 = vpop.f32.mrf.mxu0 }
 0x34f   : > { %v10624_v12 = vadd.f32 %v4831_v42, %v4719_v0  ;;  %v8023_v0 = vld [vmem:[%s11020_s7 + $0x58] sm:$0xff]  }
 0x350   : > { %v7669_v30 = vpop.f32.mrf.mxu0  ;;  %7726 = vmatprep.subr.bf16.mxu1 %v8023_v0 }
 0x351   : > { %v10626_v39 = vadd.f32 %v7669_v30, %v4730_v5  ;;  %7727 = vmatpush3.bf16.msra.mxu1 %v8023_v0 }
 0x352   : > { %v4834_v45 = vpop.f32.mrf.mxu0 }
 0x353   : > { %v10628_v35 = vadd.f32 %v4834_v45, %v4722_v24 }
 0x354   : > { %v7672_v37 = vpop.f32.mrf.mxu0 }
 0x355   : > { %v10630_v31 = vadd.f32 %v7672_v37, %v4743_v58 }
 0x356   : > { %v4847_v26 = vpop.f32.mrf.mxu0 }
 0x357   : > { %v10632_v43 = vadd.f32 %v4847_v26, %v4735_v11 }
 0x358   : > { %v7673_v10 = vpop.f32.mrf.mxu0 }
 0x359   : > { %v10634_v33 = vadd.f32 %v7673_v10, %v4746_v25 }
 0x35a   : > { %v4850_v41 = vpop.f32.mrf.mxu0 }
 0x35b   : > { %v10636_v1 = vadd.f32 %v4850_v41, %v4738_v32 }
 0x35c   : > { %v7676_v57 = vpop.f32.mrf.mxu0 }
 0x35d   : > { %v10638_v6 = vadd.f32 %v7676_v57, %v4759_v48 }
 0x35e   : > { %v4863_v50 = vpop.f32.mrf.mxu0 }
 0x35f   : > { %v10640_v2 = vadd.f32 %v4863_v50, %v4751_v14 }
 0x360   : > { %v7677_v60 = vpop.f32.mrf.mxu0 }
 0x361   : > { %v10642_v46 = vadd.f32 %v7677_v60, %v4762_v22 }
 0x3b6   : > { %v7688_v5 = vpop.f32.mrf.mxu1 }
 0x3b7   : > { %v4998_v58 = vadd.f32 %v7688_v5, %v4905_v8 }
 0x3b8   : > { %v4989_v62 = vpop.f32.mrf.mxu1 }
 0x3b9   : > { %v4990_v15 = vadd.f32 %v4989_v62, %v4905_v8  ;;  %v5054_v25 = vmax.f32 %v4998_v58, 0.0 }
 0x3ba   : > { %v7689_v24 = vpop.f32.mrf.mxu1 }
 0x3bb   : > { %v5001_v36 = vadd.f32 %v7689_v24, %v4905_v8  ;;  %v5052_v7 = vmax.f32 %v4990_v15, 0.0 }
 0x3bc   : > { %v4992_v61 = vpop.f32.mrf.mxu1 }
 0x3bd   : > { %v4993_v20 = vadd.f32 %v4992_v61, %v4905_v8  ;;  %v5055_v11 = vmax.f32 %v5001_v36, 0.0 }
 0x3bf   : > { %v5053_v40 = vmax.f32 %v4993_v20, 0.0  ;;  %v5069_v59 = vpack.c.bf16 %v5055_v11, %v5054_v25 }
 0x3c1   : > { %v5068_v17 = vpack.c.bf16 %v5053_v40, %v5052_v7 }
 0x3c3   : > { %7710 = vmatprep.mubr.msk.bf16.mxu0 %vm4930_vm4, %v5068_v17 }
 0x3c4   : > { %7711 = vmatmul.mubr.msk.bf16.vlgmr.msra.gmra.mxu0 %vm4930_vm4, %v5069_v59 }
 0x3cb   : > { %v7692_v32 = vpop.f32.mrf.mxu1 }
 0x3cc   : > { %v5014_v54 = vadd.f32 %v7692_v32, %v4905_v8  ;;  %v8024_v32 = vld [vmem:[%s11020_s7 + $0x50] sm:$0xff]  }
 0x3cd   : > { %v5005_v23 = vpop.f32.mrf.mxu1  ;;  %7728 = vmatprep.subr.bf16.mxu1 %v8024_v32 }
 0x3ce   : > { %v5006_v52 = vadd.f32 %v5005_v23, %v4905_v8  ;;  %v5058_v55 = vmax.f32 %v5014_v54, 0.0  ;;  %7729 = vmatpush3.bf16.msra.mxu1 %v8024_v32  ;;  %v8026_v23 = vld [vmem:[%s11020_s7 + $0x40] sm:$0xff]  }
 0x3cf   : > { %v7693_v28 = vpop.f32.mrf.mxu1 }
 0x3d0   : > { %v5017_v48 = vadd.f32 %v7693_v28, %v4905_v8  ;;  %v5056_v22 = vmax.f32 %v5006_v52, 0.0  ;;  %v8027_v28 = vld [vmem:[%s11020_s7 + $0x78] sm:$0xff]   ;;  %v10673_v52 = vpop.f32.mrf.mxu0 }
 0x3d1   : > { %v5008_v44 = vpop.f32.mrf.mxu1  ;;  %7750 = vmatprep.subr.bf16.mxu0 %v8027_v28 }
 0x3d2   : > { %v5009_v14 = vadd.f32 %v5008_v44, %v4905_v8  ;;  %v5059_v53 = vmax.f32 %v5017_v48, 0.0  ;;  %7751 = vmatpush3.bf16.msra.mxu0 %v8027_v28  ;;  %v5087_v48 = vsub.s32 2, %v10539_v27 }
 0x3d4   : > { %v5057_v4 = vmax.f32 %v5009_v14, 0.0  ;;  %v5071_v56 = vpack.c.bf16 %v5059_v53, %v5058_v55  ;;  %v5088_v44 = vrot.slane %v10545_v47, %v5087_v48 }
 0x3d6   : > { %v5070_v63 = vpack.c.bf16 %v5057_v4, %v5056_v22 }
 0x3d8   : > { %7714 = vmatprep.mubr.msk.bf16.mxu0 %vm4930_vm4, %v5070_v63 }
 0x3d9   : > { %7715 = vmatmul.mubr.msk.bf16.gmra.mxu0 %vm4930_vm4, %v5071_v56 }
 0x3dd   : > { %v7696_v13 = vpop.f32.mrf.mxu1 }
 0x3de   : > { %v5030_v45 = vadd.f32 %v7696_v13, %v4905_v8 }
 0x3df   : > { %v5021_v9 = vpop.f32.mrf.mxu1 }
 0x3e0   : > { %v5022_v42 = vadd.f32 %v5021_v9, %v4905_v8  ;;  %v5062_v50 = vmax.f32 %v5030_v45, 0.0 }
 0x3e1   : > { %v7697_v3 = vpop.f32.mrf.mxu1 }
 0x3e2   : > { %v5033_v30 = vadd.f32 %v7697_v3, %v4905_v8  ;;  %v5060_v41 = vmax.f32 %v5022_v42, 0.0 }
 0x3e3   : > { %v5024_v37 = vpop.f32.mrf.mxu1 }
 0x3e4   : > { %v5025_v26 = vadd.f32 %v5024_v37, %v4905_v8  ;;  %v5063_v10 = vmax.f32 %v5033_v30, 0.0 }
 0x3e6   : > { %v5061_v57 = vmax.f32 %v5025_v26, 0.0  ;;  %v5073_v0 = vpack.c.bf16 %v5063_v10, %v5062_v50 }
 0x3e8   : > { %v5072_v60 = vpack.c.bf16 %v5061_v57, %v5060_v41 }
 0x3ea   : > { %7718 = vmatprep.mubr.msk.bf16.mxu0 %vm4930_vm4, %v5072_v60 }
 0x3eb   : > { %7719 = vmatmul.mubr.msk.bf16.gmra.mxu0 %vm4930_vm4, %v5073_v0 }
 0x3ee   : > { %v7700_v5 = vpop.f32.mrf.mxu1 }
 0x3ef   : > { %v5046_v58 = vadd.f32 %v7700_v5, %v4905_v8 }
 0x3f0   : > { %v5037_v62 = vpop.f32.mrf.mxu1 }
 0x3f1   : > { %v5038_v15 = vadd.f32 %v5037_v62, %v4905_v8  ;;  %v5066_v25 = vmax.f32 %v5046_v58, 0.0 }
 0x3f2   : > { %v7701_v24 = vpop.f32.mrf.mxu1 }
 0x3f3   : > { %v5049_v36 = vadd.f32 %v7701_v24, %v4905_v8  ;;  %v5064_v7 = vmax.f32 %v5038_v15, 0.0 }
 0x3f4   : > { %v5040_v61 = vpop.f32.mrf.mxu1 }
 0x3f5   : > { %v5041_v20 = vadd.f32 %v5040_v61, %v4905_v8  ;;  %v5067_v11 = vmax.f32 %v5049_v36, 0.0  ;;  %v8025_v8 = vld [vmem:[%s11020_s7 + $0x48] sm:$0xff]  }
 0x3f6   : > { %7730 = vmatprep.subr.bf16.mxu1 %v8025_v8 }
 0x3f7   : > { %v5065_v40 = vmax.f32 %v5041_v20, 0.0  ;;  %v5075_v59 = vpack.c.bf16 %v5067_v11, %v5066_v25  ;;  %7731 = vmatpush3.bf16.msra.mxu1 %v8025_v8 }
 0x3f8   : > { %7732 = vmatprep.subr.bf16.mxu1 %v8026_v23 }
 0x3f9   : > { %v5074_v17 = vpack.c.bf16 %v5065_v40, %v5064_v7 }
 0x3fb   : > { %7722 = vmatprep.mubr.msk.bf16.mxu0 %vm4930_vm4, %v5074_v17  ;;  %7733 = vmatpush3.bf16.msra.mxu1 %v8026_v23 }
 0x3fc   : > { %7723 = vmatmul.mubr.msk.bf16.gmra.mxu0 %vm4930_vm4, %v5075_v59 }
 0x484   : > { %v7712_v54 = vpop.f32.mrf.mxu0 }
 0x485   : > { %v5180_v55 = vadd.f32 %v7712_v54, %v5088_v44 }
 0x486   : > { %v5171_v14 = vpop.f32.mrf.mxu0 }
 0x487   : > { %v5172_v22 = vadd.f32 %v5171_v14, %v5088_v44  ;;  %v5236_v42 = vmax.f32 %v5180_v55, 0.0 }
 0x488   : > { %v7713_v53 = vpop.f32.mrf.mxu0 }
 0x489   : > { %v5183_v4 = vadd.f32 %v7713_v53, %v5088_v44  ;;  %v5234_v9 = vmax.f32 %v5172_v22, 0.0 }
 0x48a   : > { %v5174_v63 = vpop.f32.mrf.mxu0 }
 0x48b   : > { %v5175_v56 = vadd.f32 %v5174_v63, %v5088_v44  ;;  %v5237_v13 = vmax.f32 %v5183_v4, 0.0 }
 0x48d   : > { %v5235_v3 = vmax.f32 %v5175_v56, 0.0  ;;  %v5251_v45 = vpack.c.bf16 %v5237_v13, %v5236_v42 }
 0x48f   : > { %v5250_v30 = vpack.c.bf16 %v5235_v3, %v5234_v9 }
 0x491   : > { %7734 = vmatprep.mubr.msk.bf16.mxu1 %vm4930_vm4, %v5250_v30 }
 0x492   : > { %7735 = vmatmul.mubr.msk.bf16.vlgmr.msra.gmra.mxu1 %vm4930_vm4, %v5251_v45 }
 0x499   : > { %v7716_v37 = vpop.f32.mrf.mxu0 }
 0x49a   : > { %v5196_v50 = vadd.f32 %v7716_v37, %v5088_v44 }
 0x49b   : > { %v5187_v26 = vpop.f32.mrf.mxu0 }
 0x49c   : > { %v5188_v41 = vadd.f32 %v5187_v26, %v5088_v44  ;;  %v5240_v15 = vmax.f32 %v5196_v50, 0.0 }
 0x49d   : > { %v7717_v10 = vpop.f32.mrf.mxu0 }
 0x49e   : > { %v5199_v57 = vadd.f32 %v7717_v10, %v5088_v44  ;;  %v5238_v62 = vmax.f32 %v5188_v41, 0.0  ;;  %v8028_v10 = vld [vmem:[%s11020_s7 + $0x70] sm:$0xff]   ;;  %v8030_v41 = vld [vmem:[%s11020_s7 + $0x60] sm:$0xff]  }
 0x49f   : > { %v5190_v60 = vpop.f32.mrf.mxu0  ;;  %7752 = vmatprep.subr.bf16.mxu0 %v8028_v10 }
 0x4a0   : > { %v5191_v0 = vadd.f32 %v5190_v60, %v5088_v44  ;;  %v5241_v5 = vmax.f32 %v5199_v57, 0.0  ;;  %7753 = vmatpush3.bf16.msra.mxu0 %v8028_v10  ;;  %v5269_v57 = vsub.s32 3, %v10539_v27 }
 0x4a2   : > { %v5239_v24 = vmax.f32 %v5191_v0, 0.0  ;;  %v5253_v58 = vpack.c.bf16 %v5241_v5, %v5240_v15  ;;  %v5270_v60 = vrot.slane %v10545_v47, %v5269_v57 }
 0x4a4   : > { %v5252_v36 = vpack.c.bf16 %v5239_v24, %v5238_v62 }
 0x4a6   : > { %7738 = vmatprep.mubr.msk.bf16.mxu1 %vm4930_vm4, %v5252_v36 }
 0x4a7   : > { %7739 = vmatmul.mubr.msk.bf16.gmra.mxu1 %vm4930_vm4, %v5253_v58 }
 0x4ab   : > { %v7720_v61 = vpop.f32.mrf.mxu0 }
 0x4ac   : > { %v5212_v25 = vadd.f32 %v7720_v61, %v5088_v44 }
 0x4ad   : > { %v5203_v20 = vpop.f32.mrf.mxu0 }
 0x4ae   : > { %v5204_v7 = vadd.f32 %v5203_v20, %v5088_v44  ;;  %v5244_v28 = vmax.f32 %v5212_v25, 0.0 }
 0x4af   : > { %v7721_v11 = vpop.f32.mrf.mxu0 }
 0x4b0   : > { %v5215_v40 = vadd.f32 %v7721_v11, %v5088_v44  ;;  %v5242_v8 = vmax.f32 %v5204_v7, 0.0 }
 0x4b1   : > { %v5206_v17 = vpop.f32.mrf.mxu0 }
 0x4b2   : > { %v5207_v59 = vadd.f32 %v5206_v17, %v5088_v44  ;;  %v5245_v32 = vmax.f32 %v5215_v40, 0.0 }
 0x4b4   : > { %v5243_v23 = vmax.f32 %v5207_v59, 0.0  ;;  %v5255_v14 = vpack.c.bf16 %v5245_v32, %v5244_v28 }
 0x4b6   : > { %v5254_v54 = vpack.c.bf16 %v5243_v23, %v5242_v8 }
 0x4b8   : > { %7742 = vmatprep.mubr.msk.bf16.mxu1 %vm4930_vm4, %v5254_v54 }
 0x4b9   : > { %7743 = vmatmul.mubr.msk.bf16.gmra.mxu1 %vm4930_vm4, %v5255_v14 }
 0x4bc   : > { %v7724_v53 = vpop.f32.mrf.mxu0 }
 0x4bd   : > { %v5228_v56 = vadd.f32 %v7724_v53, %v5088_v44 }
 0x4be   : > { %v5219_v22 = vpop.f32.mrf.mxu0 }
 0x4bf   : > { %v5220_v55 = vadd.f32 %v5219_v22, %v5088_v44  ;;  %v5248_v45 = vmax.f32 %v5228_v56, 0.0 }
 0x4c0   : > { %v7725_v4 = vpop.f32.mrf.mxu0 }
 0x4c1   : > { %v5231_v63 = vadd.f32 %v7725_v4, %v5088_v44  ;;  %v5246_v42 = vmax.f32 %v5220_v55, 0.0 }
 0x4c2   : > { %v5222_v13 = vpop.f32.mrf.mxu0 }
 0x4c3   : > { %v5223_v9 = vadd.f32 %v5222_v13, %v5088_v44  ;;  %v5249_v3 = vmax.f32 %v5231_v63, 0.0  ;;  %v8029_v44 = vld [vmem:[%s11020_s7 + $0x68] sm:$0xff]  }
 0x4c4   : > { %7754 = vmatprep.subr.bf16.mxu0 %v8029_v44 }
 0x4c5   : > { %v5247_v30 = vmax.f32 %v5223_v9, 0.0  ;;  %v5257_v26 = vpack.c.bf16 %v5249_v3, %v5248_v45  ;;  %7755 = vmatpush3.bf16.msra.mxu0 %v8029_v44 }
 0x4c6   : > { %7756 = vmatprep.subr.bf16.mxu0 %v8030_v41 }
 0x4c7   : > { %v5256_v37 = vpack.c.bf16 %v5247_v30, %v5246_v42 }
 0x4c9   : > { %7746 = vmatprep.mubr.msk.bf16.mxu1 %vm4930_vm4, %v5256_v37  ;;  %7757 = vmatpush3.bf16.msra.mxu0 %v8030_v41 }
 0x4ca   : > { %7747 = vmatmul.mubr.msk.bf16.gmra.mxu1 %vm4930_vm4, %v5257_v26 }
 0x552   : > { %v7736_v50 = vpop.f32.mrf.mxu1 }
 0x553   : > { %v5362_v15 = vadd.f32 %v7736_v50, %v5270_v60 }
 0x554   : > { %v5353_v0 = vpop.f32.mrf.mxu1 }
 0x555   : > { %v5354_v62 = vadd.f32 %v5353_v0, %v5270_v60  ;;  %v5418_v7 = vmax.f32 %v5362_v15, 0.0 }
 0x556   : > { %v7737_v5 = vpop.f32.mrf.mxu1 }
 0x557   : > { %v5365_v24 = vadd.f32 %v7737_v5, %v5270_v60  ;;  %v5416_v20 = vmax.f32 %v5354_v62, 0.0 }
 0x558   : > { %v5356_v36 = vpop.f32.mrf.mxu1 }
 0x559   : > { %v5357_v58 = vadd.f32 %v5356_v36, %v5270_v60  ;;  %v5419_v61 = vmax.f32 %v5365_v24, 0.0 }
 0x55b   : > { %v5417_v11 = vmax.f32 %v5357_v58, 0.0  ;;  %v5433_v25 = vpack.c.bf16 %v5419_v61, %v5418_v7 }
 0x55d   : > { %v5432_v40 = vpack.c.bf16 %v5417_v11, %v5416_v20 }
 0x55f   : > { %7758 = vmatprep.mubr.msk.bf16.mxu0 %vm4930_vm4, %v5432_v40 }
 0x560   : > { %7759 = vmatmul.mubr.msk.bf16.vlgmr.msra.gmra.mxu0 %vm4930_vm4, %v5433_v25 }
 0x567   : > { %v7740_v17 = vpop.f32.mrf.mxu1 }
 0x568   : > { %v5378_v28 = vadd.f32 %v7740_v17, %v5270_v60 }
 0x569   : > { %v5369_v59 = vpop.f32.mrf.mxu1 }
 0x56a   : > { %v5370_v8 = vadd.f32 %v5369_v59, %v5270_v60  ;;  %v5422_v55 = vmax.f32 %v5378_v28, 0.0  ;;  %v8035_v28 = vld [vmem:[%s11020_s7 + $0xb8] sm:$0xff]  }
 0x56b   : > { %v7741_v32 = vpop.f32.mrf.mxu1  ;;  %7798 = vmatprep.subr.bf16.mxu0 %v8035_v28 }
 0x56c   : > { %v5381_v23 = vadd.f32 %v7741_v32, %v5270_v60  ;;  %v5420_v22 = vmax.f32 %v5370_v8, 0.0  ;;  %v8031_v32 = vld [vmem:[%s11020_s7 + $0x98] sm:$0xff]   ;;  %v8033_v8 = vld [vmem:[%s11020_s7 + $0x88] sm:$0xff]   ;;  %7799 = vmatpush3.bf16.msra.mxu0 %v8035_v28 }
 0x56d   : > { %v5372_v54 = vpop.f32.mrf.mxu1  ;;  %7774 = vmatprep.subr.bf16.mxu1 %v8031_v32 }
 0x56e   : > { %v5373_v14 = vadd.f32 %v5372_v54, %v5270_v60  ;;  %v5423_v53 = vmax.f32 %v5381_v23, 0.0  ;;  %7775 = vmatpush3.bf16.msra.mxu1 %v8031_v32  ;;  %v8034_v23 = vld [vmem:[%s11020_s7 + $0x80] sm:$0xff]   ;;  %v5451_v54 = vsub.s32 4, %v10539_v27 }
 0x570   : > { %v5421_v4 = vmax.f32 %v5373_v14, 0.0  ;;  %v5435_v56 = vpack.c.bf16 %v5423_v53, %v5422_v55  ;;  %v5617_v14 = vpop.permute.xlu1 %5616  ;;  %v10723_v53 = vrot.slane %v10545_v47, %v5451_v54 }
 0x572   : > { %v5434_v63 = vpack.c.bf16 %v5421_v4, %v5420_v22  ;;  %v5615_v4 = vpop.permute.xlu0 %5614 }
 0x574   : > { %7762 = vmatprep.mubr.msk.bf16.mxu0 %vm4930_vm4, %v5434_v63 }
 0x575   : > { %7763 = vmatmul.mubr.msk.bf16.gmra.mxu0 %vm4930_vm4, %v5435_v56 }
 0x579   : > { %v7744_v13 = vpop.f32.mrf.mxu1 }
 0x57a   : > { %v5394_v45 = vadd.f32 %v7744_v13, %v5270_v60 }
 0x57b   : > { %v5385_v9 = vpop.f32.mrf.mxu1 }
 0x57c   : > { %v5386_v42 = vadd.f32 %v5385_v9, %v5270_v60  ;;  %v5426_v57 = vmax.f32 %v5394_v45, 0.0 }
 0x57d   : > { %v7745_v3 = vpop.f32.mrf.mxu1 }
 0x57e   : > { %v5397_v30 = vadd.f32 %v7745_v3, %v5270_v60  ;;  %v5424_v44 = vmax.f32 %v5386_v42, 0.0  ;;  %v5621_v3 = vpop.permute.xlu1 %5620 }
 0x57f   : > { %v5388_v37 = vpop.f32.mrf.mxu1 }
 0x580   : > { %v5389_v26 = vadd.f32 %v5388_v37, %v5270_v60  ;;  %v5427_v10 = vmax.f32 %v5397_v30, 0.0  ;;  %v5619_v30 = vpop.permute.xlu0 %5618 }
 0x582   : > { %v5425_v41 = vmax.f32 %v5389_v26, 0.0  ;;  %v5437_v0 = vpack.c.bf16 %v5427_v10, %v5426_v57 }
 0x584   : > { %v5436_v50 = vpack.c.bf16 %v5425_v41, %v5424_v44 }
 0x586   : > { %7766 = vmatprep.mubr.msk.bf16.mxu0 %vm4930_vm4, %v5436_v50 }
 0x587   : > { %7767 = vmatmul.mubr.msk.bf16.gmra.mxu0 %vm4930_vm4, %v5437_v0 }
 0x58a   : > { %v7748_v5 = vpop.f32.mrf.mxu1 }
 0x58b   : > { %v5410_v58 = vadd.f32 %v7748_v5, %v5270_v60 }
 0x58c   : > { %v5401_v62 = vpop.f32.mrf.mxu1 }
 0x58d   : > { %v5402_v15 = vadd.f32 %v5401_v62, %v5270_v60  ;;  %v5430_v25 = vmax.f32 %v5410_v58, 0.0  ;;  %v5625_v62 = vpop.permute.xlu1 %5624 }
 0x58e   : > { %v7749_v24 = vpop.f32.mrf.mxu1 }
 0x58f   : > { %v5413_v36 = vadd.f32 %v7749_v24, %v5270_v60  ;;  %v5428_v7 = vmax.f32 %v5402_v15, 0.0  ;;  %v5623_v15 = vpop.permute.xlu0 %5622 }
 0x590   : > { %v5404_v61 = vpop.f32.mrf.mxu1 }
 0x591   : > { %v5405_v20 = vadd.f32 %v5404_v61, %v5270_v60  ;;  %v5431_v11 = vmax.f32 %v5413_v36, 0.0  ;;  %v8032_v60 = vld [vmem:[%s11020_s7 + $0x90] sm:$0xff]  }
 0x592   : > { %7776 = vmatprep.subr.bf16.mxu1 %v8032_v60 }
 0x593   : > { %v5429_v40 = vmax.f32 %v5405_v20, 0.0  ;;  %v5439_v59 = vpack.c.bf16 %v5431_v11, %v5430_v25  ;;  %7777 = vmatpush3.bf16.msra.mxu1 %v8032_v60  ;;  %v5627_v25 = vpop.permute.xlu0 %5626 }
 0x594   : > { %7778 = vmatprep.subr.bf16.mxu1 %v8033_v8 }
 0x595   : > { %v5438_v17 = vpack.c.bf16 %v5429_v40, %v5428_v7  ;;  %v5629_v7 = vpop.permute.xlu1 %5628 }
 0x597   : > { %7770 = vmatprep.mubr.msk.bf16.mxu0 %vm4930_vm4, %v5438_v17  ;;  %7779 = vmatpush3.bf16.msra.mxu1 %v8033_v8 }
 0x598   : > { %7771 = vmatmul.mubr.msk.bf16.gmra.mxu0 %vm4930_vm4, %v5439_v59  ;;  %7780 = vmatprep.subr.bf16.mxu1 %v8034_v23 }
 0x59b   : > { %7781 = vmatpush3.bf16.msra.mxu1 %v8034_v23 }
 0x620   : > { %v7760_v22 = vpop.f32.mrf.mxu0 }
 0x621   : > { %v5544_v56 = vadd.f32 %v7760_v22, %v10723_v53 }
 0x622   : > { %v5535_v55 = vpop.f32.mrf.mxu0 }
 0x623   : > { %v5536_v63 = vadd.f32 %v5535_v55, %v10723_v53  ;;  %v5664_v10 = vadd.f32 %v5619_v30, %v5544_v56  ;;  %v5633_v55 = vpop.permute.xlu1 %5632  ;;  %v5631_v56 = vpop.permute.xlu0 %5630 }
 0x624   : > { %v7761_v13 = vpop.f32.mrf.mxu0 }
 0x625   : > { %v5547_v9 = vadd.f32 %v7761_v13, %v10723_v53  ;;  %v5662_v45 = vadd.f32 %v5615_v4, %v5536_v63  ;;  %v5680_v50 = vmax.f32 %v5664_v10, 0.0 }
 0x626   : > { %v5538_v42 = vpop.f32.mrf.mxu0 }
 0x627   : > { %v5665_v37 = vadd.f32 %v5621_v3, %v5547_v9  ;;  %v5539_v26 = vadd.f32 %v5538_v42, %v10723_v53  ;;  %v5678_v41 = vmax.f32 %v5662_v45, 0.0  ;;  %v5637_v45 = vpop.permute.xlu1 %5636 }
 0x629   : > { %v5663_v47 = vadd.f32 %v5617_v14, %v5539_v26  ;;  %v5681_v44 = vmax.f32 %v5665_v37, 0.0  ;;  %v5635_v26 = vpop.permute.xlu0 %5634 }
 0x62b   : > { %v5679_v57 = vmax.f32 %v5663_v47, 0.0  ;;  %v5695_v5 = vpack.c.bf16 %v5681_v44, %v5680_v50 }
 0x62d   : > { %v5694_v0 = vpack.c.bf16 %v5679_v57, %v5678_v41 }
 0x62f   : > { %7782 = vmatprep.mubr.msk.bf16.mxu1 %vm4930_vm4, %v5694_v0 }
 0x630   : > { %7783 = vmatmul.mubr.msk.bf16.vlgmr.msra.gmra.mxu1 %vm4930_vm4, %v5695_v5 }
 0x635   : > { %v7764_v24 = vpop.f32.mrf.mxu0 }
 0x636   : > { %v5560_v61 = vadd.f32 %v7764_v24, %v10723_v53 }
 0x637   : > { %v5551_v36 = vpop.f32.mrf.mxu0 }
 0x638   : > { %v5552_v58 = vadd.f32 %v5551_v36, %v10723_v53  ;;  %v5668_v60 = vadd.f32 %v5627_v25, %v5560_v61  ;;  %v5641_v36 = vpop.permute.xlu1 %5640  ;;  %v5639_v61 = vpop.permute.xlu0 %5638 }
 0x639   : > { %v7765_v20 = vpop.f32.mrf.mxu0 }
 0x63a   : > { %v5563_v11 = vadd.f32 %v7765_v20, %v10723_v53  ;;  %v5666_v17 = vadd.f32 %v5623_v15, %v5552_v58  ;;  %v5684_v14 = vmax.f32 %v5668_v60, 0.0 }
 0x63b   : > { %v5554_v40 = vpop.f32.mrf.mxu0 }
 0x63c   : > { %v5669_v59 = vadd.f32 %v5629_v7, %v5563_v11  ;;  %v5555_v32 = vadd.f32 %v5554_v40, %v10723_v53  ;;  %v5682_v28 = vmax.f32 %v5666_v17, 0.0  ;;  %v5645_v17 = vpop.permute.xlu1 %5644 }
 0x63e   : > { %v5667_v8 = vadd.f32 %v5625_v62, %v5555_v32  ;;  %v5685_v23 = vmax.f32 %v5669_v59, 0.0  ;;  %v5643_v32 = vpop.permute.xlu0 %5642 }
 0x640   : > { %v5683_v54 = vmax.f32 %v5667_v8, 0.0  ;;  %v5697_v4 = vpack.c.bf16 %v5685_v23, %v5684_v14 }
 0x642   : > { %v5696_v22 = vpack.c.bf16 %v5683_v54, %v5682_v28 }
 0x644   : > { %7786 = vmatprep.mubr.msk.bf16.mxu1 %vm4930_vm4, %v5696_v22 }
 0x645   : > { %7787 = vmatmul.mubr.msk.bf16.gmra.mxu1 %vm4930_vm4, %v5697_v4 }
 0x647   : > { %v7768_v63 = vpop.f32.mrf.mxu0 }
 0x648   : > { %v5576_v3 = vadd.f32 %v7768_v63, %v10723_v53 }
 0x649   : > { %v5567_v13 = vpop.f32.mrf.mxu0 }
 0x64a   : > { %v5568_v9 = vadd.f32 %v5567_v13, %v10723_v53  ;;  %v5672_v41 = vadd.f32 %v5635_v26, %v5576_v3  ;;  %v8036_v13 = vld [vmem:[%s11020_s7 + $0xb0] sm:$0xff]   ;;  %v8039_v3 = vld [vmem:[%s11020_s7 + $0xd8] sm:$0xff]  }
 0x64b   : > { %v7769_v42 = vpop.f32.mrf.mxu0  ;;  %7800 = vmatprep.subr.bf16.mxu0 %v8036_v13  ;;  %7822 = vmatprep.subr.bf16.mxu1 %v8039_v3 }
 0x64c   : > { %v5579_v30 = vadd.f32 %v7769_v42, %v10723_v53  ;;  %v5670_v10 = vadd.f32 %v5631_v56, %v5568_v9  ;;  %v5688_v62 = vmax.f32 %v5672_v41, 0.0  ;;  %7801 = vmatpush3.bf16.msra.mxu0 %v8036_v13  ;;  %v8038_v9 = vld [vmem:[%s11020_s7 + $0xa0] sm:$0xff]   ;;  %7823 = vmatpush3.bf16.msra.mxu1 %v8039_v3  ;;  %v5713_v42 = vsub.s32 5, %v10539_v27 }
 0x64d   : > { %v5570_v37 = vpop.f32.mrf.mxu0 }
 0x64e   : > { %v5673_v47 = vadd.f32 %v5637_v45, %v5579_v30  ;;  %v5571_v44 = vadd.f32 %v5570_v37, %v10723_v53  ;;  %v5686_v0 = vmax.f32 %v5670_v10, 0.0  ;;  %v10765_v45 = vld [vmem:[%s11021_s8] sm:$0xff] }
 0x64f   : > { %v5714_v37 = vrot.slane %v10765_v45, %v5713_v42 }
 0x650   : > { %v5671_v57 = vadd.f32 %v5633_v55, %v5571_v44  ;;  %v5689_v50 = vmax.f32 %v5673_v47, 0.0 }
 0x652   : > { %v5687_v5 = vmax.f32 %v5671_v57, 0.0  ;;  %v5699_v15 = vpack.c.bf16 %v5689_v50, %v5688_v62 }
 0x654   : > { %v5698_v24 = vpack.c.bf16 %v5687_v5, %v5686_v0 }
 0x656   : > { %7790 = vmatprep.mubr.msk.bf16.mxu1 %vm4930_vm4, %v5698_v24 }
 0x657   : > { %7791 = vmatmul.mubr.msk.bf16.gmra.mxu1 %vm4930_vm4, %v5699_v15 }
 0x658   : > { %v7772_v58 = vpop.f32.mrf.mxu0 }
 0x659   : > { %v5592_v7 = vadd.f32 %v7772_v58, %v10723_v53 }
 0x65a   : > { %v5583_v20 = vpop.f32.mrf.mxu0 }
 0x65b   : > { %v5584_v11 = vadd.f32 %v5583_v20, %v10723_v53  ;;  %v5676_v28 = vadd.f32 %v5643_v32, %v5592_v7 }
 0x65c   : > { %v7773_v40 = vpop.f32.mrf.mxu0 }
 0x65d   : > { %v5595_v25 = vadd.f32 %v7773_v40, %v10723_v53  ;;  %v5674_v60 = vadd.f32 %v5639_v61, %v5584_v11  ;;  %v5692_v55 = vmax.f32 %v5676_v28, 0.0 }
 0x65e   : > { %v5586_v59 = vpop.f32.mrf.mxu0 }
 0x65f   : > { %v5677_v8 = vadd.f32 %v5645_v17, %v5595_v25  ;;  %v5587_v23 = vadd.f32 %v5586_v59, %v10723_v53  ;;  %v5690_v22 = vmax.f32 %v5674_v60, 0.0  ;;  %v8037_v53 = vld [vmem:[%s11020_s7 + $0xa8] sm:$0xff]  }
 0x660   : > { %7802 = vmatprep.subr.bf16.mxu0 %v8037_v53 }
 0x661   : > { %v5675_v54 = vadd.f32 %v5641_v36, %v5587_v23  ;;  %v5693_v14 = vmax.f32 %v5677_v8, 0.0  ;;  %7803 = vmatpush3.bf16.msra.mxu0 %v8037_v53 }
 0x662   : > { %7804 = vmatprep.subr.bf16.mxu0 %v8038_v9 }
 0x663   : > { %v5691_v4 = vmax.f32 %v5675_v54, 0.0  ;;  %v5701_v56 = vpack.c.bf16 %v5693_v14, %v5692_v55 }
 0x665   : > { %v5700_v63 = vpack.c.bf16 %v5691_v4, %v5690_v22  ;;  %7805 = vmatpush3.bf16.msra.mxu0 %v8038_v9 }
 0x667   : > { %7794 = vmatprep.mubr.msk.bf16.mxu1 %vm4930_vm4, %v5700_v63 }
 0x668   : > { %7795 = vmatmul.mubr.msk.bf16.gmra.mxu1 %vm4930_vm4, %v5701_v56 }
 0x6f0   : > { %v7784_v30 = vpop.f32.mrf.mxu1 }
 0x6f1   : > { %v5806_v41 = vadd.f32 %v7784_v30, %v5714_v37 }
 0x6f2   : > { %v5797_v26 = vpop.f32.mrf.mxu1 }
 0x6f3   : > { %v5798_v47 = vadd.f32 %v5797_v26, %v5714_v37  ;;  %v5862_v24 = vmax.f32 %v5806_v41, 0.0 }
 0x6f4   : > { %v7785_v10 = vpop.f32.mrf.mxu1 }
 0x6f5   : > { %v5809_v44 = vadd.f32 %v7785_v10, %v5714_v37  ;;  %v5860_v5 = vmax.f32 %v5798_v47, 0.0 }
 0x6f6   : > { %v5800_v57 = vpop.f32.mrf.mxu1 }
 0x6f7   : > { %v5801_v50 = vadd.f32 %v5800_v57, %v5714_v37  ;;  %v5863_v0 = vmax.f32 %v5809_v44, 0.0 }
 0x6f9   : > { %v5861_v62 = vmax.f32 %v5801_v50, 0.0  ;;  %v5877_v36 = vpack.c.bf16 %v5863_v0, %v5862_v24 }
 0x6fb   : > { %v5876_v15 = vpack.c.bf16 %v5861_v62, %v5860_v5 }
 0x6fd   : > { %7806 = vmatprep.mubr.msk.bf16.mxu0 %vm4930_vm4, %v5876_v15 }
 0x6fe   : > { %7807 = vmatmul.mubr.msk.bf16.vlgmr.msra.gmra.mxu0 %vm4930_vm4, %v5877_v36 }
 0x705   : > { %v7788_v58 = vpop.f32.mrf.mxu1 }
 0x706   : > { %v5822_v40 = vadd.f32 %v7788_v58, %v5714_v37 }
 0x707   : > { %v5813_v61 = vpop.f32.mrf.mxu1 }
 0x708   : > { %v5814_v11 = vadd.f32 %v5813_v61, %v5714_v37  ;;  %v5866_v8 = vmax.f32 %v5822_v40, 0.0  ;;  %v5895_v40 = vsub.s32 6, %v10539_v27 }
 0x709   : > { %v7789_v20 = vpop.f32.mrf.mxu1 }
 0x70a   : > { %v5825_v7 = vadd.f32 %v7789_v20, %v5714_v37  ;;  %v5864_v32 = vmax.f32 %v5814_v11, 0.0  ;;  %v8040_v20 = vld [vmem:[%s11020_s7 + $0xd0] sm:$0xff]   ;;  %v8042_v11 = vld [vmem:[%s11020_s7 + $0xc0] sm:$0xff]  }
 0x70b   : > { %v5816_v25 = vpop.f32.mrf.mxu1  ;;  %7824 = vmatprep.subr.bf16.mxu1 %v8040_v20 }
 0x70c   : > { %v5817_v17 = vadd.f32 %v5816_v25, %v5714_v37  ;;  %v5867_v59 = vmax.f32 %v5825_v7, 0.0  ;;  %7825 = vmatpush3.bf16.msra.mxu1 %v8040_v20  ;;  %v8043_v7 = vld [vmem:[%s11022_s9 + $0x18] sm:$0xff]  }
 0x70d   : > { %7846 = vmatprep.subr.bf16.mxu0 %v8043_v7 }
 0x70e   : > { %v5865_v60 = vmax.f32 %v5817_v17, 0.0  ;;  %v5879_v28 = vpack.c.bf16 %v5867_v59, %v5866_v8  ;;  %7847 = vmatpush3.bf16.msra.mxu0 %v8043_v7  ;;  %v5896_v17 = vrot.slane %v10765_v45, %v5895_v40 }
 0x710   : > { %v5878_v23 = vpack.c.bf16 %v5865_v60, %v5864_v32 }
 0x712   : > { %7810 = vmatprep.mubr.msk.bf16.mxu0 %vm4930_vm4, %v5878_v23 }
 0x713   : > { %7811 = vmatmul.mubr.msk.bf16.gmra.mxu0 %vm4930_vm4, %v5879_v28 }
 0x717   : > { %v7792_v54 = vpop.f32.mrf.mxu1 }
 0x718   : > { %v5838_v63 = vadd.f32 %v7792_v54, %v5714_v37 }
 0x719   : > { %v5829_v14 = vpop.f32.mrf.mxu1 }
 0x71a   : > { %v5830_v4 = vadd.f32 %v5829_v14, %v5714_v37  ;;  %v5870_v42 = vmax.f32 %v5838_v63, 0.0 }
 0x71b   : > { %v7793_v22 = vpop.f32.mrf.mxu1 }
 0x71c   : > { %v5841_v55 = vadd.f32 %v7793_v22, %v5714_v37  ;;  %v5868_v9 = vmax.f32 %v5830_v4, 0.0 }
 0x71d   : > { %v5832_v56 = vpop.f32.mrf.mxu1 }
 0x71e   : > { %v5833_v13 = vadd.f32 %v5832_v56, %v5714_v37  ;;  %v5871_v53 = vmax.f32 %v5841_v55, 0.0 }
 0x720   : > { %v5869_v3 = vmax.f32 %v5833_v13, 0.0  ;;  %v5881_v26 = vpack.c.bf16 %v5871_v53, %v5870_v42 }
 0x722   : > { %v5880_v30 = vpack.c.bf16 %v5869_v3, %v5868_v9 }
 0x724   : > { %7814 = vmatprep.mubr.msk.bf16.mxu0 %vm4930_vm4, %v5880_v30 }
 0x725   : > { %7815 = vmatmul.mubr.msk.bf16.gmra.mxu0 %vm4930_vm4, %v5881_v26 }
 0x728   : > { %v7796_v10 = vpop.f32.mrf.mxu1 }
 0x729   : > { %v5854_v50 = vadd.f32 %v7796_v10, %v5714_v37 }
 0x72a   : > { %v5845_v47 = vpop.f32.mrf.mxu1 }
 0x72b   : > { %v5846_v41 = vadd.f32 %v5845_v47, %v5714_v37  ;;  %v5874_v36 = vmax.f32 %v5854_v50, 0.0 }
 0x72c   : > { %v7797_v44 = vpop.f32.mrf.mxu1 }
 0x72d   : > { %v5857_v57 = vadd.f32 %v7797_v44, %v5714_v37  ;;  %v5872_v24 = vmax.f32 %v5846_v41, 0.0 }
 0x72e   : > { %v5848_v0 = vpop.f32.mrf.mxu1 }
 0x72f   : > { %v5849_v5 = vadd.f32 %v5848_v0, %v5714_v37  ;;  %v5875_v62 = vmax.f32 %v5857_v57, 0.0  ;;  %v8041_v37 = vld [vmem:[%s11020_s7 + $0xc8] sm:$0xff]  }
 0x730   : > { %7826 = vmatprep.subr.bf16.mxu1 %v8041_v37 }
 0x731   : > { %v5873_v15 = vmax.f32 %v5849_v5, 0.0  ;;  %v5883_v61 = vpack.c.bf16 %v5875_v62, %v5874_v36  ;;  %7827 = vmatpush3.bf16.msra.mxu1 %v8041_v37 }
 0x732   : > { %7828 = vmatprep.subr.bf16.mxu1 %v8042_v11 }
 0x733   : > { %v5882_v58 = vpack.c.bf16 %v5873_v15, %v5872_v24 }
 0x735   : > { %7818 = vmatprep.mubr.msk.bf16.mxu0 %vm4930_vm4, %v5882_v58  ;;  %7829 = vmatpush3.bf16.msra.mxu1 %v8042_v11 }
 0x736   : > { %7819 = vmatmul.mubr.msk.bf16.gmra.mxu0 %vm4930_vm4, %v5883_v61 }
 0x7be   : > { %v7808_v25 = vpop.f32.mrf.mxu0 }
 0x7bf   : > { %v5988_v23 = vadd.f32 %v7808_v25, %v5896_v17 }
 0x7c0   : > { %v5979_v59 = vpop.f32.mrf.mxu0 }
 0x7c1   : > { %v5980_v60 = vadd.f32 %v5979_v59, %v5896_v17  ;;  %v6044_v55 = vmax.f32 %v5988_v23, 0.0 }
 0x7c2   : > { %v7809_v32 = vpop.f32.mrf.mxu0 }
 0x7c3   : > { %v5991_v8 = vadd.f32 %v7809_v32, %v5896_v17  ;;  %v6042_v22 = vmax.f32 %v5980_v60, 0.0 }
 0x7c4   : > { %v5982_v28 = vpop.f32.mrf.mxu0 }
 0x7c5   : > { %v5983_v54 = vadd.f32 %v5982_v28, %v5896_v17  ;;  %v6045_v14 = vmax.f32 %v5991_v8, 0.0 }
 0x7c7   : > { %v6043_v4 = vmax.f32 %v5983_v54, 0.0  ;;  %v6059_v56 = vpack.c.bf16 %v6045_v14, %v6044_v55 }
 0x7c9   : > { %v6058_v63 = vpack.c.bf16 %v6043_v4, %v6042_v22 }
 0x7cb   : > { %7830 = vmatprep.mubr.msk.bf16.mxu1 %vm4930_vm4, %v6058_v63 }
 0x7cc   : > { %7831 = vmatmul.mubr.msk.bf16.vlgmr.msra.gmra.mxu1 %vm4930_vm4, %v6059_v56 }
 0x7d3   : > { %v7812_v13 = vpop.f32.mrf.mxu0 }
 0x7d4   : > { %v6004_v30 = vadd.f32 %v7812_v13, %v5896_v17 }
 0x7d5   : > { %v5995_v53 = vpop.f32.mrf.mxu0 }
 0x7d6   : > { %v5996_v3 = vadd.f32 %v5995_v53, %v5896_v17  ;;  %v6048_v57 = vmax.f32 %v6004_v30, 0.0  ;;  %v8048_v30 = vld [vmem:[%s11023_s10 + $0x30] sm:$0xff]  }
 0x7d7   : > { %v7813_v9 = vpop.f32.mrf.mxu0 }
 0x7d8   : > { %v6007_v42 = vadd.f32 %v7813_v9, %v5896_v17  ;;  %v6046_v44 = vmax.f32 %v5996_v3, 0.0  ;;  %v8044_v9 = vld [vmem:[%s11022_s9 + $0x10] sm:$0xff]   ;;  %v8046_v3 = vld [vmem:[%s11022_s9] sm:$0xff]  }
 0x7d9   : > { %v5998_v26 = vpop.f32.mrf.mxu0  ;;  %7848 = vmatprep.subr.bf16.mxu0 %v8044_v9 }
 0x7da   : > { %v5999_v10 = vadd.f32 %v5998_v26, %v5896_v17  ;;  %v6049_v47 = vmax.f32 %v6007_v42, 0.0  ;;  %7849 = vmatpush3.bf16.msra.mxu0 %v8044_v9  ;;  %v8047_v42 = vld [vmem:[%s11023_s10 + $0x38] sm:$0xff]   ;;  %v8049_v26 = vld [vmem:[%s11023_s10 + $0x28] sm:$0xff]  }
 0x7db   : > { %7870 = vmatprep.subr.bf16.mxu1 %v8047_v42 }
 0x7dc   : > { %v6047_v41 = vmax.f32 %v5999_v10, 0.0  ;;  %v6061_v0 = vpack.c.bf16 %v6049_v47, %v6048_v57  ;;  %7871 = vmatpush3.bf16.msra.mxu1 %v8047_v42  ;;  %v8050_v10 = vld [vmem:[%s11023_s10 + $0x20] sm:$0xff]   ;;  %v8051_v47 = vld [vmem:[%s11023_s10 + $0x18] sm:$0xff]  }
 0x7dd   : > { %7872 = vmatprep.subr.bf16.mxu1 %v8048_v30 }
 0x7de   : > { %v6060_v50 = vpack.c.bf16 %v6047_v41, %v6046_v44  ;;  %v6077_v44 = vsub.s32 7, %v10539_v27 }
 0x7e0   : > { %7834 = vmatprep.mubr.msk.bf16.mxu1 %vm4930_vm4, %v6060_v50  ;;  %7873 = vmatpush3.bf16.msra.mxu1 %v8048_v30  ;;  %v6078_v57 = vrot.slane %v10765_v45, %v6077_v44 }
 0x7e1   : > { %7835 = vmatmul.mubr.msk.bf16.gmra.mxu1 %vm4930_vm4, %v6061_v0  ;;  %7874 = vmatprep.subr.bf16.mxu1 %v8049_v26 }
 0x7e4   : > { %7875 = vmatpush3.bf16.msra.mxu1 %v8049_v26 }
 0x7e5   : > { %v7816_v5 = vpop.f32.mrf.mxu0  ;;  %7876 = vmatprep.subr.bf16.mxu1 %v8050_v10 }
 0x7e6   : > { %v6020_v58 = vadd.f32 %v7816_v5, %v5896_v17 }
 0x7e7   : > { %v6011_v62 = vpop.f32.mrf.mxu0 }
 0x7e8   : > { %v6012_v15 = vadd.f32 %v6011_v62, %v5896_v17  ;;  %v6052_v40 = vmax.f32 %v6020_v58, 0.0  ;;  %7877 = vmatpush3.bf16.msra.mxu1 %v8050_v10 }
 0x7e9   : > { %v7817_v24 = vpop.f32.mrf.mxu0  ;;  %7878 = vmatprep.subr.bf16.mxu1 %v8051_v47 }
 0x7ea   : > { %v6023_v36 = vadd.f32 %v7817_v24, %v5896_v17  ;;  %v6050_v11 = vmax.f32 %v6012_v15, 0.0 }
 0x7eb   : > { %v6014_v61 = vpop.f32.mrf.mxu0 }
 0x7ec   : > { %v6015_v20 = vadd.f32 %v6014_v61, %v5896_v17  ;;  %v6053_v37 = vmax.f32 %v6023_v36, 0.0  ;;  %7879 = vmatpush3.bf16.msra.mxu1 %v8051_v47 }
 0x7ee   : > { %v6051_v7 = vmax.f32 %v6015_v20, 0.0  ;;  %v6063_v59 = vpack.c.bf16 %v6053_v37, %v6052_v40 }
 0x7f0   : > { %v6062_v25 = vpack.c.bf16 %v6051_v7, %v6050_v11 }
 0x7f2   : > { %7838 = vmatprep.mubr.msk.bf16.mxu1 %vm4930_vm4, %v6062_v25 }
 0x7f3   : > { %7839 = vmatmul.mubr.msk.bf16.gmra.mxu1 %vm4930_vm4, %v6063_v59 }
 0x7f6   : > { %v7820_v32 = vpop.f32.mrf.mxu0 }
 0x7f7   : > { %v6036_v54 = vadd.f32 %v7820_v32, %v5896_v17 }
 0x7f8   : > { %v6027_v60 = vpop.f32.mrf.mxu0 }
 0x7f9   : > { %v6028_v23 = vadd.f32 %v6027_v60, %v5896_v17  ;;  %v6056_v56 = vmax.f32 %v6036_v54, 0.0 }
 0x7fa   : > { %v7821_v8 = vpop.f32.mrf.mxu0 }
 0x7fb   : > { %v6039_v28 = vadd.f32 %v7821_v8, %v5896_v17  ;;  %v6054_v55 = vmax.f32 %v6028_v23, 0.0 }
 0x7fc   : > { %v6030_v14 = vpop.f32.mrf.mxu0 }
 0x7fd   : > { %v6031_v22 = vadd.f32 %v6030_v14, %v5896_v17  ;;  %v6057_v4 = vmax.f32 %v6039_v28, 0.0  ;;  %v8045_v17 = vld [vmem:[%s11022_s9 + $0x8] sm:$0xff]  }
 0x7fe   : > { %7850 = vmatprep.subr.bf16.mxu0 %v8045_v17 }
 0x7ff   : > { %v6055_v63 = vmax.f32 %v6031_v22, 0.0  ;;  %v6065_v53 = vpack.c.bf16 %v6057_v4, %v6056_v56  ;;  %7851 = vmatpush3.bf16.msra.mxu0 %v8045_v17 }
 0x800   : > { %7852 = vmatprep.subr.bf16.mxu0 %v8046_v3 }
 0x801   : > { %v6064_v13 = vpack.c.bf16 %v6055_v63, %v6054_v55 }
 0x803   : > { %7842 = vmatprep.mubr.msk.bf16.mxu1 %vm4930_vm4, %v6064_v13  ;;  %7853 = vmatpush3.bf16.msra.mxu0 %v8046_v3 }
 0x804   : > { %7843 = vmatmul.mubr.msk.bf16.gmra.mxu1 %vm4930_vm4, %v6065_v53 }
 0x88c   : > { %v7832_v41 = vpop.f32.mrf.mxu1 }
 0x88d   : > { %v6170_v24 = vadd.f32 %v7832_v41, %v6078_v57 }
 0x88e   : > { %v6161_v50 = vpop.f32.mrf.mxu1 }
 0x88f   : > { %v6162_v5 = vadd.f32 %v6161_v50, %v6078_v57  ;;  %v6226_v37 = vmax.f32 %v6170_v24, 0.0 }
 0x890   : > { %v7833_v0 = vpop.f32.mrf.mxu1 }
 0x891   : > { %v6173_v62 = vadd.f32 %v7833_v0, %v6078_v57  ;;  %v6224_v61 = vmax.f32 %v6162_v5, 0.0 }
 0x892   : > { %v6164_v15 = vpop.f32.mrf.mxu1 }
 0x893   : > { %v6165_v36 = vadd.f32 %v6164_v15, %v6078_v57  ;;  %v6227_v58 = vmax.f32 %v6173_v62, 0.0 }
 0x895   : > { %v6225_v20 = vmax.f32 %v6165_v36, 0.0  ;;  %v6241_v7 = vpack.c.bf16 %v6227_v58, %v6226_v37 }
 0x897   : > { %v6240_v11 = vpack.c.bf16 %v6225_v20, %v6224_v61 }
 0x899   : > { %7854 = vmatprep.mubr.msk.bf16.mxu0 %vm4930_vm4, %v6240_v11 }
 0x89a   : > { %7855 = vmatmul.mubr.msk.bf16.vlgmr.msra.gmra.mxu0 %vm4930_vm4, %v6241_v7 }
 0x8a1   : > { %v7836_v40 = vpop.f32.mrf.mxu1 }
 0x8a2   : > { %v6186_v60 = vadd.f32 %v7836_v40, %v6078_v57 }
 0x8a3   : > { %v6177_v25 = vpop.f32.mrf.mxu1 }
 0x8a4   : > { %v6178_v59 = vadd.f32 %v6177_v25, %v6078_v57  ;;  %v6230_v22 = vmax.f32 %v6186_v60, 0.0  ;;  %v8052_v25 = vld [vmem:[%s11023_s10 + $0x10] sm:$0xff]  }
 0x8a5   : > { %v7837_v45 = vpop.f32.mrf.mxu1  ;;  %7880 = vmatprep.subr.bf16.mxu1 %v8052_v25 }
 0x8a6   : > { %v6189_v32 = vadd.f32 %v7837_v45, %v6078_v57  ;;  %v6228_v54 = vmax.f32 %v6178_v59, 0.0  ;;  %7881 = vmatpush3.bf16.msra.mxu1 %v8052_v25  ;;  %v8054_v45 = vld [vmem:[%s11023_s10] sm:$0xff]  }
 0x8a7   : > { %v6180_v8 = vpop.f32.mrf.mxu1  ;;  %v10844_v59 = vld [vmem:[%s11025_s12] sm:$0x7] }
 0x8a8   : > { %v6181_v23 = vadd.f32 %v6180_v8, %v6078_v57  ;;  %v6231_v28 = vmax.f32 %v6189_v32, 0.0  ;;  %v6259_v32 = vrot.slane %v10844_v59, %v4509_v38 }
 0x8aa   : > { %v6229_v14 = vmax.f32 %v6181_v23, 0.0  ;;  %v6243_v55 = vpack.c.bf16 %v6231_v28, %v6230_v22 }
 0x8ac   : > { %v6242_v4 = vpack.c.bf16 %v6229_v14, %v6228_v54 }
 0x8ae   : > { %7858 = vmatprep.mubr.msk.bf16.mxu0 %vm4930_vm4, %v6242_v4 }
 0x8af   : > { %7859 = vmatmul.mubr.msk.bf16.gmra.mxu0 %vm4930_vm4, %v6243_v55 }
 0x8b3   : > { %v7840_v63 = vpop.f32.mrf.mxu1 }
 0x8b4   : > { %v6202_v17 = vadd.f32 %v7840_v63, %v6078_v57 }
 0x8b5   : > { %v6193_v56 = vpop.f32.mrf.mxu1 }
 0x8b6   : > { %v6194_v53 = vadd.f32 %v6193_v56, %v6078_v57  ;;  %v6234_v47 = vmax.f32 %v6202_v17, 0.0 }
 0x8b7   : > { %v7841_v13 = vpop.f32.mrf.mxu1 }
 0x8b8   : > { %v6205_v9 = vadd.f32 %v7841_v13, %v6078_v57  ;;  %v6232_v26 = vmax.f32 %v6194_v53, 0.0 }
 0x8b9   : > { %v6196_v3 = vpop.f32.mrf.mxu1 }
 0x8ba   : > { %v6197_v42 = vadd.f32 %v6196_v3, %v6078_v57  ;;  %v6235_v30 = vmax.f32 %v6205_v9, 0.0 }
 0x8bc   : > { %v6233_v10 = vmax.f32 %v6197_v42, 0.0  ;;  %v6245_v41 = vpack.c.bf16 %v6235_v30, %v6234_v47 }
 0x8be   : > { %v6244_v44 = vpack.c.bf16 %v6233_v10, %v6232_v26 }
 0x8c0   : > { %7862 = vmatprep.mubr.msk.bf16.mxu0 %vm4930_vm4, %v6244_v44 }
 0x8c1   : > { %7863 = vmatmul.mubr.msk.bf16.gmra.mxu0 %vm4930_vm4, %v6245_v41 }
 0x8c4   : > { %v7844_v50 = vpop.f32.mrf.mxu1 }
 0x8c5   : > { %v6218_v15 = vadd.f32 %v7844_v50, %v6078_v57 }
 0x8c6   : > { %v6209_v0 = vpop.f32.mrf.mxu1 }
 0x8c7   : > { %v6210_v62 = vadd.f32 %v6209_v0, %v6078_v57  ;;  %v6238_v11 = vmax.f32 %v6218_v15, 0.0 }
 0x8c8   : > { %v7845_v5 = vpop.f32.mrf.mxu1 }
 0x8c9   : > { %v6221_v24 = vadd.f32 %v7845_v5, %v6078_v57  ;;  %v6236_v20 = vmax.f32 %v6210_v62, 0.0 }
 0x8ca   : > { %v6212_v36 = vpop.f32.mrf.mxu1 }
 0x8cb   : > { %v6213_v58 = vadd.f32 %v6212_v36, %v6078_v57  ;;  %v6239_v61 = vmax.f32 %v6221_v24, 0.0  ;;  %v8053_v57 = vld [vmem:[%s11023_s10 + $0x8] sm:$0xff]  }
 0x8cc   : > { %7882 = vmatprep.subr.bf16.mxu1 %v8053_v57 }
 0x8cd   : > { %v6237_v37 = vmax.f32 %v6213_v58, 0.0  ;;  %v6247_v40 = vpack.c.bf16 %v6239_v61, %v6238_v11  ;;  %7883 = vmatpush3.bf16.msra.mxu1 %v8053_v57 }
 0x8ce   : > { %7884 = vmatprep.subr.bf16.mxu1 %v8054_v45 }
 0x8cf   : > { %v6246_v7 = vpack.c.bf16 %v6237_v37, %v6236_v20 }
 0x8d1   : > { %7866 = vmatprep.mubr.msk.bf16.mxu0 %vm4930_vm4, %v6246_v7  ;;  %7885 = vmatpush3.bf16.msra.mxu1 %v8054_v45  ;;  %v8055_v45 = vld [vmem:[%s11024_s11 + $0x8] sm:$0xff]  }
 0x8d2   : > { %7867 = vmatmul.mubr.msk.bf16.gmra.mxu0 %vm4930_vm4, %v6247_v40  ;;  %7902 = vmatprep.subr.bf16.mxu0 %v8055_v45 }
 0x8d3   : > { %7903 = vmatpush3.bf16.msra.mxu0 %v8055_v45 }
 0x95a   : > { %v7856_v60 = vpop.f32.mrf.mxu0 }
 0x95b   : > { %v6351_v8 = vadd.f32 %v7856_v60, %v6259_v32  ;;  %v8056_v60 = vld [vmem:[%s11024_s11] sm:$0xff]  }
 0x95c   : > { %v6342_v23 = vpop.f32.mrf.mxu0  ;;  %7904 = vmatprep.subr.bf16.mxu0 %v8056_v60 }
 0x95d   : > { %6892 = vrot.lane.b32.xlu0 %v6351_v8, %s8221_s15  ;;  %v6343_v54 = vadd.f32 %v6342_v23, %v6259_v32  ;;  %7905 = vmatpush3.bf16.msra.mxu0 %v8056_v60  ;;  %v10875_v23 = vrot.slane %v10844_v59, %v4904_v51 }
 0x95e   : > { %v7857_v28 = vpop.f32.mrf.mxu0 }
 0x95f   : > { %v6354_v14 = vadd.f32 %v7857_v28, %v6259_v32 }
 0x960   : > { %v6345_v22 = vpop.f32.mrf.mxu0 }
 0x961   : > { %v6346_v4 = vadd.f32 %v6345_v22, %v6259_v32  ;;  %6894 = vrot.lane.b32.xlu1 %v6354_v14, %s8221_s15  ;;  %6888 = vrot.lane.b32.xlu0 %v6343_v54, %s8221_s15  ;;  %v6406_v63 = vpack.c.bf16 %v6354_v14, %v6351_v8 }
 0x963   : > { %v6405_v55 = vpack.c.bf16 %v6346_v4, %v6343_v54 }
 0x965   : > { %6890 = vrot.lane.b32.xlu1 %v6346_v4, %s8221_s15  ;;  %7886 = vmatprep.mubr.bf16.mxu1 %v6405_v55 }
 0x966   : > { %7887 = vmatmul.mubr.bf16.vlgmr.msra.gmra.mxu1 %v6406_v63 }
 0x96f   : > { %v7860_v38 = vpop.f32.mrf.mxu0 }
 0x970   : > { %v6367_v56 = vadd.f32 %v7860_v38, %v6259_v32 }
 0x971   : > { %v6358_v13 = vpop.f32.mrf.mxu0 }
 0x972   : > { %6900 = vrot.lane.b32.xlu0 %v6367_v56, %s8221_s15  ;;  %v6359_v9 = vadd.f32 %v6358_v13, %v6259_v32 }
 0x973   : > { %v7861_v53 = vpop.f32.mrf.mxu0 }
 0x974   : > { %v6370_v17 = vadd.f32 %v7861_v53, %v6259_v32 }
 0x975   : > { %v6361_v3 = vpop.f32.mrf.mxu0 }
 0x976   : > { %v6362_v42 = vadd.f32 %v6361_v3, %v6259_v32  ;;  %6902 = vrot.lane.b32.xlu1 %v6370_v17, %s8221_s15  ;;  %6896 = vrot.lane.b32.xlu0 %v6359_v9, %s8221_s15  ;;  %v6408_v26 = vpack.c.bf16 %v6370_v17, %v6367_v56 }
 0x978   : > { %v6407_v30 = vpack.c.bf16 %v6362_v42, %v6359_v9 }
 0x97a   : > { %6898 = vrot.lane.b32.xlu1 %v6362_v42, %s8221_s15  ;;  %7890 = vmatprep.mubr.bf16.mxu1 %v6407_v30 }
 0x97b   : > { %7891 = vmatmul.mubr.bf16.gmra.mxu1 %v6408_v26 }
 0x981   : > { %v7864_v10 = vpop.f32.mrf.mxu0 }
 0x982   : > { %v6383_v47 = vadd.f32 %v7864_v10, %v6259_v32 }
 0x983   : > { %v6374_v44 = vpop.f32.mrf.mxu0 }
 0x984   : > { %6908 = vrot.lane.b32.xlu0 %v6383_v47, %s8221_s15  ;;  %v6375_v50 = vadd.f32 %v6374_v44, %v6259_v32 }
 0x985   : > { %v7865_v41 = vpop.f32.mrf.mxu0 }
 0x986   : > { %v6386_v0 = vadd.f32 %v7865_v41, %v6259_v32 }
 0x987   : > { %v6377_v5 = vpop.f32.mrf.mxu0 }
 0x988   : > { %v6378_v62 = vadd.f32 %v6377_v5, %v6259_v32  ;;  %6910 = vrot.lane.b32.xlu1 %v6386_v0, %s8221_s15  ;;  %6904 = vrot.lane.b32.xlu0 %v6375_v50, %s8221_s15  ;;  %v6410_v15 = vpack.c.bf16 %v6386_v0, %v6383_v47 }
 0x98a   : > { %v6409_v24 = vpack.c.bf16 %v6378_v62, %v6375_v50 }
 0x98c   : > { %6906 = vrot.lane.b32.xlu1 %v6378_v62, %s8221_s15  ;;  %7894 = vmatprep.mubr.bf16.mxu1 %v6409_v24 }
 0x98d   : > { %7895 = vmatmul.mubr.bf16.gmra.mxu1 %v6410_v15 }
 0x992   : > { %v7868_v36 = vpop.f32.mrf.mxu0 }
 0x993   : > { %v6399_v7 = vadd.f32 %v7868_v36, %v6259_v32 }
 0x994   : > { %v6390_v58 = vpop.f32.mrf.mxu0 }
 0x995   : > { %v6391_v61 = vadd.f32 %v6390_v58, %v6259_v32 }
 0x996   : > { %v7869_v20 = vpop.f32.mrf.mxu0 }
 0x997   : > { %6912 = vrot.lane.b32.xlu0 %v6391_v61, %s8221_s15  ;;  %v6402_v37 = vadd.f32 %v7869_v20, %v6259_v32 }
 0x998   : > { %v6393_v11 = vpop.f32.mrf.mxu0 }
 0x999   : > { %v6394_v40 = vadd.f32 %v6393_v11, %v6259_v32  ;;  %v6412_v57 = vpack.c.bf16 %v6402_v37, %v6399_v7 }
 0x99b   : > { %v6411_v25 = vpack.c.bf16 %v6394_v40, %v6391_v61  ;;  %6914 = vrot.lane.b32.xlu1 %v6394_v40, %s8221_s15  ;;  %6916 = vrot.lane.b32.xlu0 %v6399_v7, %s8221_s15 }
 0x99d   : > { %7898 = vmatprep.mubr.bf16.mxu1 %v6411_v25 }
 0x99e   : > { %7899 = vmatmul.mubr.bf16.gmra.mxu1 %v6412_v57 }
 0x99f   : > { %6918 = vrot.lane.b32.xlu1 %v6402_v37, %s8221_s15 }
 0xa26   : > { %v7888_v32 = vpop.f32.mrf.mxu1 }
 0xa27   : > { %v6520_v8 = vadd.f32 %v7888_v32, %v10614_v34 }
 0xa28   : > { %v6511_v28 = vpop.f32.mrf.mxu1 }
 0xa29   : > { %v6512_v54 = vadd.f32 %v6511_v28, %v10616_v29  ;;  %v6580_v22 = vadd.f32 %v10875_v23, %v6520_v8 }
 0xa2a   : > { %v7889_v14 = vpop.f32.mrf.mxu1 }
 0xa2b   : > { %v6523_v4 = vadd.f32 %v7889_v14, %v10618_v16  ;;  %v6578_v63 = vadd.f32 %v10875_v23, %v6512_v54  ;;  %v6596_v56 = vmax.f32 %v6580_v22, 0.0  ;;  %v4754_v14 = vadd.f32 %v10647_v21, %v10606_v49 }
 0xa2c   : > { %v6514_v55 = vpop.f32.mrf.mxu1 }
 0xa2d   : > { %v6581_v38 = vadd.f32 %v10875_v23, %v6523_v4  ;;  %v6515_v34 = vadd.f32 %v6514_v55, %v10620_v18  ;;  %v6594_v53 = vmax.f32 %v6578_v63, 0.0  ;;  %v4891_v4 = vadd.f32 %v10673_v52, %v4754_v14 }
 0xa2f   : > { %v6597_v13 = vmax.f32 %v6581_v38, 0.0  ;;  %v6579_v51 = vadd.f32 %v10875_v23, %v6515_v34 }
 0xa31   : > { %v6611_v9 = vpack.c.bf16 %v6597_v13, %v6596_v56  ;;  %v6595_v17 = vmax.f32 %v6579_v51, 0.0 }
 0xa33   : > { %v6610_v29 = vpack.c.bf16 %v6595_v17, %v6594_v53 }
 0xa35   : > { %7906 = vmatprep.mubr.msk.bf16.mxu0 %vm4107_vm8, %v6610_v29 }
 0xa36   : > { %7907 = vmatmul.mubr.msk.bf16.vlgmr.msra.gmra.mxu0 %vm4107_vm8, %v6611_v9 }
 0xa3b   : > { %v7892_v16 = vpop.f32.mrf.mxu1 }
 0xa3c   : > { %v6536_v3 = vadd.f32 %v7892_v16, %v10622_v19 }
 0xa3d   : > { %v6527_v42 = vpop.f32.mrf.mxu1 }
 0xa3e   : > { %v6528_v30 = vadd.f32 %v6527_v42, %v10624_v12  ;;  %v6584_v18 = vadd.f32 %v10875_v23, %v6536_v3 }
 0xa3f   : > { %v7893_v26 = vpop.f32.mrf.mxu1 }
 0xa40   : > { %v6539_v10 = vadd.f32 %v7893_v26, %v10626_v39  ;;  %v6582_v44 = vadd.f32 %v10875_v23, %v6528_v30  ;;  %v6600_v0 = vmax.f32 %v6584_v18, 0.0 }
 0xa41   : > { %v6530_v47 = vpop.f32.mrf.mxu1 }
 0xa42   : > { %v6585_v41 = vadd.f32 %v10875_v23, %v6539_v10  ;;  %v6531_v50 = vadd.f32 %v6530_v47, %v10628_v35  ;;  %v6598_v19 = vmax.f32 %v6582_v44, 0.0 }
 0xa44   : > { %v6601_v5 = vmax.f32 %v6585_v41, 0.0  ;;  %v6583_v62 = vadd.f32 %v10875_v23, %v6531_v50 }
 0xa46   : > { %v6613_v24 = vpack.c.bf16 %v6601_v5, %v6600_v0  ;;  %v6599_v15 = vmax.f32 %v6583_v62, 0.0 }
 0xa48   : > { %v6612_v12 = vpack.c.bf16 %v6599_v15, %v6598_v19 }
 0xa4a   : > { %7910 = vmatprep.mubr.msk.bf16.mxu0 %vm4107_vm8, %v6612_v12 }
 0xa4b   : > { %7911 = vmatmul.mubr.msk.bf16.gmra.mxu0 %vm4107_vm8, %v6613_v24 }
 0xa4d   : > { %v7896_v39 = vpop.f32.mrf.mxu1 }
 0xa4e   : > { %v6552_v36 = vadd.f32 %v7896_v39, %v10630_v31 }
 0xa4f   : > { %v6543_v58 = vpop.f32.mrf.mxu1 }
 0xa50   : > { %v6544_v61 = vadd.f32 %v6543_v58, %v10632_v43  ;;  %v6588_v35 = vadd.f32 %v10875_v23, %v6552_v36 }
 0xa51   : > { %v7897_v20 = vpop.f32.mrf.mxu1 }
 0xa52   : > { %v6555_v37 = vadd.f32 %v7897_v20, %v10634_v33  ;;  %v6586_v7 = vadd.f32 %v10875_v23, %v6544_v61  ;;  %v6604_v57 = vmax.f32 %v6588_v35, 0.0 }
 0xa53   : > { %v6546_v11 = vpop.f32.mrf.mxu1 }
 0xa54   : > { %v6589_v40 = vadd.f32 %v10875_v23, %v6555_v37  ;;  %v6547_v25 = vadd.f32 %v6546_v11, %v10636_v1  ;;  %v6602_v31 = vmax.f32 %v6586_v7, 0.0  ;;  %v6893_v11 = vpop.permute.xlu0 %6892 }
 0xa56   : > { %v6605_v45 = vmax.f32 %v6589_v40, 0.0  ;;  %v6587_v60 = vadd.f32 %v10875_v23, %v6547_v25  ;;  %v6895_v40 = vpop.permute.xlu1 %6894 }
 0xa58   : > { %v6615_v32 = vpack.c.bf16 %v6605_v45, %v6604_v57  ;;  %v6603_v8 = vmax.f32 %v6587_v60, 0.0  ;;  %v6889_v57 = vpop.permute.xlu0 %6888 }
 0xa5a   : > { %v6614_v43 = vpack.c.bf16 %v6603_v8, %v6602_v31 }
 0xa5c   : > { %7914 = vmatprep.mubr.msk.bf16.mxu0 %vm4107_vm8, %v6614_v43 }
 0xa5d   : > { %7915 = vmatmul.mubr.msk.bf16.gmra.mxu0 %vm4107_vm8, %v6615_v32 }
 0xa5e   : > { %v7900_v33 = vpop.f32.mrf.mxu1 }
 0xa5f   : > { %v6568_v28 = vadd.f32 %v7900_v33, %v10638_v6 }
 0xa60   : > { %v6559_v54 = vpop.f32.mrf.mxu1 }
 0xa61   : > { %v6560_v1 = vadd.f32 %v6559_v54, %v10640_v2  ;;  %v6592_v55 = vadd.f32 %v10875_v23, %v6568_v28 }
 0xa62   : > { %v7901_v22 = vpop.f32.mrf.mxu1 }
 0xa63   : > { %v6571_v63 = vadd.f32 %v7901_v22, %v10642_v46  ;;  %v6590_v34 = vadd.f32 %v10875_v23, %v6560_v1  ;;  %v6608_v6 = vmax.f32 %v6592_v55, 0.0  ;;  %v10921_v46 = vrot.slane %v10844_v59, %v5087_v48  ;;  %v6891_v1 = vpop.permute.xlu1 %6890 }
 0xa64   : > { %v6562_v38 = vpop.f32.mrf.mxu1 }
 0xa65   : > { %v6593_v56 = vadd.f32 %v10875_v23, %v6571_v63  ;;  %v6563_v13 = vadd.f32 %v6562_v38, %v4891_v4  ;;  %v6606_v49 = vmax.f32 %v6590_v34, 0.0 }
 0xa67   : > { %v6609_v51 = vmax.f32 %v6593_v56, 0.0  ;;  %v6591_v53 = vadd.f32 %v10875_v23, %v6563_v13 }
 0xa69   : > { %v6617_v21 = vpack.c.bf16 %v6609_v51, %v6608_v6  ;;  %v6607_v2 = vmax.f32 %v6591_v53, 0.0 }
 0xa6b   : > { %v6616_v9 = vpack.c.bf16 %v6607_v2, %v6606_v49 }
 0xa6d   : > { %7918 = vmatprep.mubr.msk.bf16.mxu0 %vm4107_vm8, %v6616_v9 }
 0xa6e   : > { %7919 = vmatmul.mubr.msk.bf16.gmra.mxu0 %vm4107_vm8, %v6617_v21  ;;  %vm6855_vm8 = vcmask 23552   ;;  %v6901_v21 = vpop.permute.xlu0 %6900 }
 0xaf6   : > { %v7908_v52 = vpop.f32.mrf.mxu0 }
 0xaf7   : > { %v6705_v17 = vadd.f32 %v7908_v52, %v10921_v46  ;;  %v6903_v52 = vpop.permute.xlu1 %6902 }
 0xaf8   : > { %v6696_v29 = vpop.f32.mrf.mxu0 }
 0xaf9   : > { %v7366_v16 = vmul.f32 -1.442695, %v6705_v17  ;;  %v6697_v23 = vadd.f32 %v6696_v29, %v10921_v46 }
 0xafa   : > { %v7909_v3 = vpop.f32.mrf.mxu0 }
 0xafb   : > { %8121 = vpow2.f32 %v7366_v16  ;;  %v7364_v42 = vmul.f32 -1.442695, %v6697_v23  ;;  %v6708_v30 = vadd.f32 %v7909_v3, %v10921_v46 }
 0xafc   : > { %v6699_v26 = vpop.f32.mrf.mxu0 }
 0xafd   : > { %8123 = vpow2.f32 %v7364_v42  ;;  %v7367_v18 = vmul.f32 -1.442695, %v6708_v30  ;;  %v6700_v27 = vadd.f32 %v6699_v26, %v10921_v46 }
 0xaff   : > { %8125 = vpow2.f32 %v7367_v18  ;;  %v7365_v48 = vmul.f32 -1.442695, %v6700_v27  ;;  %v6897_v18 = vpop.permute.xlu0 %6896 }
 0xb01   : > { %8127 = vpow2.f32 %v7365_v48 }
 0xb08   : > { %v8122_v59 = vpop.eup %8121 }
 0xb09   : > { %v6809_v10 = vadd.f32 1.0, %v8122_v59 }
 0xb0a   : > { %v8124_v47 = vpop.eup %8123 }
 0xb0b   : > { %v7912_v44 = vpop.f32.mrf.mxu0  ;;  %8129 = vrcp.f32 %v6809_v10  ;;  %v6807_v41 = vadd.f32 1.0, %v8124_v47 }
 0xb0c   : > { %v6721_v50 = vadd.f32 %v7912_v44, %v10921_v46  ;;  %v8126_v0 = vpop.eup %8125 }
 0xb0d   : > { %v6712_v5 = vpop.f32.mrf.mxu0  ;;  %8131 = vrcp.f32 %v6807_v41  ;;  %v6810_v62 = vadd.f32 1.0, %v8126_v0  ;;  %v6899_v0 = vpop.permute.xlu1 %6898 }
 0xb0e   : > { %v7370_v19 = vmul.f32 -1.442695, %v6721_v50  ;;  %v6713_v24 = vadd.f32 %v6712_v5, %v10921_v46  ;;  %v8128_v15 = vpop.eup %8127 }
 0xb0f   : > { %v7913_v12 = vpop.f32.mrf.mxu0  ;;  %8133 = vrcp.f32 %v6810_v62  ;;  %v6808_v39 = vadd.f32 1.0, %v8128_v15 }
 0xb10   : > { %v7368_v36 = vmul.f32 -1.442695, %v6713_v24  ;;  %v6724_v58 = vadd.f32 %v7913_v12, %v10921_v46  ;;  %8135 = vpow2.f32 %v7370_v19 }
 0xb11   : > { %v6715_v61 = vpop.f32.mrf.mxu0  ;;  %8137 = vrcp.f32 %v6808_v39  ;;  %v6909_v39 = vpop.permute.xlu0 %6908 }
 0xb12   : > { %v7371_v20 = vmul.f32 -1.442695, %v6724_v58  ;;  %v6716_v35 = vadd.f32 %v6715_v61, %v10921_v46  ;;  %8139 = vpow2.f32 %v7368_v36  ;;  %v6911_v61 = vpop.permute.xlu1 %6910 }
 0xb14   : > { %8141 = vpow2.f32 %v7371_v20  ;;  %v7369_v37 = vmul.f32 -1.442695, %v6716_v35 }
 0xb16   : > { %8143 = vpow2.f32 %v7369_v37 }
 0xb18   : > { %v8130_v7 = vpop.eup %8129 }
 0xb19   : > { %6858 = vst.msk [vmem:[%s10936_s22 + $0x10] sm:$0xff] %vm6855_vm8, %v8130_v7  ;;  %v6905_v7 = vpop.permute.xlu0 %6904 }
 0xb1a   : > { %v8132_v25 = vpop.eup %8131  ;;  %6939 = vst.msk [vmem:[%s10936_s22 + $0x10] sm:$0xff] %vm6936_vm2, %v6893_v11 }
 0xb1b   : > { %6856 = vst.msk [vmem:[%s10936_s22] sm:$0xff] %vm6855_vm8, %v8132_v25 }
 0xb1c   : > { %v8134_v60 = vpop.eup %8133  ;;  %6937 = vst.msk [vmem:[%s10936_s22] sm:$0xff] %vm6936_vm2, %v6889_v57 }
 0xb1d   : > { %v7916_v45 = vpop.f32.mrf.mxu0  ;;  %v8136_v32 = vpop.eup %8135  ;;  %6859 = vst.msk [vmem:[%s10936_s22 + $0x18] sm:$0xff] %vm6855_vm8, %v8134_v60 }
 0xb1e   : > { %v6737_v31 = vadd.f32 %v7916_v45, %v10921_v46  ;;  %v8138_v43 = vpop.eup %8137  ;;  %6940 = vst.msk [vmem:[%s10936_s22 + $0x18] sm:$0xff] %vm6936_vm2, %v6895_v40  ;;  %v6813_v33 = vadd.f32 1.0, %v8136_v32  ;;  %v6907_v60 = vpop.permute.xlu1 %6906 }
 0xb1f   : > { %v6728_v8 = vpop.f32.mrf.mxu0  ;;  %v8140_v14 = vpop.eup %8139  ;;  %6857 = vst.msk [vmem:[%s10936_s22 + $0x8] sm:$0xff] %vm6855_vm8, %v8138_v43 }
 0xb20   : > { %v7374_v28 = vmul.f32 -1.442695, %v6737_v31  ;;  %v6729_v54 = vadd.f32 %v6728_v8, %v10921_v46  ;;  %6938 = vst.msk [vmem:[%s10936_s22 + $0x8] sm:$0xff] %vm6936_vm2, %v6891_v1  ;;  %8145 = vrcp.f32 %v6813_v33  ;;  %v6811_v55 = vadd.f32 1.0, %v8140_v14  ;;  %v6913_v32 = vpop.permute.xlu0 %6912 }
 0xb21   : > { %v7917_v22 = vpop.f32.mrf.mxu0  ;;  %v8142_v4 = vpop.eup %8141 }
 0xb22   : > { %v7372_v63 = vmul.f32 -1.442695, %v6729_v54  ;;  %v6740_v38 = vadd.f32 %v7917_v22, %v10921_v46  ;;  %v6814_v34 = vadd.f32 1.0, %v8142_v4  ;;  %8147 = vpow2.f32 %v7374_v28  ;;  %v6915_v8 = vpop.permute.xlu1 %6914 }
 0xb23   : > { %v6731_v56 = vpop.f32.mrf.mxu0  ;;  %v8144_v13 = vpop.eup %8143  ;;  %8149 = vrcp.f32 %v6811_v55 }
 0xb24   : > { %v7375_v6 = vmul.f32 -1.442695, %v6740_v38  ;;  %v6732_v51 = vadd.f32 %v6731_v56, %v10921_v46  ;;  %8151 = vrcp.f32 %v6814_v34  ;;  %v6812_v53 = vadd.f32 1.0, %v8144_v13  ;;  %v6917_v28 = vpop.permute.xlu0 %6916 }
 0xb25   : > { %8153 = vpow2.f32 %v7372_v63 }
 0xb26   : > { %v7373_v49 = vmul.f32 -1.442695, %v6732_v51  ;;  %8155 = vrcp.f32 %v6812_v53  ;;  %v6919_v14 = vpop.permute.xlu1 %6918 }
 0xb27   : > { %8157 = vpow2.f32 %v7375_v6 }
 0xb28   : > { %8159 = vpow2.f32 %v7373_v49 }
 0xb2d   : > { %v8146_v9 = vpop.eup %8145 }
 0xb2e   : > { %v7920_v2 = vpop.f32.mrf.mxu0  ;;  %6862 = vst.msk [vmem:[%s10936_s22 + $0x30] sm:$0xff] %vm6855_vm8, %v8146_v9 }
 0xb2f   : > { %v6753_v17 = vadd.f32 %v7920_v2, %v10921_v46  ;;  %v8148_v29 = vpop.eup %8147  ;;  %6943 = vst.msk [vmem:[%s10936_s22 + $0x30] sm:$0xff] %vm6936_vm2, %v6901_v21 }
 0xb30   : > { %v6744_v16 = vpop.f32.mrf.mxu0  ;;  %v8150_v23 = vpop.eup %8149  ;;  %v6817_v3 = vadd.f32 1.0, %v8148_v29 }
 0xb31   : > { %v7378_v42 = vmul.f32 -1.442695, %v6753_v17  ;;  %v6745_v30 = vadd.f32 %v6744_v16, %v10921_v46  ;;  %v8152_v26 = vpop.eup %8151  ;;  %6860 = vst.msk [vmem:[%s10936_s22 + $0x20] sm:$0xff] %vm6855_vm8, %v8150_v23 }
 0xb32   : > { %v7921_v27 = vpop.f32.mrf.mxu0  ;;  %v8154_v48 = vpop.eup %8153  ;;  %6941 = vst.msk [vmem:[%s10936_s22 + $0x20] sm:$0xff] %vm6936_vm2, %v6897_v18  ;;  %8161 = vrcp.f32 %v6817_v3 }
 0xb33   : > { %6863 = vst.msk [vmem:[%s10936_s22 + $0x38] sm:$0xff] %vm6855_vm8, %v8152_v26  ;;  %v7376_v59 = vmul.f32 -1.442695, %v6745_v30  ;;  %v6756_v10 = vadd.f32 %v7921_v27, %v10921_v46  ;;  %v8156_v47 = vpop.eup %8155  ;;  %v6815_v44 = vadd.f32 1.0, %v8154_v48  ;;  %8163 = vpow2.f32 %v7378_v42 }
 0xb34   : > { %6944 = vst.msk [vmem:[%s10936_s22 + $0x38] sm:$0xff] %vm6936_vm2, %v6903_v52  ;;  %v6747_v41 = vpop.f32.mrf.mxu0  ;;  %v8158_v50 = vpop.eup %8157 }
 0xb35   : > { %6861 = vst.msk [vmem:[%s10936_s22 + $0x28] sm:$0xff] %vm6855_vm8, %v8156_v47  ;;  %8165 = vpow2.f32 %v7376_v59  ;;  %v7379_v5 = vmul.f32 -1.442695, %v6756_v10  ;;  %v6748_v62 = vadd.f32 %v6747_v41, %v10921_v46  ;;  %v8160_v19 = vpop.eup %8159  ;;  %v6818_v24 = vadd.f32 1.0, %v8158_v50 }
 0xb36   : > { %6942 = vst.msk [vmem:[%s10936_s22 + $0x28] sm:$0xff] %vm6936_vm2, %v6899_v0  ;;  %8167 = vrcp.f32 %v6815_v44  ;;  %v6816_v15 = vadd.f32 1.0, %v8160_v19 }
 0xb37   : > { %8169 = vpow2.f32 %v7379_v5  ;;  %v7377_v12 = vmul.f32 -1.442695, %v6748_v62 }
 0xb38   : > { %8171 = vrcp.f32 %v6818_v24 }
 0xb39   : > { %8173 = vrcp.f32 %v6816_v15 }
 0xb3a   : > { %8175 = vpow2.f32 %v7377_v12 }
 0xb3f   : > { %v8162_v36 = vpop.eup %8161 }
 0xb40   : > { %v8164_v58 = vpop.eup %8163  ;;  %6866 = vst.msk [vmem:[%s10936_s22 + $0x50] sm:$0xff] %vm6855_vm8, %v8162_v36 }
 0xb41   : > { %6947 = vst.msk [vmem:[%s10936_s22 + $0x50] sm:$0xff] %vm6936_vm2, %v6909_v39  ;;  %v6821_v20 = vadd.f32 1.0, %v8164_v58 }
 0xb42   : > { %v8166_v46 = vpop.eup %8165 }
 0xb43   : > { %v8168_v35 = vpop.eup %8167  ;;  %v6819_v37 = vadd.f32 1.0, %v8166_v46  ;;  %8177 = vrcp.f32 %v6821_v20 }
 0xb44   : > { %v8170_v11 = vpop.eup %8169  ;;  %6864 = vst.msk [vmem:[%s10936_s22 + $0x40] sm:$0xff] %vm6855_vm8, %v8168_v35 }
 0xb45   : > { %v8172_v40 = vpop.eup %8171  ;;  %6945 = vst.msk [vmem:[%s10936_s22 + $0x40] sm:$0xff] %vm6936_vm2, %v6905_v7  ;;  %8179 = vrcp.f32 %v6819_v37  ;;  %v6822_v25 = vadd.f32 1.0, %v8170_v11 }
 0xb46   : > { %v8174_v57 = vpop.eup %8173  ;;  %6867 = vst.msk [vmem:[%s10936_s22 + $0x58] sm:$0xff] %vm6855_vm8, %v8172_v40 }
 0xb47   : > { %v8176_v45 = vpop.eup %8175  ;;  %6948 = vst.msk [vmem:[%s10936_s22 + $0x58] sm:$0xff] %vm6936_vm2, %v6911_v61  ;;  %8181 = vrcp.f32 %v6822_v25 }
 0xb48   : > { %6865 = vst.msk [vmem:[%s10936_s22 + $0x48] sm:$0xff] %vm6855_vm8, %v8174_v57  ;;  %v6820_v31 = vadd.f32 1.0, %v8176_v45 }
 0xb49   : > { %6946 = vst.msk [vmem:[%s10936_s22 + $0x48] sm:$0xff] %vm6936_vm2, %v6907_v60 }
 0xb4a   : > { %8183 = vrcp.f32 %v6820_v31 }
 0xb50   : > { %v8178_v43 = vpop.eup %8177 }
 0xb51   : > { %6870 = vst.msk [vmem:[%s10936_s22 + $0x70] sm:$0xff] %vm6855_vm8, %v8178_v43 }
 0xb52   : > { %v8180_v33 = vpop.eup %8179  ;;  %6951 = vst.msk [vmem:[%s10936_s22 + $0x70] sm:$0xff] %vm6936_vm2, %v6917_v28 }
 0xb53   : > { %6868 = vst.msk [vmem:[%s10936_s22 + $0x60] sm:$0xff] %vm6855_vm8, %v8180_v33 }
 0xb54   : > { %v8182_v54 = vpop.eup %8181  ;;  %6949 = vst.msk [vmem:[%s10936_s22 + $0x60] sm:$0xff] %vm6936_vm2, %v6913_v32 }
 0xb55   : > { %6871 = vst.msk [vmem:[%s10936_s22 + $0x78] sm:$0xff] %vm6855_vm8, %v8182_v54 }
 0xb56   : > { %6952 = vst.msk [vmem:[%s10936_s22 + $0x78] sm:$0xff] %vm6936_vm2, %v6919_v14 }
 0xb57   : > { %v8184_v1 = vpop.eup %8183 }
 0xb58   : > { %6869 = vst.msk [vmem:[%s10936_s22 + $0x68] sm:$0xff] %vm6855_vm8, %v8184_v1 }
 0xb59   : > { %6950 = vst.msk [vmem:[%s10936_s22 + $0x68] sm:$0xff] %vm6936_vm2, %v6915_v8 }
 0xb5a PF: > { %s23_s25 = sadd.s32 1, %s8209_s25  }
 0xb5b   : > { %p20_p4 = scmp.ge.s32.totalorder %s23_s25, 4  }
 0xb5d   :  { %22 = sbr.rel (!%p20_p4) target bundleno = 1 (0x1), region = 108 }

</bundles_post_ra>
